<compile_context>
chip_gen: v7x
topology: tpu7x:2x2x1
jax: 0.10.0
libtpu: 0.0.40
codegen_flags: <defaults>
</compile_context>

<pallas_src>
import jax
import jax.numpy as jnp
from jax import lax
from jax.experimental import pallas as pl
from jax.experimental.pallas import tpu as pltpu


SCORE_LANES = 128  # score head Linear(H,1) padded only to one lane-dense 128-wide slab

_WEIGHT_ORDER = ("ln1_g", "ln1_b", "wq", "wk", "wv", "wo",
                 "ln2_g", "ln2_b", "w1", "b1", "w2", "b2")
_BF16_WEIGHTS = frozenset({"wq", "wk", "wv", "wo", "w1", "w2"})


# ----------------------------- Pallas kernel ------------------------------- #

def _block_and_head_kernel(x_ref,
                           ln1_g_ref, ln1_b_ref,
                           wq_ref, wk_ref, wv_ref, wo_ref,
                           ln2_g_ref, ln2_b_ref,
                           w1_ref, b1_ref, w2_ref, b2_ref,
                           head_ref, out_ref):
    """Pre-LN transformer block (per-batch causal single-head attention + GELU MLP)
    fused with the output-head matmul.

    Grid is (B,): each step processes one batch's [S, H] activations and writes
    [S, Vout] head logits (Vout = vocab for the policy, 128 lanes for the critic score).
    """
    x = x_ref[0].astype(jnp.float32)                 # (S, H), bf16 in HBM -> f32 math
    S, H = x.shape
    eps = 1e-5
    inv_sqrt_h = 1.0 / jnp.sqrt(jnp.float32(H))

    # --- LayerNorm 1 (f32 stats) ---
    mu = jnp.mean(x, axis=-1, keepdims=True)
    var = jnp.mean((x - mu) ** 2, axis=-1, keepdims=True)
    h = (x - mu) * lax.rsqrt(var + eps) * ln1_g_ref[...] + ln1_b_ref[...]

    # --- causal self-attention (single head), bf16 MXU operands, f32 accumulate ---
    hb = h.astype(jnp.bfloat16)
    q = jnp.dot(hb, wq_ref[...], preferred_element_type=jnp.float32)
    k = jnp.dot(hb, wk_ref[...], preferred_element_type=jnp.float32)
    v = jnp.dot(hb, wv_ref[...], preferred_element_type=jnp.float32)

    # scores = q @ k^T over the hidden dim (no materialized transpose)
    scores = lax.dot_general(
        q.astype(jnp.bfloat16), k.astype(jnp.bfloat16),
        (((1,), (1,)), ((), ())),
        preferred_element_type=jnp.float32) * inv_sqrt_h

    # plain causal mask from 1-D iotas (broadcast-compare; no [S,S] int32 arrays, no divides)
    row = lax.broadcasted_iota(jnp.int32, (S, 1), 0)
    col = lax.broadcasted_iota(jnp.int32, (1, S), 1)
    scores = jnp.where(col <= row, scores, -1e30)    # finite fill: safe even if rows get fully masked

    # softmax in f32; normalizer reciprocal goes to the EUP slot
    scores = scores - jnp.max(scores, axis=-1, keepdims=True)
    p = jnp.exp(scores)
    p = p * pl.reciprocal(jnp.sum(p, axis=-1, keepdims=True), approx=True)

    attn = jnp.dot(p.astype(jnp.bfloat16), v.astype(jnp.bfloat16),
                   preferred_element_type=jnp.float32)
    attn = jnp.dot(attn.astype(jnp.bfloat16), wo_ref[...],
                   preferred_element_type=jnp.float32)
    x = x + attn

    # --- LayerNorm 2 + GELU MLP ---
    mu2 = jnp.mean(x, axis=-1, keepdims=True)
    var2 = jnp.mean((x - mu2) ** 2, axis=-1, keepdims=True)
    h2 = (x - mu2) * lax.rsqrt(var2 + eps) * ln2_g_ref[...] + ln2_b_ref[...]
    ff = jnp.dot(h2.astype(jnp.bfloat16), w1_ref[...],
                 preferred_element_type=jnp.float32) + b1_ref[...]
    ff = jax.nn.gelu(ff)   # tanh approx; PyTorch nn.GELU default is exact erf (kept for lowering safety)
    ff = jnp.dot(ff.astype(jnp.bfloat16), w2_ref[...],
                 preferred_element_type=jnp.float32) + b2_ref[...]
    hidden = x + ff                                   # (S, H) f32

    # --- fused head matmul: lm_head (policy) or 128-lane padded score head (critic) ---
    logits = jnp.dot(hidden.astype(jnp.bfloat16), head_ref[...],
                     preferred_element_type=jnp.float32)   # (S, Vout), lane-dense
    out_ref[0] = logits.astype(out_ref.dtype)               # single store per grid step


# ------------------------------ JAX wrappers ------------------------------- #

def _vmem_limit_bytes(S, H, FF, Vout):
    """Scoped-VMEM request sized from the real working set, with headroom, <= 32 MiB."""
    bf16, f32 = 2, 4
    io_blocks = 2 * S * H * bf16 + 2 * S * Vout * f32          # double-buffered x + out blocks
    weights = 2 * ((4 * H * H + H * FF + FF * H + H * Vout) * bf16
                   + (4 * H + FF + H) * f32)                    # (conservatively) double-buffered
    interm = (2 * S * S + 8 * S * H + 2 * S * FF) * f32         # scores+p, h/q/k/v/attn/x, ff
    total = io_blocks + weights + interm
    return int(min(max(2 * total + (8 << 20), 16 << 20), 32 << 20))


def fused_block_head_call(x, w, head, *, out_dtype):
    """x: [B, S, H] bf16; w: dict of per-backbone weights; head: [H, Vout] bf16."""
    B, S, H = x.shape
    FF = w["w1"].shape[-1]
    Vout = head.shape[-1]
    weights = [w[name] for name in _WEIGHT_ORDER] + [head]

    in_specs = [pl.BlockSpec((1, S, H), lambda b: (b, 0, 0))]
    for arr in weights:
        # Constant index_map -> weight tile fetched once and held resident across batches.
        in_specs.append(
            pl.BlockSpec(arr.shape, lambda b, _nd=arr.ndim: (0,) * _nd))

    return pl.pallas_call(
        _block_and_head_kernel,
        out_shape=jax.ShapeDtypeStruct((B, S, Vout), out_dtype),
        grid=(B,),
        in_specs=in_specs,
        out_specs=pl.BlockSpec((1, S, Vout), lambda b: (b, 0, 0)),
        compiler_params=pltpu.CompilerParams(
            # Batch axis is independent -> shards across v7x's two TensorCores.
            dimension_semantics=("parallel",),
            vmem_limit_bytes=_vmem_limit_bytes(S, H, FF, Vout)),
    )(x, *weights)


def prep_backbone_weights(params):
    """Cast MXU-operand weights to bf16 (halves weight DMA); keep LN/bias params f32."""
    return {name: (params[name].astype(jnp.bfloat16) if name in _BF16_WEIGHTS
                   else params[name])
            for name in _WEIGHT_ORDER}


# ------------------------- parameter construction -------------------------- #

def make_backbone_params(key, H, FF, V, S):
    ks = jax.random.split(key, 8)
    scale = 0.02
    return {
        "embed": scale * jax.random.normal(ks[0], (V, H), jnp.float32),
        "pos":   scale * jax.random.normal(ks[1], (S, H), jnp.float32),
        "ln1_g": jnp.ones((1, H), jnp.float32),
        "ln1_b": jnp.zeros((1, H), jnp.float32),
        "wq": scale * jax.random.normal(ks[2], (H, H), jnp.float32),
        "wk": scale * jax.random.normal(ks[3], (H, H), jnp.float32),
        "wv": scale * jax.random.normal(ks[4], (H, H), jnp.float32),
        "wo": scale * jax.random.normal(ks[5], (H, H), jnp.float32),
        "ln2_g": jnp.ones((1, H), jnp.float32),
        "ln2_b": jnp.zeros((1, H), jnp.float32),
        "w1": scale * jax.random.normal(ks[6], (H, FF), jnp.float32),
        "b1": jnp.zeros((1, FF), jnp.float32),
        "w2": scale * jax.random.normal(ks[7], (FF, H), jnp.float32),
        "b2": jnp.zeros((1, H), jnp.float32),
    }


def policy_and_value_forward(input_ids,
                             policy_params, policy_lm_head,
                             critic_params, score_w):
    """Mirrors PolicyAndValueWrapper.forward:
       returns (policy(**kwargs) logits, value_model.score(critic hidden_states[-1]))."""
    B, S = input_ids.shape
    H = policy_params["embed"].shape[1]

    # Embedding lookup + positional add is glue (token-id gather stays in plain JAX).
    x_pol = (jnp.take(policy_params["embed"], input_ids, axis=0)
             + policy_params["pos"][None]).astype(jnp.bfloat16)       # [B,S,H] bf16 in HBM
    x_crit = (jnp.take(critic_params["embed"], input_ids, axis=0)
              + critic_params["pos"][None]).astype(jnp.bfloat16)

    pol_w = prep_backbone_weights(policy_params)
    crit_w = prep_backbone_weights(critic_params)

    lm_head = policy_lm_head.astype(jnp.bfloat16)                     # [H, V]
    score_head = jnp.concatenate(
        [score_w, jnp.zeros((H, SCORE_LANES - 1), score_w.dtype)],
        axis=1).astype(jnp.bfloat16)                                  # [H, 128], lane-dense only

    # Policy: backbone + lm_head fused; bf16 store (largest writeback), upcast for the API.
    policy_logits = fused_block_head_call(
        x_pol, pol_w, lm_head, out_dtype=jnp.bfloat16).astype(jnp.float32)
    # Critic: backbone + 128-lane score head fused; value = first column.
    value_out = fused_block_head_call(
        x_crit, crit_w, score_head, out_dtype=jnp.float32)
    value_logits = value_out[:, :, :1]                                # [B, S, 1]
    return policy_logits, value_logits


# ----------------------------------- main ----------------------------------- #

if __name__ == "__main__":
    # Small demo shapes, but lane/sublane-dense and 256-multiples for the v6e/v7x 256x256 MXU.
    B, S, H, FF, V = 2, 16, 256, 512, 256

    root = jax.random.PRNGKey(0)
    k_pol, k_crit, k_lm, k_score, k_ids = jax.random.split(root, 5)

    policy_params = make_backbone_params(k_pol, H, FF, V, S)
    critic_params = make_backbone_params(k_crit, H, FF, V, S)
    policy_lm_head = 0.02 * jax.random.normal(k_lm, (H, V), jnp.float32)
    score_w = 0.02 * jax.random.normal(k_score, (H, 1), jnp.float32)   # Linear(H, 1, bias=False)

    input_ids = jax.random.randint(k_ids, (B, S), 0, V, dtype=jnp.int32)

    fwd = jax.jit(policy_and_value_forward)
    policy_logits, value_logits = fwd(input_ids,
                                      policy_params, policy_lm_head,
                                      critic_params, score_w)
    jax.block_until_ready((policy_logits, value_logits))

    assert policy_logits.shape == (B, S, V) and policy_logits.dtype == jnp.float32
    assert value_logits.shape == (B, S, 1) and value_logits.dtype == jnp.float32
    assert bool(jnp.all(jnp.isfinite(policy_logits))) and bool(jnp.all(jnp.isfinite(value_logits)))

    print("KERNEL_OK")
</pallas_src>

<mosaic_0001>
module attributes {stable_mosaic.version = 11 : i64} {
  func.func @_block_and_head_kernel(%arg0: i32, %arg1: memref<1x16x256xbf16, #tpu.memory_space<vmem>>, %arg2: memref<1x256xf32, #tpu.memory_space<vmem>>, %arg3: memref<1x256xf32, #tpu.memory_space<vmem>>, %arg4: memref<256x256xbf16, #tpu.memory_space<vmem>>, %arg5: memref<256x256xbf16, #tpu.memory_space<vmem>>, %arg6: memref<256x256xbf16, #tpu.memory_space<vmem>>, %arg7: memref<256x256xbf16, #tpu.memory_space<vmem>>, %arg8: memref<1x256xf32, #tpu.memory_space<vmem>>, %arg9: memref<1x256xf32, #tpu.memory_space<vmem>>, %arg10: memref<256x512xbf16, #tpu.memory_space<vmem>>, %arg11: memref<1x512xf32, #tpu.memory_space<vmem>>, %arg12: memref<512x256xbf16, #tpu.memory_space<vmem>>, %arg13: memref<1x256xf32, #tpu.memory_space<vmem>>, %arg14: memref<256x128xbf16, #tpu.memory_space<vmem>>, %arg15: memref<1x16x128xf32, #tpu.memory_space<vmem>>) attributes {dimension_semantics = [#tpu.dimension_semantics<parallel>], iteration_bounds = array<i64: 2>, scalar_prefetch = 0 : i64, scratch_operands = 0 : i64, tpu.core_type = #tpu.core_type<tc>, window_params = [{transform_indices = @transform_0, window_bounds = array<i64: 1, 16, 256>}, {pipeline_mode = #tpu.pipeline_mode<synchronous>, transform_indices = @transform_1, window_bounds = array<i64: 1, 256>}, {pipeline_mode = #tpu.pipeline_mode<synchronous>, transform_indices = @transform_2, window_bounds = array<i64: 1, 256>}, {pipeline_mode = #tpu.pipeline_mode<synchronous>, transform_indices = @transform_3, window_bounds = array<i64: 256, 256>}, {pipeline_mode = #tpu.pipeline_mode<synchronous>, transform_indices = @transform_4, window_bounds = array<i64: 256, 256>}, {pipeline_mode = #tpu.pipeline_mode<synchronous>, transform_indices = @transform_5, window_bounds = array<i64: 256, 256>}, {pipeline_mode = #tpu.pipeline_mode<synchronous>, transform_indices = @transform_6, window_bounds = array<i64: 256, 256>}, {pipeline_mode = #tpu.pipeline_mode<synchronous>, transform_indices = @transform_7, window_bounds = array<i64: 1, 256>}, {pipeline_mode = #tpu.pipeline_mode<synchronous>, transform_indices = @transform_8, window_bounds = array<i64: 1, 256>}, {pipeline_mode = #tpu.pipeline_mode<synchronous>, transform_indices = @transform_9, window_bounds = array<i64: 256, 512>}, {pipeline_mode = #tpu.pipeline_mode<synchronous>, transform_indices = @transform_10, window_bounds = array<i64: 1, 512>}, {pipeline_mode = #tpu.pipeline_mode<synchronous>, transform_indices = @transform_11, window_bounds = array<i64: 512, 256>}, {pipeline_mode = #tpu.pipeline_mode<synchronous>, transform_indices = @transform_12, window_bounds = array<i64: 1, 256>}, {pipeline_mode = #tpu.pipeline_mode<synchronous>, transform_indices = @transform_13, window_bounds = array<i64: 256, 128>}, {transform_indices = @transform_14, window_bounds = array<i64: 1, 16, 128>}]} {
    %c0 = arith.constant 0 : index
    %c0_0 = arith.constant 0 : index
    %c0_1 = arith.constant 0 : index
    %0 = vector.load %arg1[%c0, %c0_0, %c0_1] : memref<1x16x256xbf16, #tpu.memory_space<vmem>>, vector<1x16x256xbf16>
    %1 = vector.shape_cast %0 : vector<1x16x256xbf16> to vector<16x256xbf16>
    %2 = arith.extf %1 : vector<16x256xbf16> to vector<16x256xf32>
    %cst = arith.constant 2.560000e+02 : f32
    %3 = math.sqrt %cst : f32
    %cst_2 = arith.constant 1.000000e+00 : f32
    %4 = arith.divf %cst_2, %3 : f32
    %cst_3 = arith.constant dense<0.000000e+00> : vector<16xf32>
    %5 = vector.multi_reduction <add>, %2, %cst_3 [1] : vector<16x256xf32> to vector<16xf32>
    %6 = vector.shape_cast %5 : vector<16xf32> to vector<16x1xf32>
    %cst_4 = arith.constant 2.560000e+02 : f32
    %7 = vector.broadcast %cst_4 : f32 to vector<16x1xf32>
    %8 = arith.divf %6, %7 : vector<16x1xf32>
    %9 = vector.broadcast %8 : vector<16x1xf32> to vector<16x256xf32>
    %10 = arith.subf %2, %9 : vector<16x256xf32>
    %11 = arith.mulf %10, %10 : vector<16x256xf32>
    %cst_5 = arith.constant dense<0.000000e+00> : vector<16xf32>
    %12 = vector.multi_reduction <add>, %11, %cst_5 [1] : vector<16x256xf32> to vector<16xf32>
    %13 = vector.shape_cast %12 : vector<16xf32> to vector<16x1xf32>
    %cst_6 = arith.constant 2.560000e+02 : f32
    %14 = vector.broadcast %cst_6 : f32 to vector<16x1xf32>
    %15 = arith.divf %13, %14 : vector<16x1xf32>
    %16 = vector.broadcast %8 : vector<16x1xf32> to vector<16x256xf32>
    %17 = arith.subf %2, %16 : vector<16x256xf32>
    %cst_7 = arith.constant 9.99999974E-6 : f32
    %18 = vector.broadcast %cst_7 : f32 to vector<16x1xf32>
    %19 = arith.addf %15, %18 : vector<16x1xf32>
    %20 = math.rsqrt %19 : vector<16x1xf32>
    %21 = vector.broadcast %20 : vector<16x1xf32> to vector<16x256xf32>
    %22 = arith.mulf %17, %21 : vector<16x256xf32>
    %c0_8 = arith.constant 0 : index
    %c0_9 = arith.constant 0 : index
    %23 = vector.load %arg2[%c0_8, %c0_9] : memref<1x256xf32, #tpu.memory_space<vmem>>, vector<1x256xf32>
    %24 = vector.broadcast %23 : vector<1x256xf32> to vector<16x256xf32>
    %25 = arith.mulf %22, %24 : vector<16x256xf32>
    %c0_10 = arith.constant 0 : index
    %c0_11 = arith.constant 0 : index
    %26 = vector.load %arg3[%c0_10, %c0_11] : memref<1x256xf32, #tpu.memory_space<vmem>>, vector<1x256xf32>
    %27 = vector.broadcast %26 : vector<1x256xf32> to vector<16x256xf32>
    %28 = arith.addf %25, %27 : vector<16x256xf32>
    %29 = arith.truncf %28 : vector<16x256xf32> to vector<16x256xbf16>
    %c0_12 = arith.constant 0 : index
    %c0_13 = arith.constant 0 : index
    %30 = vector.load %arg4[%c0_12, %c0_13] : memref<256x256xbf16, #tpu.memory_space<vmem>>, vector<256x256xbf16>
    %cst_14 = arith.constant dense<0.000000e+00> : vector<16x256xf32>
    %31 = tpu.matmul %29, %30, %cst_14 {dimension_numbers = #tpu.dot_dimension_numbers<[1], [0], [0], [1], [0, 0, 1, 1], [], []>} : vector<16x256xbf16>, vector<256x256xbf16>, vector<16x256xf32> -> vector<16x256xf32>
    %c0_15 = arith.constant 0 : index
    %c0_16 = arith.constant 0 : index
    %32 = vector.load %arg5[%c0_15, %c0_16] : memref<256x256xbf16, #tpu.memory_space<vmem>>, vector<256x256xbf16>
    %cst_17 = arith.constant dense<0.000000e+00> : vector<16x256xf32>
    %33 = tpu.matmul %29, %32, %cst_17 {dimension_numbers = #tpu.dot_dimension_numbers<[1], [0], [0], [1], [0, 0, 1, 1], [], []>} : vector<16x256xbf16>, vector<256x256xbf16>, vector<16x256xf32> -> vector<16x256xf32>
    %c0_18 = arith.constant 0 : index
    %c0_19 = arith.constant 0 : index
    %34 = vector.load %arg6[%c0_18, %c0_19] : memref<256x256xbf16, #tpu.memory_space<vmem>>, vector<256x256xbf16>
    %cst_20 = arith.constant dense<0.000000e+00> : vector<16x256xf32>
    %35 = tpu.matmul %29, %34, %cst_20 {dimension_numbers = #tpu.dot_dimension_numbers<[1], [0], [0], [1], [0, 0, 1, 1], [], []>} : vector<16x256xbf16>, vector<256x256xbf16>, vector<16x256xf32> -> vector<16x256xf32>
    %36 = arith.truncf %31 : vector<16x256xf32> to vector<16x256xbf16>
    %37 = arith.truncf %33 : vector<16x256xf32> to vector<16x256xbf16>
    %cst_21 = arith.constant dense<0.000000e+00> : vector<16x16xf32>
    %38 = tpu.matmul %36, %37, %cst_21 {dimension_numbers = #tpu.dot_dimension_numbers<[1], [1], [0], [0], [0, 0, 1, 0], [], []>} : vector<16x256xbf16>, vector<16x256xbf16>, vector<16x16xf32> -> vector<16x16xf32>
    %39 = vector.broadcast %4 : f32 to vector<16x16xf32>
    %40 = arith.mulf %38, %39 : vector<16x16xf32>
    %41 = tpu.iota {dimensions = array<i32: 0>} : vector<16x1xi32>
    %42 = tpu.iota {dimensions = array<i32: 1>} : vector<1x16xi32>
    %43 = vector.broadcast %42 : vector<1x16xi32> to vector<16x16xi32>
    %44 = vector.broadcast %41 : vector<16x1xi32> to vector<16x16xi32>
    %45 = arith.cmpi sle, %43, %44 : vector<16x16xi32>
    %cst_22 = arith.constant -1.000000e+30 : f32
    %46 = vector.broadcast %cst_22 : f32 to vector<16x16xf32>
    %47 = arith.select %45, %40, %46 : vector<16x16xi1>, vector<16x16xf32>
    %cst_23 = arith.constant dense<0xFF800000> : vector<16xf32>
    %48 = vector.multi_reduction <maximumf>, %47, %cst_23 [1] : vector<16x16xf32> to vector<16xf32>
    %49 = vector.shape_cast %48 : vector<16xf32> to vector<16x1xf32>
    %50 = vector.broadcast %49 : vector<16x1xf32> to vector<16x16xf32>
    %51 = arith.subf %47, %50 : vector<16x16xf32>
    %52 = math.exp %51 : vector<16x16xf32>
    %cst_24 = arith.constant dense<0.000000e+00> : vector<16xf32>
    %53 = vector.multi_reduction <add>, %52, %cst_24 [1] : vector<16x16xf32> to vector<16xf32>
    %54 = vector.shape_cast %53 : vector<16xf32> to vector<16x1xf32>
    %55 = tpu.reciprocal %54 {approx = true} : vector<16x1xf32> -> vector<16x1xf32>
    %56 = vector.broadcast %55 : vector<16x1xf32> to vector<16x16xf32>
    %57 = arith.mulf %52, %56 : vector<16x16xf32>
    %58 = arith.truncf %57 : vector<16x16xf32> to vector<16x16xbf16>
    %59 = arith.truncf %35 : vector<16x256xf32> to vector<16x256xbf16>
    %cst_25 = arith.constant dense<0.000000e+00> : vector<16x256xf32>
    %60 = tpu.matmul %58, %59, %cst_25 {dimension_numbers = #tpu.dot_dimension_numbers<[1], [0], [0], [1], [0, 0, 1, 1], [], []>} : vector<16x16xbf16>, vector<16x256xbf16>, vector<16x256xf32> -> vector<16x256xf32>
    %61 = arith.truncf %60 : vector<16x256xf32> to vector<16x256xbf16>
    %c0_26 = arith.constant 0 : index
    %c0_27 = arith.constant 0 : index
    %62 = vector.load %arg7[%c0_26, %c0_27] : memref<256x256xbf16, #tpu.memory_space<vmem>>, vector<256x256xbf16>
    %cst_28 = arith.constant dense<0.000000e+00> : vector<16x256xf32>
    %63 = tpu.matmul %61, %62, %cst_28 {dimension_numbers = #tpu.dot_dimension_numbers<[1], [0], [0], [1], [0, 0, 1, 1], [], []>} : vector<16x256xbf16>, vector<256x256xbf16>, vector<16x256xf32> -> vector<16x256xf32>
    %64 = arith.addf %2, %63 : vector<16x256xf32>
    %cst_29 = arith.constant dense<0.000000e+00> : vector<16xf32>
    %65 = vector.multi_reduction <add>, %64, %cst_29 [1] : vector<16x256xf32> to vector<16xf32>
    %66 = vector.shape_cast %65 : vector<16xf32> to vector<16x1xf32>
    %cst_30 = arith.constant 2.560000e+02 : f32
    %67 = vector.broadcast %cst_30 : f32 to vector<16x1xf32>
    %68 = arith.divf %66, %67 : vector<16x1xf32>
    %69 = vector.broadcast %68 : vector<16x1xf32> to vector<16x256xf32>
    %70 = arith.subf %64, %69 : vector<16x256xf32>
    %71 = arith.mulf %70, %70 : vector<16x256xf32>
    %cst_31 = arith.constant dense<0.000000e+00> : vector<16xf32>
    %72 = vector.multi_reduction <add>, %71, %cst_31 [1] : vector<16x256xf32> to vector<16xf32>
    %73 = vector.shape_cast %72 : vector<16xf32> to vector<16x1xf32>
    %cst_32 = arith.constant 2.560000e+02 : f32
    %74 = vector.broadcast %cst_32 : f32 to vector<16x1xf32>
    %75 = arith.divf %73, %74 : vector<16x1xf32>
    %76 = vector.broadcast %68 : vector<16x1xf32> to vector<16x256xf32>
    %77 = arith.subf %64, %76 : vector<16x256xf32>
    %cst_33 = arith.constant 9.99999974E-6 : f32
    %78 = vector.broadcast %cst_33 : f32 to vector<16x1xf32>
    %79 = arith.addf %75, %78 : vector<16x1xf32>
    %80 = math.rsqrt %79 : vector<16x1xf32>
    %81 = vector.broadcast %80 : vector<16x1xf32> to vector<16x256xf32>
    %82 = arith.mulf %77, %81 : vector<16x256xf32>
    %c0_34 = arith.constant 0 : index
    %c0_35 = arith.constant 0 : index
    %83 = vector.load %arg8[%c0_34, %c0_35] : memref<1x256xf32, #tpu.memory_space<vmem>>, vector<1x256xf32>
    %84 = vector.broadcast %83 : vector<1x256xf32> to vector<16x256xf32>
    %85 = arith.mulf %82, %84 : vector<16x256xf32>
    %c0_36 = arith.constant 0 : index
    %c0_37 = arith.constant 0 : index
    %86 = vector.load %arg9[%c0_36, %c0_37] : memref<1x256xf32, #tpu.memory_space<vmem>>, vector<1x256xf32>
    %87 = vector.broadcast %86 : vector<1x256xf32> to vector<16x256xf32>
    %88 = arith.addf %85, %87 : vector<16x256xf32>
    %89 = arith.truncf %88 : vector<16x256xf32> to vector<16x256xbf16>
    %c0_38 = arith.constant 0 : index
    %c0_39 = arith.constant 0 : index
    %90 = vector.load %arg10[%c0_38, %c0_39] : memref<256x512xbf16, #tpu.memory_space<vmem>>, vector<256x512xbf16>
    %cst_40 = arith.constant dense<0.000000e+00> : vector<16x512xf32>
    %91 = tpu.matmul %89, %90, %cst_40 {dimension_numbers = #tpu.dot_dimension_numbers<[1], [0], [0], [1], [0, 0, 1, 1], [], []>} : vector<16x256xbf16>, vector<256x512xbf16>, vector<16x512xf32> -> vector<16x512xf32>
    %c0_41 = arith.constant 0 : index
    %c0_42 = arith.constant 0 : index
    %92 = vector.load %arg11[%c0_41, %c0_42] : memref<1x512xf32, #tpu.memory_space<vmem>>, vector<1x512xf32>
    %93 = vector.broadcast %92 : vector<1x512xf32> to vector<16x512xf32>
    %94 = arith.addf %91, %93 : vector<16x512xf32>
    %95 = arith.mulf %94, %94 : vector<16x512xf32>
    %96 = arith.mulf %94, %95 : vector<16x512xf32>
    %cst_43 = arith.constant 4.471500e-02 : f32
    %97 = vector.broadcast %cst_43 : f32 to vector<16x512xf32>
    %98 = arith.mulf %97, %96 : vector<16x512xf32>
    %99 = arith.addf %94, %98 : vector<16x512xf32>
    %cst_44 = arith.constant 0.797884583 : f32
    %100 = vector.broadcast %cst_44 : f32 to vector<16x512xf32>
    %101 = arith.mulf %100, %99 : vector<16x512xf32>
    %102 = math.tanh %101 : vector<16x512xf32>
    %cst_45 = arith.constant 1.000000e+00 : f32
    %103 = vector.broadcast %cst_45 : f32 to vector<16x512xf32>
    %104 = arith.addf %103, %102 : vector<16x512xf32>
    %cst_46 = arith.constant 5.000000e-01 : f32
    %105 = vector.broadcast %cst_46 : f32 to vector<16x512xf32>
    %106 = arith.mulf %105, %104 : vector<16x512xf32>
    %107 = arith.mulf %94, %106 : vector<16x512xf32>
    %108 = arith.truncf %107 : vector<16x512xf32> to vector<16x512xbf16>
    %c0_47 = arith.constant 0 : index
    %c0_48 = arith.constant 0 : index
    %109 = vector.load %arg12[%c0_47, %c0_48] : memref<512x256xbf16, #tpu.memory_space<vmem>>, vector<512x256xbf16>
    %cst_49 = arith.constant dense<0.000000e+00> : vector<16x256xf32>
    %110 = tpu.matmul %108, %109, %cst_49 {dimension_numbers = #tpu.dot_dimension_numbers<[1], [0], [0], [1], [0, 0, 1, 1], [], []>} : vector<16x512xbf16>, vector<512x256xbf16>, vector<16x256xf32> -> vector<16x256xf32>
    %c0_50 = arith.constant 0 : index
    %c0_51 = arith.constant 0 : index
    %111 = vector.load %arg13[%c0_50, %c0_51] : memref<1x256xf32, #tpu.memory_space<vmem>>, vector<1x256xf32>
    %112 = vector.broadcast %111 : vector<1x256xf32> to vector<16x256xf32>
    %113 = arith.addf %110, %112 : vector<16x256xf32>
    %114 = arith.addf %64, %113 : vector<16x256xf32>
    %115 = arith.truncf %114 : vector<16x256xf32> to vector<16x256xbf16>
    %c0_52 = arith.constant 0 : index
    %c0_53 = arith.constant 0 : index
    %116 = vector.load %arg14[%c0_52, %c0_53] : memref<256x128xbf16, #tpu.memory_space<vmem>>, vector<256x128xbf16>
    %cst_54 = arith.constant dense<0.000000e+00> : vector<16x128xf32>
    %117 = tpu.matmul %115, %116, %cst_54 {dimension_numbers = #tpu.dot_dimension_numbers<[1], [0], [0], [1], [0, 0, 1, 1], [], []>} : vector<16x256xbf16>, vector<256x128xbf16>, vector<16x128xf32> -> vector<16x128xf32>
    %c0_55 = arith.constant 0 : index
    %c0_56 = arith.constant 0 : index
    %c0_57 = arith.constant 0 : index
    %118 = vector.load %arg15[%c0_55, %c0_56, %c0_57] : memref<1x16x128xf32, #tpu.memory_space<vmem>>, vector<1x16x128xf32>
    %119 = vector.shape_cast %118 : vector<1x16x128xf32> to vector<16x128xf32>
    %120 = vector.shape_cast %117 : vector<16x128xf32> to vector<1x16x128xf32>
    tpu.vector_store %arg15[%c0_55, %c0_56, %c0_57], %120 {strides = array<i32>} : memref<1x16x128xf32, #tpu.memory_space<vmem>>, vector<1x16x128xf32>,
    return
  }
  func.func @transform_0(%arg0: i32) -> (i32, i32, i32) {
    %c0_i32 = arith.constant 0 : i32
    %c0_i32_0 = arith.constant 0 : i32
    %c0_i32_1 = arith.constant 0 : i32
    return %arg0, %c0_i32, %c0_i32_0 : i32, i32, i32
  }
  func.func @transform_1(%arg0: i32) -> (i32, i32) {
    %c0_i32 = arith.constant 0 : i32
    %c0_i32_0 = arith.constant 0 : i32
    %c0_i32_1 = arith.constant 0 : i32
    return %c0_i32, %c0_i32_0 : i32, i32
  }
  func.func @transform_2(%arg0: i32) -> (i32, i32) {
    %c0_i32 = arith.constant 0 : i32
    %c0_i32_0 = arith.constant 0 : i32
    %c0_i32_1 = arith.constant 0 : i32
    return %c0_i32, %c0_i32_0 : i32, i32
  }
  func.func @transform_3(%arg0: i32) -> (i32, i32) {
    %c0_i32 = arith.constant 0 : i32
    %c0_i32_0 = arith.constant 0 : i32
    %c0_i32_1 = arith.constant 0 : i32
    return %c0_i32, %c0_i32_0 : i32, i32
  }
  func.func @transform_4(%arg0: i32) -> (i32, i32) {
    %c0_i32 = arith.constant 0 : i32
    %c0_i32_0 = arith.constant 0 : i32
    %c0_i32_1 = arith.constant 0 : i32
    return %c0_i32, %c0_i32_0 : i32, i32
  }
  func.func @transform_5(%arg0: i32) -> (i32, i32) {
    %c0_i32 = arith.constant 0 : i32
    %c0_i32_0 = arith.constant 0 : i32
    %c0_i32_1 = arith.constant 0 : i32
    return %c0_i32, %c0_i32_0 : i32, i32
  }
  func.func @transform_6(%arg0: i32) -> (i32, i32) {
    %c0_i32 = arith.constant 0 : i32
    %c0_i32_0 = arith.constant 0 : i32
    %c0_i32_1 = arith.constant 0 : i32
    return %c0_i32, %c0_i32_0 : i32, i32
  }
  func.func @transform_7(%arg0: i32) -> (i32, i32) {
    %c0_i32 = arith.constant 0 : i32
    %c0_i32_0 = arith.constant 0 : i32
    %c0_i32_1 = arith.constant 0 : i32
    return %c0_i32, %c0_i32_0 : i32, i32
  }
  func.func @transform_8(%arg0: i32) -> (i32, i32) {
    %c0_i32 = arith.constant 0 : i32
    %c0_i32_0 = arith.constant 0 : i32
    %c0_i32_1 = arith.constant 0 : i32
    return %c0_i32, %c0_i32_0 : i32, i32
  }
  func.func @transform_9(%arg0: i32) -> (i32, i32) {
    %c0_i32 = arith.constant 0 : i32
    %c0_i32_0 = arith.constant 0 : i32
    %c0_i32_1 = arith.constant 0 : i32
    return %c0_i32, %c0_i32_0 : i32, i32
  }
  func.func @transform_10(%arg0: i32) -> (i32, i32) {
    %c0_i32 = arith.constant 0 : i32
    %c0_i32_0 = arith.constant 0 : i32
    %c0_i32_1 = arith.constant 0 : i32
    return %c0_i32, %c0_i32_0 : i32, i32
  }
  func.func @transform_11(%arg0: i32) -> (i32, i32) {
    %c0_i32 = arith.constant 0 : i32
    %c0_i32_0 = arith.constant 0 : i32
    %c0_i32_1 = arith.constant 0 : i32
    return %c0_i32, %c0_i32_0 : i32, i32
  }
  func.func @transform_12(%arg0: i32) -> (i32, i32) {
    %c0_i32 = arith.constant 0 : i32
    %c0_i32_0 = arith.constant 0 : i32
    %c0_i32_1 = arith.constant 0 : i32
    return %c0_i32, %c0_i32_0 : i32, i32
  }
  func.func @transform_13(%arg0: i32) -> (i32, i32) {
    %c0_i32 = arith.constant 0 : i32
    %c0_i32_0 = arith.constant 0 : i32
    %c0_i32_1 = arith.constant 0 : i32
    return %c0_i32, %c0_i32_0 : i32, i32
  }
  func.func @transform_14(%arg0: i32) -> (i32, i32, i32) {
    %c0_i32 = arith.constant 0 : i32
    %c0_i32_0 = arith.constant 0 : i32
    %c0_i32_1 = arith.constant 0 : i32
    return %arg0, %c0_i32, %c0_i32_0 : i32, i32, i32
  }
}

module attributes {stable_mosaic.version = 11 : i64} {
  func.func @_block_and_head_kernel(%arg0: i32, %arg1: memref<1x16x256xbf16, #tpu.memory_space<vmem>>, %arg2: memref<1x256xf32, #tpu.memory_space<vmem>>, %arg3: memref<1x256xf32, #tpu.memory_space<vmem>>, %arg4: memref<256x256xbf16, #tpu.memory_space<vmem>>, %arg5: memref<256x256xbf16, #tpu.memory_space<vmem>>, %arg6: memref<256x256xbf16, #tpu.memory_space<vmem>>, %arg7: memref<256x256xbf16, #tpu.memory_space<vmem>>, %arg8: memref<1x256xf32, #tpu.memory_space<vmem>>, %arg9: memref<1x256xf32, #tpu.memory_space<vmem>>, %arg10: memref<256x512xbf16, #tpu.memory_space<vmem>>, %arg11: memref<1x512xf32, #tpu.memory_space<vmem>>, %arg12: memref<512x256xbf16, #tpu.memory_space<vmem>>, %arg13: memref<1x256xf32, #tpu.memory_space<vmem>>, %arg14: memref<256x256xbf16, #tpu.memory_space<vmem>>, %arg15: memref<1x16x256xbf16, #tpu.memory_space<vmem>>) attributes {dimension_semantics = [#tpu.dimension_semantics<parallel>], iteration_bounds = array<i64: 2>, scalar_prefetch = 0 : i64, scratch_operands = 0 : i64, tpu.core_type = #tpu.core_type<tc>, window_params = [{transform_indices = @transform_0, window_bounds = array<i64: 1, 16, 256>}, {pipeline_mode = #tpu.pipeline_mode<synchronous>, transform_indices = @transform_1, window_bounds = array<i64: 1, 256>}, {pipeline_mode = #tpu.pipeline_mode<synchronous>, transform_indices = @transform_2, window_bounds = array<i64: 1, 256>}, {pipeline_mode = #tpu.pipeline_mode<synchronous>, transform_indices = @transform_3, window_bounds = array<i64: 256, 256>}, {pipeline_mode = #tpu.pipeline_mode<synchronous>, transform_indices = @transform_4, window_bounds = array<i64: 256, 256>}, {pipeline_mode = #tpu.pipeline_mode<synchronous>, transform_indices = @transform_5, window_bounds = array<i64: 256, 256>}, {pipeline_mode = #tpu.pipeline_mode<synchronous>, transform_indices = @transform_6, window_bounds = array<i64: 256, 256>}, {pipeline_mode = #tpu.pipeline_mode<synchronous>, transform_indices = @transform_7, window_bounds = array<i64: 1, 256>}, {pipeline_mode = #tpu.pipeline_mode<synchronous>, transform_indices = @transform_8, window_bounds = array<i64: 1, 256>}, {pipeline_mode = #tpu.pipeline_mode<synchronous>, transform_indices = @transform_9, window_bounds = array<i64: 256, 512>}, {pipeline_mode = #tpu.pipeline_mode<synchronous>, transform_indices = @transform_10, window_bounds = array<i64: 1, 512>}, {pipeline_mode = #tpu.pipeline_mode<synchronous>, transform_indices = @transform_11, window_bounds = array<i64: 512, 256>}, {pipeline_mode = #tpu.pipeline_mode<synchronous>, transform_indices = @transform_12, window_bounds = array<i64: 1, 256>}, {pipeline_mode = #tpu.pipeline_mode<synchronous>, transform_indices = @transform_13, window_bounds = array<i64: 256, 256>}, {transform_indices = @transform_14, window_bounds = array<i64: 1, 16, 256>}]} {
    %c0 = arith.constant 0 : index
    %c0_0 = arith.constant 0 : index
    %c0_1 = arith.constant 0 : index
    %0 = vector.load %arg1[%c0, %c0_0, %c0_1] : memref<1x16x256xbf16, #tpu.memory_space<vmem>>, vector<1x16x256xbf16>
    %1 = vector.shape_cast %0 : vector<1x16x256xbf16> to vector<16x256xbf16>
    %2 = arith.extf %1 : vector<16x256xbf16> to vector<16x256xf32>
    %cst = arith.constant 2.560000e+02 : f32
    %3 = math.sqrt %cst : f32
    %cst_2 = arith.constant 1.000000e+00 : f32
    %4 = arith.divf %cst_2, %3 : f32
    %cst_3 = arith.constant dense<0.000000e+00> : vector<16xf32>
    %5 = vector.multi_reduction <add>, %2, %cst_3 [1] : vector<16x256xf32> to vector<16xf32>
    %6 = vector.shape_cast %5 : vector<16xf32> to vector<16x1xf32>
    %cst_4 = arith.constant 2.560000e+02 : f32
    %7 = vector.broadcast %cst_4 : f32 to vector<16x1xf32>
    %8 = arith.divf %6, %7 : vector<16x1xf32>
    %9 = vector.broadcast %8 : vector<16x1xf32> to vector<16x256xf32>
    %10 = arith.subf %2, %9 : vector<16x256xf32>
    %11 = arith.mulf %10, %10 : vector<16x256xf32>
    %cst_5 = arith.constant dense<0.000000e+00> : vector<16xf32>
    %12 = vector.multi_reduction <add>, %11, %cst_5 [1] : vector<16x256xf32> to vector<16xf32>
    %13 = vector.shape_cast %12 : vector<16xf32> to vector<16x1xf32>
    %cst_6 = arith.constant 2.560000e+02 : f32
    %14 = vector.broadcast %cst_6 : f32 to vector<16x1xf32>
    %15 = arith.divf %13, %14 : vector<16x1xf32>
    %16 = vector.broadcast %8 : vector<16x1xf32> to vector<16x256xf32>
    %17 = arith.subf %2, %16 : vector<16x256xf32>
    %cst_7 = arith.constant 9.99999974E-6 : f32
    %18 = vector.broadcast %cst_7 : f32 to vector<16x1xf32>
    %19 = arith.addf %15, %18 : vector<16x1xf32>
    %20 = math.rsqrt %19 : vector<16x1xf32>
    %21 = vector.broadcast %20 : vector<16x1xf32> to vector<16x256xf32>
    %22 = arith.mulf %17, %21 : vector<16x256xf32>
    %c0_8 = arith.constant 0 : index
    %c0_9 = arith.constant 0 : index
    %23 = vector.load %arg2[%c0_8, %c0_9] : memref<1x256xf32, #tpu.memory_space<vmem>>, vector<1x256xf32>
    %24 = vector.broadcast %23 : vector<1x256xf32> to vector<16x256xf32>
    %25 = arith.mulf %22, %24 : vector<16x256xf32>
    %c0_10 = arith.constant 0 : index
    %c0_11 = arith.constant 0 : index
    %26 = vector.load %arg3[%c0_10, %c0_11] : memref<1x256xf32, #tpu.memory_space<vmem>>, vector<1x256xf32>
    %27 = vector.broadcast %26 : vector<1x256xf32> to vector<16x256xf32>
    %28 = arith.addf %25, %27 : vector<16x256xf32>
    %29 = arith.truncf %28 : vector<16x256xf32> to vector<16x256xbf16>
    %c0_12 = arith.constant 0 : index
    %c0_13 = arith.constant 0 : index
    %30 = vector.load %arg4[%c0_12, %c0_13] : memref<256x256xbf16, #tpu.memory_space<vmem>>, vector<256x256xbf16>
    %cst_14 = arith.constant dense<0.000000e+00> : vector<16x256xf32>
    %31 = tpu.matmul %29, %30, %cst_14 {dimension_numbers = #tpu.dot_dimension_numbers<[1], [0], [0], [1], [0, 0, 1, 1], [], []>} : vector<16x256xbf16>, vector<256x256xbf16>, vector<16x256xf32> -> vector<16x256xf32>
    %c0_15 = arith.constant 0 : index
    %c0_16 = arith.constant 0 : index
    %32 = vector.load %arg5[%c0_15, %c0_16] : memref<256x256xbf16, #tpu.memory_space<vmem>>, vector<256x256xbf16>
    %cst_17 = arith.constant dense<0.000000e+00> : vector<16x256xf32>
    %33 = tpu.matmul %29, %32, %cst_17 {dimension_numbers = #tpu.dot_dimension_numbers<[1], [0], [0], [1], [0, 0, 1, 1], [], []>} : vector<16x256xbf16>, vector<256x256xbf16>, vector<16x256xf32> -> vector<16x256xf32>
    %c0_18 = arith.constant 0 : index
    %c0_19 = arith.constant 0 : index
    %34 = vector.load %arg6[%c0_18, %c0_19] : memref<256x256xbf16, #tpu.memory_space<vmem>>, vector<256x256xbf16>
    %cst_20 = arith.constant dense<0.000000e+00> : vector<16x256xf32>
    %35 = tpu.matmul %29, %34, %cst_20 {dimension_numbers = #tpu.dot_dimension_numbers<[1], [0], [0], [1], [0, 0, 1, 1], [], []>} : vector<16x256xbf16>, vector<256x256xbf16>, vector<16x256xf32> -> vector<16x256xf32>
    %36 = arith.truncf %31 : vector<16x256xf32> to vector<16x256xbf16>
    %37 = arith.truncf %33 : vector<16x256xf32> to vector<16x256xbf16>
    %cst_21 = arith.constant dense<0.000000e+00> : vector<16x16xf32>
    %38 = tpu.matmul %36, %37, %cst_21 {dimension_numbers = #tpu.dot_dimension_numbers<[1], [1], [0], [0], [0, 0, 1, 0], [], []>} : vector<16x256xbf16>, vector<16x256xbf16>, vector<16x16xf32> -> vector<16x16xf32>
    %39 = vector.broadcast %4 : f32 to vector<16x16xf32>
    %40 = arith.mulf %38, %39 : vector<16x16xf32>
    %41 = tpu.iota {dimensions = array<i32: 0>} : vector<16x1xi32>
    %42 = tpu.iota {dimensions = array<i32: 1>} : vector<1x16xi32>
    %43 = vector.broadcast %42 : vector<1x16xi32> to vector<16x16xi32>
    %44 = vector.broadcast %41 : vector<16x1xi32> to vector<16x16xi32>
    %45 = arith.cmpi sle, %43, %44 : vector<16x16xi32>
    %cst_22 = arith.constant -1.000000e+30 : f32
    %46 = vector.broadcast %cst_22 : f32 to vector<16x16xf32>
    %47 = arith.select %45, %40, %46 : vector<16x16xi1>, vector<16x16xf32>
    %cst_23 = arith.constant dense<0xFF800000> : vector<16xf32>
    %48 = vector.multi_reduction <maximumf>, %47, %cst_23 [1] : vector<16x16xf32> to vector<16xf32>
    %49 = vector.shape_cast %48 : vector<16xf32> to vector<16x1xf32>
    %50 = vector.broadcast %49 : vector<16x1xf32> to vector<16x16xf32>
    %51 = arith.subf %47, %50 : vector<16x16xf32>
    %52 = math.exp %51 : vector<16x16xf32>
    %cst_24 = arith.constant dense<0.000000e+00> : vector<16xf32>
    %53 = vector.multi_reduction <add>, %52, %cst_24 [1] : vector<16x16xf32> to vector<16xf32>
    %54 = vector.shape_cast %53 : vector<16xf32> to vector<16x1xf32>
    %55 = tpu.reciprocal %54 {approx = true} : vector<16x1xf32> -> vector<16x1xf32>
    %56 = vector.broadcast %55 : vector<16x1xf32> to vector<16x16xf32>
    %57 = arith.mulf %52, %56 : vector<16x16xf32>
    %58 = arith.truncf %57 : vector<16x16xf32> to vector<16x16xbf16>
    %59 = arith.truncf %35 : vector<16x256xf32> to vector<16x256xbf16>
    %cst_25 = arith.constant dense<0.000000e+00> : vector<16x256xf32>
    %60 = tpu.matmul %58, %59, %cst_25 {dimension_numbers = #tpu.dot_dimension_numbers<[1], [0], [0], [1], [0, 0, 1, 1], [], []>} : vector<16x16xbf16>, vector<16x256xbf16>, vector<16x256xf32> -> vector<16x256xf32>
    %61 = arith.truncf %60 : vector<16x256xf32> to vector<16x256xbf16>
    %c0_26 = arith.constant 0 : index
    %c0_27 = arith.constant 0 : index
    %62 = vector.load %arg7[%c0_26, %c0_27] : memref<256x256xbf16, #tpu.memory_space<vmem>>, vector<256x256xbf16>
    %cst_28 = arith.constant dense<0.000000e+00> : vector<16x256xf32>
    %63 = tpu.matmul %61, %62, %cst_28 {dimension_numbers = #tpu.dot_dimension_numbers<[1], [0], [0], [1], [0, 0, 1, 1], [], []>} : vector<16x256xbf16>, vector<256x256xbf16>, vector<16x256xf32> -> vector<16x256xf32>
    %64 = arith.addf %2, %63 : vector<16x256xf32>
    %cst_29 = arith.constant dense<0.000000e+00> : vector<16xf32>
    %65 = vector.multi_reduction <add>, %64, %cst_29 [1] : vector<16x256xf32> to vector<16xf32>
    %66 = vector.shape_cast %65 : vector<16xf32> to vector<16x1xf32>
    %cst_30 = arith.constant 2.560000e+02 : f32
    %67 = vector.broadcast %cst_30 : f32 to vector<16x1xf32>
    %68 = arith.divf %66, %67 : vector<16x1xf32>
    %69 = vector.broadcast %68 : vector<16x1xf32> to vector<16x256xf32>
    %70 = arith.subf %64, %69 : vector<16x256xf32>
    %71 = arith.mulf %70, %70 : vector<16x256xf32>
    %cst_31 = arith.constant dense<0.000000e+00> : vector<16xf32>
    %72 = vector.multi_reduction <add>, %71, %cst_31 [1] : vector<16x256xf32> to vector<16xf32>
    %73 = vector.shape_cast %72 : vector<16xf32> to vector<16x1xf32>
    %cst_32 = arith.constant 2.560000e+02 : f32
    %74 = vector.broadcast %cst_32 : f32 to vector<16x1xf32>
    %75 = arith.divf %73, %74 : vector<16x1xf32>
    %76 = vector.broadcast %68 : vector<16x1xf32> to vector<16x256xf32>
    %77 = arith.subf %64, %76 : vector<16x256xf32>
    %cst_33 = arith.constant 9.99999974E-6 : f32
    %78 = vector.broadcast %cst_33 : f32 to vector<16x1xf32>
    %79 = arith.addf %75, %78 : vector<16x1xf32>
    %80 = math.rsqrt %79 : vector<16x1xf32>
    %81 = vector.broadcast %80 : vector<16x1xf32> to vector<16x256xf32>
    %82 = arith.mulf %77, %81 : vector<16x256xf32>
    %c0_34 = arith.constant 0 : index
    %c0_35 = arith.constant 0 : index
    %83 = vector.load %arg8[%c0_34, %c0_35] : memref<1x256xf32, #tpu.memory_space<vmem>>, vector<1x256xf32>
    %84 = vector.broadcast %83 : vector<1x256xf32> to vector<16x256xf32>
    %85 = arith.mulf %82, %84 : vector<16x256xf32>
    %c0_36 = arith.constant 0 : index
    %c0_37 = arith.constant 0 : index
    %86 = vector.load %arg9[%c0_36, %c0_37] : memref<1x256xf32, #tpu.memory_space<vmem>>, vector<1x256xf32>
    %87 = vector.broadcast %86 : vector<1x256xf32> to vector<16x256xf32>
    %88 = arith.addf %85, %87 : vector<16x256xf32>
    %89 = arith.truncf %88 : vector<16x256xf32> to vector<16x256xbf16>
    %c0_38 = arith.constant 0 : index
    %c0_39 = arith.constant 0 : index
    %90 = vector.load %arg10[%c0_38, %c0_39] : memref<256x512xbf16, #tpu.memory_space<vmem>>, vector<256x512xbf16>
    %cst_40 = arith.constant dense<0.000000e+00> : vector<16x512xf32>
    %91 = tpu.matmul %89, %90, %cst_40 {dimension_numbers = #tpu.dot_dimension_numbers<[1], [0], [0], [1], [0, 0, 1, 1], [], []>} : vector<16x256xbf16>, vector<256x512xbf16>, vector<16x512xf32> -> vector<16x512xf32>
    %c0_41 = arith.constant 0 : index
    %c0_42 = arith.constant 0 : index
    %92 = vector.load %arg11[%c0_41, %c0_42] : memref<1x512xf32, #tpu.memory_space<vmem>>, vector<1x512xf32>
    %93 = vector.broadcast %92 : vector<1x512xf32> to vector<16x512xf32>
    %94 = arith.addf %91, %93 : vector<16x512xf32>
    %95 = arith.mulf %94, %94 : vector<16x512xf32>
    %96 = arith.mulf %94, %95 : vector<16x512xf32>
    %cst_43 = arith.constant 4.471500e-02 : f32
    %97 = vector.broadcast %cst_43 : f32 to vector<16x512xf32>
    %98 = arith.mulf %97, %96 : vector<16x512xf32>
    %99 = arith.addf %94, %98 : vector<16x512xf32>
    %cst_44 = arith.constant 0.797884583 : f32
    %100 = vector.broadcast %cst_44 : f32 to vector<16x512xf32>
    %101 = arith.mulf %100, %99 : vector<16x512xf32>
    %102 = math.tanh %101 : vector<16x512xf32>
    %cst_45 = arith.constant 1.000000e+00 : f32
    %103 = vector.broadcast %cst_45 : f32 to vector<16x512xf32>
    %104 = arith.addf %103, %102 : vector<16x512xf32>
    %cst_46 = arith.constant 5.000000e-01 : f32
    %105 = vector.broadcast %cst_46 : f32 to vector<16x512xf32>
    %106 = arith.mulf %105, %104 : vector<16x512xf32>
    %107 = arith.mulf %94, %106 : vector<16x512xf32>
    %108 = arith.truncf %107 : vector<16x512xf32> to vector<16x512xbf16>
    %c0_47 = arith.constant 0 : index
    %c0_48 = arith.constant 0 : index
    %109 = vector.load %arg12[%c0_47, %c0_48] : memref<512x256xbf16, #tpu.memory_space<vmem>>, vector<512x256xbf16>
    %cst_49 = arith.constant dense<0.000000e+00> : vector<16x256xf32>
    %110 = tpu.matmul %108, %109, %cst_49 {dimension_numbers = #tpu.dot_dimension_numbers<[1], [0], [0], [1], [0, 0, 1, 1], [], []>} : vector<16x512xbf16>, vector<512x256xbf16>, vector<16x256xf32> -> vector<16x256xf32>
    %c0_50 = arith.constant 0 : index
    %c0_51 = arith.constant 0 : index
    %111 = vector.load %arg13[%c0_50, %c0_51] : memref<1x256xf32, #tpu.memory_space<vmem>>, vector<1x256xf32>
    %112 = vector.broadcast %111 : vector<1x256xf32> to vector<16x256xf32>
    %113 = arith.addf %110, %112 : vector<16x256xf32>
    %114 = arith.addf %64, %113 : vector<16x256xf32>
    %115 = arith.truncf %114 : vector<16x256xf32> to vector<16x256xbf16>
    %c0_52 = arith.constant 0 : index
    %c0_53 = arith.constant 0 : index
    %116 = vector.load %arg14[%c0_52, %c0_53] : memref<256x256xbf16, #tpu.memory_space<vmem>>, vector<256x256xbf16>
    %cst_54 = arith.constant dense<0.000000e+00> : vector<16x256xf32>
    %117 = tpu.matmul %115, %116, %cst_54 {dimension_numbers = #tpu.dot_dimension_numbers<[1], [0], [0], [1], [0, 0, 1, 1], [], []>} : vector<16x256xbf16>, vector<256x256xbf16>, vector<16x256xf32> -> vector<16x256xf32>
    %118 = arith.truncf %117 : vector<16x256xf32> to vector<16x256xbf16>
    %c0_55 = arith.constant 0 : index
    %c0_56 = arith.constant 0 : index
    %c0_57 = arith.constant 0 : index
    %119 = vector.load %arg15[%c0_55, %c0_56, %c0_57] : memref<1x16x256xbf16, #tpu.memory_space<vmem>>, vector<1x16x256xbf16>
    %120 = vector.shape_cast %119 : vector<1x16x256xbf16> to vector<16x256xbf16>
    %121 = vector.shape_cast %118 : vector<16x256xbf16> to vector<1x16x256xbf16>
    tpu.vector_store %arg15[%c0_55, %c0_56, %c0_57], %121 {strides = array<i32>} : memref<1x16x256xbf16, #tpu.memory_space<vmem>>, vector<1x16x256xbf16>,
    return
  }
  func.func @transform_0(%arg0: i32) -> (i32, i32, i32) {
    %c0_i32 = arith.constant 0 : i32
    %c0_i32_0 = arith.constant 0 : i32
    %c0_i32_1 = arith.constant 0 : i32
    return %arg0, %c0_i32, %c0_i32_0 : i32, i32, i32
  }
  func.func @transform_1(%arg0: i32) -> (i32, i32) {
    %c0_i32 = arith.constant 0 : i32
    %c0_i32_0 = arith.constant 0 : i32
    %c0_i32_1 = arith.constant 0 : i32
    return %c0_i32, %c0_i32_0 : i32, i32
  }
  func.func @transform_2(%arg0: i32) -> (i32, i32) {
    %c0_i32 = arith.constant 0 : i32
    %c0_i32_0 = arith.constant 0 : i32
    %c0_i32_1 = arith.constant 0 : i32
    return %c0_i32, %c0_i32_0 : i32, i32
  }
  func.func @transform_3(%arg0: i32) -> (i32, i32) {
    %c0_i32 = arith.constant 0 : i32
    %c0_i32_0 = arith.constant 0 : i32
    %c0_i32_1 = arith.constant 0 : i32
    return %c0_i32, %c0_i32_0 : i32, i32
  }
  func.func @transform_4(%arg0: i32) -> (i32, i32) {
    %c0_i32 = arith.constant 0 : i32
    %c0_i32_0 = arith.constant 0 : i32
    %c0_i32_1 = arith.constant 0 : i32
    return %c0_i32, %c0_i32_0 : i32, i32
  }
  func.func @transform_5(%arg0: i32) -> (i32, i32) {
    %c0_i32 = arith.constant 0 : i32
    %c0_i32_0 = arith.constant 0 : i32
    %c0_i32_1 = arith.constant 0 : i32
    return %c0_i32, %c0_i32_0 : i32, i32
  }
  func.func @transform_6(%arg0: i32) -> (i32, i32) {
    %c0_i32 = arith.constant 0 : i32
    %c0_i32_0 = arith.constant 0 : i32
    %c0_i32_1 = arith.constant 0 : i32
    return %c0_i32, %c0_i32_0 : i32, i32
  }
  func.func @transform_7(%arg0: i32) -> (i32, i32) {
    %c0_i32 = arith.constant 0 : i32
    %c0_i32_0 = arith.constant 0 : i32
    %c0_i32_1 = arith.constant 0 : i32
    return %c0_i32, %c0_i32_0 : i32, i32
  }
  func.func @transform_8(%arg0: i32) -> (i32, i32) {
    %c0_i32 = arith.constant 0 : i32
    %c0_i32_0 = arith.constant 0 : i32
    %c0_i32_1 = arith.constant 0 : i32
    return %c0_i32, %c0_i32_0 : i32, i32
  }
  func.func @transform_9(%arg0: i32) -> (i32, i32) {
    %c0_i32 = arith.constant 0 : i32
    %c0_i32_0 = arith.constant 0 : i32
    %c0_i32_1 = arith.constant 0 : i32
    return %c0_i32, %c0_i32_0 : i32, i32
  }
  func.func @transform_10(%arg0: i32) -> (i32, i32) {
    %c0_i32 = arith.constant 0 : i32
    %c0_i32_0 = arith.constant 0 : i32
    %c0_i32_1 = arith.constant 0 : i32
    return %c0_i32, %c0_i32_0 : i32, i32
  }
  func.func @transform_11(%arg0: i32) -> (i32, i32) {
    %c0_i32 = arith.constant 0 : i32
    %c0_i32_0 = arith.constant 0 : i32
    %c0_i32_1 = arith.constant 0 : i32
    return %c0_i32, %c0_i32_0 : i32, i32
  }
  func.func @transform_12(%arg0: i32) -> (i32, i32) {
    %c0_i32 = arith.constant 0 : i32
    %c0_i32_0 = arith.constant 0 : i32
    %c0_i32_1 = arith.constant 0 : i32
    return %c0_i32, %c0_i32_0 : i32, i32
  }
  func.func @transform_13(%arg0: i32) -> (i32, i32) {
    %c0_i32 = arith.constant 0 : i32
    %c0_i32_0 = arith.constant 0 : i32
    %c0_i32_1 = arith.constant 0 : i32
    return %c0_i32, %c0_i32_0 : i32, i32
  }
  func.func @transform_14(%arg0: i32) -> (i32, i32, i32) {
    %c0_i32 = arith.constant 0 : i32
    %c0_i32_0 = arith.constant 0 : i32
    %c0_i32_1 = arith.constant 0 : i32
    return %arg0, %c0_i32, %c0_i32_0 : i32, i32, i32
  }
}

</mosaic_0001>

<bundles_post_ra>
// kernel: policy_and_value_forward.2
= control target key start
LH: loop header
LB: loop body
LE: loop exit
PB: predicated region body
PF: predicated region fallthrough
CT: control target
= control target key end

     0   :  { %s3913_s29 = smov 0   ;;  %s5000_s0 = inlined_call_operand.vmem [shape: bf16[2,16,256], index: 0, kind: input, shape index: {}]   ;;  %s5001_s1 = inlined_call_operand.vmem [shape: f32[1,256], index: 1, kind: input, shape index: {}]   ;;  %s5002_s2 = inlined_call_operand.vmem [shape: f32[1,256], index: 2, kind: input, shape index: {}]   ;;  %s5003_s3 = inlined_call_operand.vmem [shape: bf16[256,256], index: 3, kind: input, shape index: {}]   ;;  %s5004_s4 = inlined_call_operand.vmem [shape: bf16[256,256], index: 4, kind: input, shape index: {}]   ;;  %s5005_s5 = inlined_call_operand.vmem [shape: bf16[256,256], index: 5, kind: input, shape index: {}]   ;;  %s5006_s6 = inlined_call_operand.vmem [shape: bf16[256,256], index: 6, kind: input, shape index: {}]   ;;  %s5007_s7 = inlined_call_operand.vmem [shape: f32[1,256], index: 7, kind: input, shape index: {}]   ;;  %s5008_s8 = inlined_call_operand.vmem [shape: f32[1,256], index: 8, kind: input, shape index: {}]   ;;  %s5009_s9 = inlined_call_operand.vmem [shape: bf16[256,512], index: 9, kind: input, shape index: {}]   ;;  %s5010_s10 = inlined_call_operand.vmem [shape: f32[1,512], index: 10, kind: input, shape index: {}]   ;;  %s5011_s11 = inlined_call_operand.vmem [shape: bf16[512,256], index: 11, kind: input, shape index: {}]   ;;  %s5012_s12 = inlined_call_operand.vmem [shape: f32[1,256], index: 12, kind: input, shape index: {}]   ;;  %s5013_s13 = inlined_call_operand.vmem [shape: bf16[256,256], index: 13, kind: input, shape index: {}]   ;;  %s5014_s14 = inlined_call_operand.vmem [shape: bf16[2,16,256], index: 14, kind: output, shape index: {}]  }
   0x1 LB: > { %s3042_s30 = sadd.s32 4294967295, %s3835_s29   ;;  %p3046_p0 = scmp.ge.s32.totalorder %s3835_s29, 1  ;;  %s3835_s29 = sphi %s3913_s29, %s24_s29  }
   0x2   : > { %p412_p1 = scmp.lt.s32.totalorder %s3835_s29, 3 }
   0x4   : > { %p413_p2 = pnand %p3046_p0, %p412_p1 }
   0x5   : > { %p458_p3 = scmp.lt.s32.totalorder (!%p413_p2), %s3042_s30, 1  ;;  %v3365_v8 = vld [vmem:[%s5003_s3 + $0x4] ss:$8 sps:$4 sm:$0xff] (!%p413_p2)   ;;  %v3367_v9 = vld [vmem:[%s5003_s3] ss:$8 sps:$4 sm:$0xff] (!%p413_p2)   ;;  %vm1303_vm1 = vcmask (!%p413_p2), 130048  }
   0x6   : > { %416 = sbr.rel (%p413_p2) target bundleno = 2606 (0xa2e), region = 76  ;;  %v3368_v10 = vld [vmem:[%s5004_s4 + $0x4] ss:$8 sps:$4 sm:$0xff] (!%p413_p2)   ;;  %v3370_v11 = vld [vmem:[%s5004_s4] ss:$8 sps:$4 sm:$0xff] (!%p413_p2)   ;;  %734 = vmatprep.subr.bf16.mxu0 (!%p413_p2), %v3365_v8 }
   0x7   : > { %v3371_v12 = vld [vmem:[%s5003_s3 + $0x14] ss:$8 sps:$4 sm:$0xff] (!%p413_p2)   ;;  %969 = vmatprep.subr.bf16.mxu1 (!%p413_p2), %v3368_v10  ;;  %735 = vmatpush1.bf16.msra.mxu0 (!%p413_p2), %v3367_v9  ;;  %v3373_v14 = vld [vmem:[%s5003_s3 + $0x10] ss:$8 sps:$4 sm:$0xff] (!%p413_p2)   ;;  %v3377_v16 = vld [vmem:[%s5003_s3 + $0x24] ss:$8 sps:$4 sm:$0xff] (!%p413_p2)  }
   0x8   : > { %v3374_v13 = vld [vmem:[%s5004_s4 + $0x14] ss:$8 sps:$4 sm:$0xff] (!%p413_p2)   ;;  %970 = vmatpush1.bf16.msra.mxu1 (!%p413_p2), %v3370_v11  ;;  %v3376_v15 = vld [vmem:[%s5004_s4 + $0x10] ss:$8 sps:$4 sm:$0xff] (!%p413_p2)   ;;  %736 = vmatprep.subr.bf16.mxu0 (!%p413_p2), %v3371_v12  ;;  %v3380_v17 = vld [vmem:[%s5004_s4 + $0x24] ss:$8 sps:$4 sm:$0xff] (!%p413_p2)  }
   0x9   : > { %971 = vmatprep.subr.bf16.mxu1 (!%p413_p2), %v3374_v13  ;;  %v3379_v18 = vld [vmem:[%s5003_s3 + $0x20] ss:$8 sps:$4 sm:$0xff] (!%p413_p2)   ;;  %v3383_v20 = vld [vmem:[%s5003_s3 + $0x34] ss:$8 sps:$4 sm:$0xff] (!%p413_p2)   ;;  %v3385_v22 = vld [vmem:[%s5003_s3 + $0x30] ss:$8 sps:$4 sm:$0xff] (!%p413_p2)  }
   0xa   : > { %v3382_v19 = vld [vmem:[%s5004_s4 + $0x20] ss:$8 sps:$4 sm:$0xff] (!%p413_p2)   ;;  %v3386_v21 = vld [vmem:[%s5004_s4 + $0x34] ss:$8 sps:$4 sm:$0xff] (!%p413_p2)   ;;  %v3388_v23 = vld [vmem:[%s5004_s4 + $0x30] ss:$8 sps:$4 sm:$0xff] (!%p413_p2)  }
   0xb   : > { %737 = vmatpush1.bf16.msra.mxu0 (!%p413_p2), %v3373_v14  ;;  %v3389_v24 = vld [vmem:[%s5003_s3 + $0x44] ss:$8 sps:$4 sm:$0xff] (!%p413_p2)   ;;  %v3391_v26 = vld [vmem:[%s5003_s3 + $0x40] ss:$8 sps:$4 sm:$0xff] (!%p413_p2)   ;;  %v3395_v28 = vld [vmem:[%s5003_s3 + $0x54] ss:$8 sps:$4 sm:$0xff] (!%p413_p2)  }
   0xc   : > { %972 = vmatpush1.bf16.msra.mxu1 (!%p413_p2), %v3376_v15  ;;  %738 = vmatprep.subr.bf16.mxu0 (!%p413_p2), %v3377_v16  ;;  %v3392_v25 = vld [vmem:[%s5004_s4 + $0x44] ss:$8 sps:$4 sm:$0xff] (!%p413_p2)   ;;  %v3394_v27 = vld [vmem:[%s5004_s4 + $0x40] ss:$8 sps:$4 sm:$0xff] (!%p413_p2)   ;;  %v3398_v29 = vld [vmem:[%s5004_s4 + $0x54] ss:$8 sps:$4 sm:$0xff] (!%p413_p2)  }
   0xd   : > { %s5016_s30 = smov (!%p458_p3, %s3042_s30), 1  ;;  %973 = vmatprep.subr.bf16.mxu1 %v3380_v17  ;;  %v3397_v30 = vld [vmem:[%s5003_s3 + $0x50] ss:$8 sps:$4 sm:$0xff]   ;;  %v3401_v32 = vld [vmem:[%s5003_s3 + $0x64] ss:$8 sps:$4 sm:$0xff]  }
   0xe   : > { %s3344_s15 = sshll.u32 %s5016_s30, 4  ;;  %v3400_v31 = vld [vmem:[%s5004_s4 + $0x50] ss:$8 sps:$4 sm:$0xff]   ;;  %v3404_v33 = vld [vmem:[%s5004_s4 + $0x64] ss:$8 sps:$4 sm:$0xff]  }
   0xf   : > { %s462_s18 = scalar_lea.vmem %s5000_s0, %s3344_s15  ;;  %739 = vmatpush1.bf16.msra.mxu0 %v3379_v18  ;;  %v3403_v34 = vld [vmem:[%s5003_s3 + $0x60] ss:$8 sps:$4 sm:$0xff]   ;;  %v3407_v36 = vld [vmem:[%s5003_s3 + $0x74] ss:$8 sps:$4 sm:$0xff]   ;;  %v3409_v38 = vld [vmem:[%s5003_s3 + $0x70] ss:$8 sps:$4 sm:$0xff]   ;;  %s467_s24 = scalar_lea.vmem %s5014_s14, %s3344_s15 }
  0x10   : > { %v469_v0 = vld [vmem:[%s462_s18] sm:$0xff]  ;;  %v470_v1 = vld [vmem:[%s462_s18 + $0x8] sm:$0xff]  ;;  %974 = vmatpush1.bf16.msra.mxu1 %v3382_v19  ;;  %740 = vmatprep.subr.bf16.mxu0 %v3383_v20  ;;  %v3410_v37 = vld [vmem:[%s5004_s4 + $0x74] ss:$8 sps:$4 sm:$0xff]  }
  0x11   : > { %v3929_v2 = vunpack.c.l.bf16 %v469_v0  ;;  %v3931_v3 = vunpack.c.h.bf16 %v469_v0  ;;  %v3933_v4 = vunpack.c.l.bf16 %v470_v1  ;;  %v3935_v5 = vunpack.c.h.bf16 %v470_v1  ;;  %975 = vmatprep.subr.bf16.mxu1 %v3386_v21  ;;  %v3406_v35 = vld [vmem:[%s5004_s4 + $0x60] ss:$8 sps:$4 sm:$0xff]   ;;  %v3412_v39 = vld [vmem:[%s5004_s4 + $0x70] ss:$8 sps:$4 sm:$0xff]   ;;  %v3413_v40 = vld [vmem:[%s5003_s3 + $0x84] ss:$8 sps:$4 sm:$0xff]  }
  0x12   : > { %v3416_v41 = vld [vmem:[%s5004_s4 + $0x84] ss:$8 sps:$4 sm:$0xff]   ;;  %v3415_v42 = vld [vmem:[%s5003_s3 + $0x80] ss:$8 sps:$4 sm:$0xff]   ;;  %v3419_v44 = vld [vmem:[%s5003_s3 + $0x94] ss:$8 sps:$4 sm:$0xff]  }
  0x13   : > { %v475_v6 = vadd.f32 %v3931_v3, %v3929_v2  ;;  %v478_v7 = vadd.f32 %v3935_v5, %v3933_v4  ;;  %741 = vmatpush1.bf16.msra.mxu0 %v3385_v22  ;;  %v3418_v43 = vld [vmem:[%s5004_s4 + $0x80] ss:$8 sps:$4 sm:$0xff]   ;;  %v3421_v59 = vld [vmem:[%s5003_s3 + $0x90] ss:$8 sps:$4 sm:$0xff]   ;;  %v3422_v60 = vld [vmem:[%s5004_s4 + $0x94] ss:$8 sps:$4 sm:$0xff]  }
  0x14   : > { %976 = vmatpush1.bf16.msra.mxu1 %v3388_v23  ;;  %742 = vmatprep.subr.bf16.mxu0 %v3389_v24  ;;  %v3424_v61 = vld [vmem:[%s5004_s4 + $0x90] ss:$8 sps:$4 sm:$0xff]   ;;  %v3425_v62 = vld [vmem:[%s5003_s3 + $0xa4] ss:$8 sps:$4 sm:$0xff]   ;;  %v3427_v63 = vld [vmem:[%s5003_s3 + $0xa0] ss:$8 sps:$4 sm:$0xff]  }
  0x15   : > { %476 = vadd.xlane.f32.xlu0 %v475_v6  ;;  %977 = vmatprep.subr.bf16.mxu1 %v3392_v25  ;;  %v3428_v0 = vld [vmem:[%s5004_s4 + $0xa4] ss:$8 sps:$4 sm:$0xff]   ;;  %v3430_v1 = vld [vmem:[%s5004_s4 + $0xa0] ss:$8 sps:$4 sm:$0xff]   ;;  %v3431_v6 = vld [vmem:[%s5003_s3 + $0xb4] ss:$8 sps:$4 sm:$0xff]  }
  0x16   : > { %v3434_v8 = vld [vmem:[%s5004_s4 + $0xb4] ss:$8 sps:$4 sm:$0xff]   ;;  %v3436_v9 = vld [vmem:[%s5004_s4 + $0xb0] ss:$8 sps:$4 sm:$0xff]   ;;  %v3437_v10 = vld [vmem:[%s5003_s3 + $0xc4] ss:$8 sps:$4 sm:$0xff]  }
  0x17   : > { %743 = vmatpush1.bf16.msra.mxu0 %v3391_v26  ;;  %v3439_v11 = vld [vmem:[%s5003_s3 + $0xc0] ss:$8 sps:$4 sm:$0xff]   ;;  %v3440_v12 = vld [vmem:[%s5004_s4 + $0xc4] ss:$8 sps:$4 sm:$0xff]   ;;  %v3443_v14 = vld [vmem:[%s5003_s3 + $0xd4] ss:$8 sps:$4 sm:$0xff]  }
  0x18   : > { %978 = vmatpush1.bf16.msra.mxu1 %v3394_v27  ;;  %744 = vmatprep.subr.bf16.mxu0 %v3395_v28  ;;  %v3442_v13 = vld [vmem:[%s5004_s4 + $0xc0] ss:$8 sps:$4 sm:$0xff]   ;;  %v3446_v15 = vld [vmem:[%s5004_s4 + $0xd4] ss:$8 sps:$4 sm:$0xff]   ;;  %v3445_v16 = vld [vmem:[%s5003_s3 + $0xd0] ss:$8 sps:$4 sm:$0xff]  }
  0x19   : > { %479 = vadd.xlane.f32.xlu0 %v478_v7  ;;  %979 = vmatprep.subr.bf16.mxu1 %v3398_v29  ;;  %v3433_v7 = vld [vmem:[%s5003_s3 + $0xb0] ss:$8 sps:$4 sm:$0xff]   ;;  %v3449_v18 = vld [vmem:[%s5003_s3 + $0xe4] ss:$8 sps:$4 sm:$0xff]   ;;  %v3451_v20 = vld [vmem:[%s5003_s3 + $0xe0] ss:$8 sps:$4 sm:$0xff]  }
  0x1a   : > { %v3448_v17 = vld [vmem:[%s5004_s4 + $0xd0] ss:$8 sps:$4 sm:$0xff]   ;;  %v3452_v19 = vld [vmem:[%s5004_s4 + $0xe4] ss:$8 sps:$4 sm:$0xff]   ;;  %v3454_v21 = vld [vmem:[%s5004_s4 + $0xe0] ss:$8 sps:$4 sm:$0xff]  }
  0x1b   : > { %745 = vmatpush1.bf16.msra.mxu0 %v3397_v30  ;;  %v3455_v22 = vld [vmem:[%s5003_s3 + $0xf4] ss:$8 sps:$4 sm:$0xff]   ;;  %v3457_v24 = vld [vmem:[%s5003_s3 + $0xf0] ss:$8 sps:$4 sm:$0xff]   ;;  %v3463_v26 = vld [vmem:[%s5005_s5 + $0x4] ss:$8 sps:$4 sm:$0xff]  }
  0x1c   : > { %980 = vmatpush1.bf16.msra.mxu1 %v3400_v31  ;;  %746 = vmatprep.subr.bf16.mxu0 %v3401_v32  ;;  %v3458_v23 = vld [vmem:[%s5004_s4 + $0xf4] ss:$8 sps:$4 sm:$0xff]   ;;  %v3460_v25 = vld [vmem:[%s5004_s4 + $0xf0] ss:$8 sps:$4 sm:$0xff]   ;;  %v510_v31 = vlaneseq }
  0x1d   : > { %981 = vmatprep.subr.bf16.mxu1 %v3404_v33 }
  0x1f   : > { %747 = vmatpush1.bf16.msra.mxu0 %v3403_v34  ;;  %v4157_v34 = vshrl.u32 %v510_v31, 7 }
  0x20   : > { %982 = vmatpush1.bf16.msra.mxu1 %v3406_v35  ;;  %748 = vmatprep.subr.bf16.mxu0 %v3407_v36 }
  0x21   : > { %983 = vmatprep.subr.bf16.mxu1 %v3410_v37  ;;  %v4160_v35 = vsub.s32 1, %v4157_v34  ;;  %v4163_v36 = vsub.s32 0, %v4157_v34  ;;  %v508_v37 = vld [vmem:[%s5001_s1] sm:$0x3] }
  0x23   : > { %749 = vmatpush1.bf16.msra.mxu0 %v3409_v38 }
  0x24   : > { %984 = vmatpush1.bf16.msra.mxu1 %v3412_v39  ;;  %750 = vmatprep.subr.bf16.mxu0 %v3413_v40  ;;  %v517_v40 = vrot.slane %v508_v37, %v4160_v35 }
  0x25   : > { %985 = vmatprep.subr.bf16.mxu1 %v3416_v41  ;;  %v524_v41 = vld [vmem:[%s5002_s2] sm:$0x3] }
  0x27   : > { %751 = vmatpush1.bf16.msra.mxu0 %v3415_v42 }
  0x28   : > { %986 = vmatpush1.bf16.msra.mxu1 %v3418_v43  ;;  %752 = vmatprep.subr.bf16.mxu0 %v3419_v44  ;;  %v513_v43 = vrot.slane %v508_v37, %v4163_v36 }
  0x29   : > { %987 = vmatprep.subr.bf16.mxu1 %v3422_v60  ;;  %v3461_v60 = vld [vmem:[%s5005_s5] ss:$8 sps:$4 sm:$0xff]  }
  0x2b   : > { %753 = vmatpush1.bf16.msra.mxu0 %v3421_v59 }
  0x2c   : > { %988 = vmatpush1.bf16.msra.mxu1 %v3424_v61  ;;  %754 = vmatprep.subr.bf16.mxu0 %v3425_v62  ;;  %v3469_v62 = vld [vmem:[%s5005_s5 + $0x24] ss:$8 sps:$4 sm:$0xff]  }
  0x2d   : > { %989 = vmatprep.subr.bf16.mxu1 %v3428_v0  ;;  %v3472_v0 = vld [vmem:[%s5005_s5 + $0x34] ss:$8 sps:$4 sm:$0xff]  }
  0x2f   : > { %755 = vmatpush1.bf16.msra.mxu0 %v3427_v63  ;;  %v3467_v63 = vld [vmem:[%s5005_s5 + $0x20] ss:$8 sps:$4 sm:$0xff]  }
  0x30   : > { %990 = vmatpush1.bf16.msra.mxu1 %v3430_v1  ;;  %756 = vmatprep.subr.bf16.mxu0 %v3431_v6  ;;  %v3470_v1 = vld [vmem:[%s5005_s5 + $0x30] ss:$8 sps:$4 sm:$0xff]   ;;  %v3475_v6 = vld [vmem:[%s5005_s5 + $0x44] ss:$8 sps:$4 sm:$0xff]  }
  0x31   : > { %991 = vmatprep.subr.bf16.mxu1 %v3434_v8  ;;  %v3478_v8 = vld [vmem:[%s5005_s5 + $0x54] ss:$8 sps:$4 sm:$0xff]  }
  0x33   : > { %757 = vmatpush1.bf16.msra.mxu0 %v3433_v7  ;;  %v3473_v7 = vld [vmem:[%s5005_s5 + $0x40] ss:$8 sps:$4 sm:$0xff]  }
  0x34   : > { %992 = vmatpush1.bf16.msra.mxu1 %v3436_v9  ;;  %758 = vmatprep.subr.bf16.mxu0 %v3437_v10  ;;  %v3476_v9 = vld [vmem:[%s5005_s5 + $0x50] ss:$8 sps:$4 sm:$0xff]   ;;  %v3481_v10 = vld [vmem:[%s5005_s5 + $0x64] ss:$8 sps:$4 sm:$0xff]  }
  0x35   : > { %993 = vmatprep.subr.bf16.mxu1 %v3440_v12  ;;  %v3484_v12 = vld [vmem:[%s5005_s5 + $0x74] ss:$8 sps:$4 sm:$0xff]  }
  0x37   : > { %759 = vmatpush1.bf16.msra.mxu0 %v3439_v11  ;;  %v3479_v11 = vld [vmem:[%s5005_s5 + $0x60] ss:$8 sps:$4 sm:$0xff]  }
  0x38   : > { %994 = vmatpush1.bf16.msra.mxu1 %v3442_v13  ;;  %760 = vmatprep.subr.bf16.mxu0 %v3443_v14  ;;  %v3482_v13 = vld [vmem:[%s5005_s5 + $0x70] ss:$8 sps:$4 sm:$0xff]   ;;  %v3487_v14 = vld [vmem:[%s5005_s5 + $0x84] ss:$8 sps:$4 sm:$0xff]  }
  0x39   : > { %995 = vmatprep.subr.bf16.mxu1 %v3446_v15  ;;  %v3485_v15 = vld [vmem:[%s5005_s5 + $0x80] ss:$8 sps:$4 sm:$0xff]  }
  0x3b   : > { %761 = vmatpush1.bf16.msra.mxu0 %v3445_v16  ;;  %v3490_v16 = vld [vmem:[%s5005_s5 + $0x94] ss:$8 sps:$4 sm:$0xff]  }
  0x3c   : > { %996 = vmatpush1.bf16.msra.mxu1 %v3448_v17  ;;  %762 = vmatprep.subr.bf16.mxu0 %v3449_v18  ;;  %v3488_v17 = vld [vmem:[%s5005_s5 + $0x90] ss:$8 sps:$4 sm:$0xff]   ;;  %v3493_v18 = vld [vmem:[%s5005_s5 + $0xa4] ss:$8 sps:$4 sm:$0xff]  }
  0x3d   : > { %997 = vmatprep.subr.bf16.mxu1 %v3452_v19  ;;  %v3491_v19 = vld [vmem:[%s5005_s5 + $0xa0] ss:$8 sps:$4 sm:$0xff]  }
  0x3f   : > { %763 = vmatpush1.bf16.msra.mxu0 %v3451_v20  ;;  %v3496_v20 = vld [vmem:[%s5005_s5 + $0xb4] ss:$8 sps:$4 sm:$0xff]  }
  0x40   : > { %998 = vmatpush1.bf16.msra.mxu1 %v3454_v21  ;;  %764 = vmatprep.subr.bf16.mxu0 %v3455_v22  ;;  %v3494_v21 = vld [vmem:[%s5005_s5 + $0xb0] ss:$8 sps:$4 sm:$0xff]   ;;  %v3499_v22 = vld [vmem:[%s5005_s5 + $0xc4] ss:$8 sps:$4 sm:$0xff]  }
  0x41   : > { %999 = vmatprep.subr.bf16.mxu1 %v3458_v23  ;;  %v3497_v23 = vld [vmem:[%s5005_s5 + $0xc0] ss:$8 sps:$4 sm:$0xff]  }
  0x43   : > { %765 = vmatpush1.bf16.msra.mxu0 %v3457_v24  ;;  %v3502_v24 = vld [vmem:[%s5005_s5 + $0xd4] ss:$8 sps:$4 sm:$0xff]  }
  0x44   : > { %1000 = vmatpush1.bf16.msra.mxu1 %v3460_v25  ;;  %1204 = vmatprep.subr.bf16.mxu0 %v3463_v26  ;;  %v3500_v25 = vld [vmem:[%s5005_s5 + $0xd0] ss:$8 sps:$4 sm:$0xff]   ;;  %v3505_v26 = vld [vmem:[%s5005_s5 + $0xe4] ss:$8 sps:$4 sm:$0xff]  }
  0xa2   : > { %v477_v45 = vpop.xlane.xlu0 %476 }
  0xa3   : > { %v482_v46 = vmul.f32 0.00390625, %v477_v45  ;;  %v533_v45 = vrot.slane %v524_v41, %v4160_v35 }
  0xa5   : > { %v4053_v47 = vsub.f32 %v3929_v2, %v482_v46  ;;  %v4056_v48 = vsub.f32 %v3931_v3, %v482_v46  ;;  %v529_v46 = vrot.slane %v524_v41, %v4163_v36 }
  0xa6   : > { %v480_v49 = vpop.xlane.xlu0 %479 }
  0xa7   : > { %v483_v50 = vmul.f32 0.00390625, %v480_v49  ;;  %v488_v51 = vmul.f32 %v4053_v47, %v4053_v47  ;;  %v489_v52 = vmul.f32 %v4056_v48, %v4056_v48 }
  0xa9   : > { %v4063_v53 = vsub.f32 %v3933_v4, %v483_v50  ;;  %v4066_v54 = vsub.f32 %v3935_v5, %v483_v50  ;;  %v492_v55 = vadd.f32 %v489_v52, %v488_v51 }
  0xab   : > { %493 = vadd.xlane.f32.xlu1 %v492_v55  ;;  %v490_v56 = vmul.f32 %v4063_v53, %v4063_v53  ;;  %v491_v57 = vmul.f32 %v4066_v54, %v4066_v54 }
  0xad   : > { %v495_v58 = vadd.f32 %v491_v57, %v490_v56 }
  0xaf   : > { %496 = vadd.xlane.f32.xlu1 %v495_v58 }
 0x138   : > { %v494_v27 = vpop.xlane.xlu1 %493 }
 0x139   : > { %v498_v28 = vmul.f32 0.00390625, %v494_v27  ;;  %v3503_v27 = vld [vmem:[%s5005_s5 + $0xe0] ss:$8 sps:$4 sm:$0xff]  }
 0x13b   : > { %v500_v29 = vadd.f32 1e-05, %v498_v28  ;;  %v3508_v28 = vld [vmem:[%s5005_s5 + $0xf4] ss:$8 sps:$4 sm:$0xff]  }
 0x13c   : > { %v497_v30 = vpop.xlane.xlu1 %496 }
 0x13d   : > { %3797 = vrsqrt.f32 %v500_v29  ;;  %v499_v32 = vmul.f32 0.00390625, %v497_v30  ;;  %v3506_v29 = vld [vmem:[%s5005_s5 + $0xf0] ss:$8 sps:$4 sm:$0xff]  }
 0x13f   : > { %v501_v33 = vadd.f32 1e-05, %v499_v32 }
 0x141   : > { %3799 = vrsqrt.f32 %v501_v33 }
 0x147   : > { %v3798_v38 = vpop.eup %3797 }
 0x148   : > { %v505_v39 = vmul.f32 %v3798_v38, %v4056_v48  ;;  %v504_v42 = vmul.f32 %v3798_v38, %v4053_v47 }
 0x14a   : > { %v521_v50 = vmul.f32 %v517_v40, %v505_v39  ;;  %v520_v51 = vmul.f32 %v513_v43, %v504_v42 }
 0x14b   : > { %v3800_v44 = vpop.eup %3799 }
 0x14c   : > { %v507_v49 = vmul.f32 %v3800_v44, %v4066_v54  ;;  %v506_v48 = vmul.f32 %v3800_v44, %v4063_v53  ;;  %v537_v56 = vadd.f32 %v533_v45, %v521_v50  ;;  %v536_v58 = vadd.f32 %v529_v46, %v520_v51  ;;  %v3466_v54 = vld [vmem:[%s5005_s5 + $0x14] ss:$8 sps:$4 sm:$0xff]   ;;  %v3464_v53 = vld [vmem:[%s5005_s5 + $0x10] ss:$8 sps:$4 sm:$0xff]  }
 0x14e   : > { %v523_v52 = vmul.f32 %v517_v40, %v507_v49  ;;  %v522_v55 = vmul.f32 %v513_v43, %v506_v48 }
 0x150   : > { %v539_v57 = vadd.f32 %v533_v45, %v523_v52  ;;  %v538_v59 = vadd.f32 %v529_v46, %v522_v55  ;;  %v1298_v55 = vand.u32 127, %v510_v31 }
 0x152   : > { %v541_v47 = vpack.c.bf16 %v539_v57, %v537_v56  ;;  %v4182_v61 = vpack.c.bf16 %v538_v59, %v536_v58  ;;  %v1296_v56 = vadd.s32 8, %v4157_v34  ;;  %vm1299_vm0 = vcmp.le.s32.totalorder %v1298_v55, %v4157_v34 }
 0x154   : > { %766 = vmatprep.mubr.bf16.mxu0 %v541_v47  ;;  %1001 = vmatprep.mubr.bf16.mxu1 %v541_v47  ;;  %vm1300_vm2 = vcmp.le.s32.totalorder %v1298_v55, %v1296_v56  ;;  %v3548_v55 = vld [vmem:[%s5006_s6 + $0xd0] ss:$8 sps:$4 sm:$0xff]   ;;  %v3553_v56 = vld [vmem:[%s5006_s6 + $0xe4] ss:$8 sps:$4 sm:$0xff]  }
 0x155   : > { %767 = vmatmul.mubr.bf16.vlgmr.msra.gmra.mrb[0].mxu0 %v4182_v61  ;;  %1002 = vmatmul.mubr.bf16.vlgmr.msra.gmra.mrb[0].mxu1 %v4182_v61 }
 0x156   : > { %1205 = vmatpush1.bf16.msra.mxu0 %v3461_v60  ;;  %1236 = vmatprep.mubr.bf16.mxu0 %v541_v47 }
 0x157   : > { %1206 = vmatprep.subr.bf16.mxu0 %v3466_v54 }
 0x15a   : > { %1207 = vmatpush1.bf16.msra.mxu0 %v3464_v53 }
 0x15b   : > { %1208 = vmatprep.subr.bf16.mxu0 %v3469_v62 }
 0x15e   : > { %1209 = vmatpush1.bf16.msra.mxu0 %v3467_v63 }
 0x15f   : > { %1210 = vmatprep.subr.bf16.mxu0 %v3472_v0 }
 0x162   : > { %1211 = vmatpush1.bf16.msra.mxu0 %v3470_v1 }
 0x163   : > { %1212 = vmatprep.subr.bf16.mxu0 %v3475_v6 }
 0x166   : > { %1213 = vmatpush1.bf16.msra.mxu0 %v3473_v7 }
 0x167   : > { %1214 = vmatprep.subr.bf16.mxu0 %v3478_v8 }
 0x16a   : > { %1215 = vmatpush1.bf16.msra.mxu0 %v3476_v9 }
 0x16b   : > { %1216 = vmatprep.subr.bf16.mxu0 %v3481_v10 }
 0x16e   : > { %1217 = vmatpush1.bf16.msra.mxu0 %v3479_v11 }
 0x16f   : > { %1218 = vmatprep.subr.bf16.mxu0 %v3484_v12 }
 0x172   : > { %1219 = vmatpush1.bf16.msra.mxu0 %v3482_v13  ;;  %v3837_v13 = vmov 0  }
 0x173   : > { %1220 = vmatprep.subr.bf16.mxu0 %v3487_v14  ;;  %v3511_v14 = vld [vmem:[%s5006_s6 + $0x4] ss:$8 sps:$4 sm:$0xff]  }
 0x176   : > { %1221 = vmatpush1.bf16.msra.mxu0 %v3485_v15 }
 0x177   : > { %1222 = vmatprep.subr.bf16.mxu0 %v3490_v16 }
 0x17a   : > { %1223 = vmatpush1.bf16.msra.mxu0 %v3488_v17 }
 0x17b   : > { %1224 = vmatprep.subr.bf16.mxu0 %v3493_v18 }
 0x17e   : > { %1225 = vmatpush1.bf16.msra.mxu0 %v3491_v19 }
 0x17f   : > { %1226 = vmatprep.subr.bf16.mxu0 %v3496_v20 }
 0x182   : > { %1227 = vmatpush1.bf16.msra.mxu0 %v3494_v21  ;;  %v3509_v21 = vld [vmem:[%s5006_s6] ss:$8 sps:$4 sm:$0xff]  }
 0x183   : > { %1228 = vmatprep.subr.bf16.mxu0 %v3499_v22 }
 0x186   : > { %1229 = vmatpush1.bf16.msra.mxu0 %v3497_v23  ;;  %v3514_v23 = vld [vmem:[%s5006_s6 + $0x14] ss:$8 sps:$4 sm:$0xff]  }
 0x187   : > { %1230 = vmatprep.subr.bf16.mxu0 %v3502_v24  ;;  %v3512_v24 = vld [vmem:[%s5006_s6 + $0x10] ss:$8 sps:$4 sm:$0xff]  }
 0x18a   : > { %1231 = vmatpush1.bf16.msra.mxu0 %v3500_v25  ;;  %v3517_v25 = vld [vmem:[%s5006_s6 + $0x24] ss:$8 sps:$4 sm:$0xff]  }
 0x18b   : > { %1232 = vmatprep.subr.bf16.mxu0 %v3505_v26  ;;  %v3515_v26 = vld [vmem:[%s5006_s6 + $0x20] ss:$8 sps:$4 sm:$0xff]  }
 0x18e   : > { %1233 = vmatpush1.bf16.msra.mxu0 %v3503_v27  ;;  %v3520_v27 = vld [vmem:[%s5006_s6 + $0x34] ss:$8 sps:$4 sm:$0xff]  }
 0x18f   : > { %1234 = vmatprep.subr.bf16.mxu0 %v3508_v28  ;;  %v3518_v28 = vld [vmem:[%s5006_s6 + $0x30] ss:$8 sps:$4 sm:$0xff]  }
 0x192   : > { %1235 = vmatpush1.bf16.msra.mxu0 %v3506_v29  ;;  %v3523_v29 = vld [vmem:[%s5006_s6 + $0x44] ss:$8 sps:$4 sm:$0xff]  }
 0x195   : > { %1237 = vmatmul.mubr.bf16.vlgmr.msra.gmra.mrb[4].mxu0 %v4182_v61 }
 0x228   : > { %v768_v30 = vpop.f32.mrb[0].mxu0  ;;  %v1003_v32 = vpop.f32.mrb[0].mxu1 }
 0x229   : > { %v770_v33 = vpop.f32.mrb[1].mxu0  ;;  %v1005_v37 = vpop.f32.mrb[1].mxu1 }
 0x22a   : > { %v772_v38 = vpop.f32.mrb[2].mxu0  ;;  %v1007_v39 = vpop.f32.mrb[2].mxu1 }
 0x22b   : > { %v1247_v40 = vpack.c.bf16 %v772_v38, %v768_v30  ;;  %v1249_v41 = vpack.c.bf16 %v1007_v39, %v1003_v32  ;;  %v774_v42 = vpop.f32.mrb[3].mxu0  ;;  %v1009_v43 = vpop.f32.mrb[3].mxu1  ;;  %v3521_v30 = vld [vmem:[%s5006_s6 + $0x40] ss:$8 sps:$4 sm:$0xff]   ;;  %v3526_v32 = vld [vmem:[%s5006_s6 + $0x54] ss:$8 sps:$4 sm:$0xff]  }
 0x22c   : > { %v1248_v44 = vpack.c.bf16 %v774_v42, %v770_v33  ;;  %v1250_v45 = vpack.c.bf16 %v1009_v43, %v1005_v37  ;;  %v3524_v33 = vld [vmem:[%s5006_s6 + $0x50] ss:$8 sps:$4 sm:$0xff]   ;;  %v3529_v37 = vld [vmem:[%s5006_s6 + $0x64] ss:$8 sps:$4 sm:$0xff]   ;;  %v3527_v38 = vld [vmem:[%s5006_s6 + $0x60] ss:$8 sps:$4 sm:$0xff]  }
 0x22d   : > { %v3532_v39 = vld [vmem:[%s5006_s6 + $0x74] ss:$8 sps:$4 sm:$0xff]   ;;  %v3533_v42 = vld [vmem:[%s5006_s6 + $0x80] ss:$8 sps:$4 sm:$0xff]  }
 0x22e   : > { %1251 = vmatprep.subr.bf16.mxu1 %v1250_v45  ;;  %1283 = vmatprep.mubr.bf16.mxu1 %v1248_v44  ;;  %v3538_v43 = vld [vmem:[%s5006_s6 + $0x94] ss:$8 sps:$4 sm:$0xff]   ;;  %v3536_v44 = vld [vmem:[%s5006_s6 + $0x90] ss:$8 sps:$4 sm:$0xff]   ;;  %v3541_v45 = vld [vmem:[%s5006_s6 + $0xa4] ss:$8 sps:$4 sm:$0xff]  }
 0x22f   : > { %1252 = vmatpush1.bf16.xpose.msra.mxu1 %v1249_v41  ;;  %v3535_v41 = vld [vmem:[%s5006_s6 + $0x84] ss:$8 sps:$4 sm:$0xff]  }
 0x236   : > { %1284 = vmatmul.mubr.bf16.vlgmr.msra.gmra.mrb[4].mxu1 %v1247_v40  ;;  %v3530_v40 = vld [vmem:[%s5006_s6 + $0x70] ss:$8 sps:$4 sm:$0xff]  }
 0x237   : > { %1364 = vmatprep.mubr.bf16.mxu1 %v3837_v13  ;;  %v3568_v13 = vld [vmem:[%s5009_s9 + $0x2c] ss:$16 sps:$4 sm:$0xff]  }
 0x268   : > { %v1238_v46 = vpop.f32.mrb[4].mxu0 }
 0x269   : > { %v1240_v49 = vpop.f32.mrb[5].mxu0 }
 0x26a   : > { %v1242_v50 = vpop.f32.mrb[6].mxu0 }
 0x26b   : > { %v1327_v48 = vpack.c.bf16 %v1242_v50, %v1238_v46  ;;  %v1244_v51 = vpop.f32.mrb[7].mxu0  ;;  %v3539_v46 = vld [vmem:[%s5006_s6 + $0xa0] ss:$8 sps:$4 sm:$0xff]   ;;  %v3542_v50 = vld [vmem:[%s5006_s6 + $0xb0] ss:$8 sps:$4 sm:$0xff]  }
 0x26c   : > { %v1328_v52 = vpack.c.bf16 %v1244_v51, %v1240_v49  ;;  %v3544_v49 = vld [vmem:[%s5006_s6 + $0xb4] ss:$8 sps:$4 sm:$0xff]   ;;  %v3545_v51 = vld [vmem:[%s5006_s6 + $0xc0] ss:$8 sps:$4 sm:$0xff]  }
 0x26e   : > { %1332 = vmatprep.subr.bf16.mxu1 %v1328_v52  ;;  %v3550_v52 = vld [vmem:[%s5006_s6 + $0xd4] ss:$8 sps:$4 sm:$0xff]  }
 0x26f   : > { %1333 = vmatpush1.bf16.msra.mxu1 %v1327_v48  ;;  %v3547_v48 = vld [vmem:[%s5006_s6 + $0xc4] ss:$8 sps:$4 sm:$0xff]  }
 0x270   : > { %1569 = vmatprep.subr.bf16.mxu1 %v3511_v14  ;;  %v3563_v14 = vld [vmem:[%s5009_s9 + $0x20] ss:$16 sps:$4 sm:$0xff]  }
 0x309   : > { %v1285_v57 = vpop.f32.mrb[4].mxu1 }
 0x30a   : > { %v1292_v58 = vmul.f32 0.0625, %v1285_v57  ;;  %v1287_v59 = vpop.f32.mrb[5].mxu1  ;;  %v3551_v57 = vld [vmem:[%s5006_s6 + $0xe0] ss:$8 sps:$4 sm:$0xff]  }
 0x30b   : > { %v1288_v47 = vpop.f32.mrb[6].mxu1  ;;  %v3554_v59 = vld [vmem:[%s5006_s6 + $0xf0] ss:$8 sps:$4 sm:$0xff]  }
 0x30c   : > { %v1293_v60 = vmul.f32 0.0625, %v1288_v47  ;;  %v1290_v61 = vpop.f32.mrb[7].mxu1  ;;  %v1301_v54 = vsel %vm1299_vm0, %v1292_v58, -1e+30  ;;  %v3556_v58 = vld [vmem:[%s5006_s6 + $0xf4] ss:$8 sps:$4 sm:$0xff]  }
 0x30d   : > { %v1304_v53 = vsel %vm1303_vm1, %v1301_v54, -inf }
 0x30e   : > { %1305 = vmax.xlane.f32.xlu0 %v1304_v53  ;;  %v1302_v62 = vsel %vm1300_vm2, %v1293_v60, -1e+30 }
 0x30f   : > { %v1307_v63 = vsel %vm1303_vm1, %v1302_v62, -inf }
 0x310   : > { %1308 = vmax.xlane.f32.xlu1 %v1307_v63 }
 0x39b   : > { %v1306_v31 = vpop.xlane.xlu0 %1305 }
 0x39c   : > { %v1310_v0 = vsub.f32 %v1301_v54, %v1306_v31 }
 0x39d   : > { %v1309_v1 = vpop.xlane.xlu1 %1308 }
 0x39e   : > { %v1312_v6 = vmul.f32 1.442695, %v1310_v0  ;;  %v1311_v7 = vsub.f32 %v1302_v62, %v1309_v1 }
 0x3a0   : > { %3801 = vpow2.f32 %v1312_v6  ;;  %v1314_v8 = vmul.f32 1.442695, %v1311_v7 }
 0x3a2   : > { %3803 = vpow2.f32 %v1314_v8 }
 0x3aa   : > { %v3802_v9 = vpop.eup %3801 }
 0x3ab   : > { %v1316_v10 = vsel %vm1303_vm1, %v3802_v9, 0.0 }
 0x3ac   : > { %v3804_v11 = vpop.eup %3803  ;;  %1317 = vadd.xlane.f32.xlu0 %v1316_v10 }
 0x3ad   : > { %v1319_v12 = vsel %vm1303_vm1, %v3804_v11, 0.0 }
 0x3ae   : > { %1320 = vadd.xlane.f32.xlu1 %v1319_v12  ;;  %v3565_v12 = vld [vmem:[%s5009_s9 + $0x24] ss:$16 sps:$4 sm:$0xff]  }
 0x439   : > { %v1318_v15 = vpop.xlane.xlu0 %1317 }
 0x43a   : > { %3805 = vrcp.f32 %v1318_v15  ;;  %v3566_v15 = vld [vmem:[%s5009_s9 + $0x28] ss:$16 sps:$4 sm:$0xff]  }
 0x43b   : > { %v1321_v16 = vpop.xlane.xlu1 %1320 }
 0x43c   : > { %3807 = vrcp.f32 %v1321_v16  ;;  %v3571_v16 = vld [vmem:[%s5009_s9 + $0x44] ss:$16 sps:$4 sm:$0xff]  }
 0x444   : > { %v3806_v17 = vpop.eup %3805 }
 0x445   : > { %v1324_v19 = vmul.f32 %v3806_v17, %v3802_v9  ;;  %v3574_v17 = vld [vmem:[%s5009_s9 + $0x4c] ss:$16 sps:$4 sm:$0xff]  }
 0x446   : > { %v3808_v18 = vpop.eup %3807 }
 0x447   : > { %v1325_v20 = vmul.f32 %v3808_v18, %v3804_v11  ;;  %v3562_v11 = vld [vmem:[%s5009_s9 + $0xc] ss:$16 sps:$4 sm:$0xff]   ;;  %v3569_v18 = vld [vmem:[%s5009_s9 + $0x40] ss:$16 sps:$4 sm:$0xff]  }
 0x449   : > { %v1326_v22 = vpack.c.bf16 %v1325_v20, %v1324_v19  ;;  %v3572_v19 = vld [vmem:[%s5009_s9 + $0x48] ss:$16 sps:$4 sm:$0xff]   ;;  %v3577_v20 = vld [vmem:[%s5009_s9 + $0x64] ss:$16 sps:$4 sm:$0xff]  }
 0x44b   : > { %3147 = vmatmul.mubr.msk.bf16.vlgmr.msra.gmra.mrb[8].mxu1 %vm1303_vm1, %v1326_v22  ;;  %v3575_v22 = vld [vmem:[%s5009_s9 + $0x60] ss:$16 sps:$4 sm:$0xff]  }
 0x44c   : > { %1570 = vmatpush1.bf16.msra.mxu1 %v3509_v21  ;;  %v3580_v21 = vld [vmem:[%s5009_s9 + $0x6c] ss:$16 sps:$4 sm:$0xff]  }
 0x44d   : > { %1571 = vmatprep.subr.bf16.mxu1 %v3514_v23  ;;  %v3578_v23 = vld [vmem:[%s5009_s9 + $0x68] ss:$16 sps:$4 sm:$0xff]  }
 0x450   : > { %1572 = vmatpush1.bf16.msra.mxu1 %v3512_v24  ;;  %v3583_v24 = vld [vmem:[%s5009_s9 + $0x84] ss:$16 sps:$4 sm:$0xff]  }
 0x451   : > { %1573 = vmatprep.subr.bf16.mxu1 %v3517_v25  ;;  %v3586_v25 = vld [vmem:[%s5009_s9 + $0x8c] ss:$16 sps:$4 sm:$0xff]  }
 0x454   : > { %1574 = vmatpush1.bf16.msra.mxu1 %v3515_v26  ;;  %v3581_v26 = vld [vmem:[%s5009_s9 + $0x80] ss:$16 sps:$4 sm:$0xff]  }
 0x455   : > { %1575 = vmatprep.subr.bf16.mxu1 %v3520_v27  ;;  %v3584_v27 = vld [vmem:[%s5009_s9 + $0x88] ss:$16 sps:$4 sm:$0xff]  }
 0x458   : > { %1576 = vmatpush1.bf16.msra.mxu1 %v3518_v28  ;;  %v3589_v28 = vld [vmem:[%s5009_s9 + $0xa4] ss:$16 sps:$4 sm:$0xff]  }
 0x459   : > { %1577 = vmatprep.subr.bf16.mxu1 %v3523_v29  ;;  %v3592_v29 = vld [vmem:[%s5009_s9 + $0xac] ss:$16 sps:$4 sm:$0xff]  }
 0x45c   : > { %1578 = vmatpush1.bf16.msra.mxu1 %v3521_v30  ;;  %v3587_v30 = vld [vmem:[%s5009_s9 + $0xa0] ss:$16 sps:$4 sm:$0xff]  }
 0x45d   : > { %1579 = vmatprep.subr.bf16.mxu1 %v3526_v32  ;;  %v3590_v32 = vld [vmem:[%s5009_s9 + $0xa8] ss:$16 sps:$4 sm:$0xff]  }
 0x460   : > { %1580 = vmatpush1.bf16.msra.mxu1 %v3524_v33  ;;  %v3595_v33 = vld [vmem:[%s5009_s9 + $0xc4] ss:$16 sps:$4 sm:$0xff]  }
 0x461   : > { %1581 = vmatprep.subr.bf16.mxu1 %v3529_v37  ;;  %v3598_v37 = vld [vmem:[%s5009_s9 + $0xcc] ss:$16 sps:$4 sm:$0xff]  }
 0x464   : > { %1582 = vmatpush1.bf16.msra.mxu1 %v3527_v38  ;;  %v3593_v38 = vld [vmem:[%s5009_s9 + $0xc0] ss:$16 sps:$4 sm:$0xff]  }
 0x465   : > { %1583 = vmatprep.subr.bf16.mxu1 %v3532_v39  ;;  %v3596_v39 = vld [vmem:[%s5009_s9 + $0xc8] ss:$16 sps:$4 sm:$0xff]  }
 0x468   : > { %1584 = vmatpush1.bf16.msra.mxu1 %v3530_v40  ;;  %v3601_v40 = vld [vmem:[%s5009_s9 + $0xe4] ss:$16 sps:$4 sm:$0xff]  }
 0x469   : > { %1585 = vmatprep.subr.bf16.mxu1 %v3535_v41  ;;  %v3604_v41 = vld [vmem:[%s5009_s9 + $0xec] ss:$16 sps:$4 sm:$0xff]  }
 0x46c   : > { %1586 = vmatpush1.bf16.msra.mxu1 %v3533_v42  ;;  %v3599_v42 = vld [vmem:[%s5009_s9 + $0xe0] ss:$16 sps:$4 sm:$0xff]  }
 0x46d   : > { %1587 = vmatprep.subr.bf16.mxu1 %v3538_v43  ;;  %v3602_v43 = vld [vmem:[%s5009_s9 + $0xe8] ss:$16 sps:$4 sm:$0xff]  }
 0x470   : > { %1588 = vmatpush1.bf16.msra.mxu1 %v3536_v44  ;;  %v3607_v44 = vld [vmem:[%s5009_s9 + $0x104] ss:$16 sps:$4 sm:$0xff]  }
 0x471   : > { %1589 = vmatprep.subr.bf16.mxu1 %v3541_v45  ;;  %v3610_v45 = vld [vmem:[%s5009_s9 + $0x10c] ss:$16 sps:$4 sm:$0xff]  }
 0x474   : > { %1590 = vmatpush1.bf16.msra.mxu1 %v3539_v46  ;;  %v3605_v46 = vld [vmem:[%s5009_s9 + $0x100] ss:$16 sps:$4 sm:$0xff]  }
 0x475   : > { %1591 = vmatprep.subr.bf16.mxu1 %v3544_v49  ;;  %v3608_v49 = vld [vmem:[%s5009_s9 + $0x108] ss:$16 sps:$4 sm:$0xff]  }
 0x478   : > { %1592 = vmatpush1.bf16.msra.mxu1 %v3542_v50  ;;  %v3613_v50 = vld [vmem:[%s5009_s9 + $0x124] ss:$16 sps:$4 sm:$0xff]  }
 0x479   : > { %1593 = vmatprep.subr.bf16.mxu1 %v3547_v48  ;;  %v3616_v48 = vld [vmem:[%s5009_s9 + $0x12c] ss:$16 sps:$4 sm:$0xff]  }
 0x47c   : > { %1594 = vmatpush1.bf16.msra.mxu1 %v3545_v51  ;;  %v3611_v51 = vld [vmem:[%s5009_s9 + $0x120] ss:$16 sps:$4 sm:$0xff]  }
 0x47d   : > { %1595 = vmatprep.subr.bf16.mxu1 %v3550_v52  ;;  %v3614_v52 = vld [vmem:[%s5009_s9 + $0x128] ss:$16 sps:$4 sm:$0xff]  }
 0x480   : > { %1596 = vmatpush1.bf16.msra.mxu1 %v3548_v55 }
 0x481   : > { %1597 = vmatprep.subr.bf16.mxu1 %v3553_v56 }
 0x484   : > { %1598 = vmatpush1.bf16.msra.mxu1 %v3551_v57 }
 0x485   : > { %1599 = vmatprep.subr.bf16.mxu1 %v3556_v58 }
 0x488   : > { %1600 = vmatpush1.bf16.msra.mxu1 %v3554_v59 }
 0x489   : > { %2131 = vmatprep.subr.bf16.mxu1 %v3562_v11  ;;  %v3623_v11 = vld [vmem:[%s5009_s9 + $0x160] ss:$16 sps:$4 sm:$0xff]  }
 0x51e   : > { %v1366_v47 = vpop.f32.mrb[8].mxu1 }
 0x51f   : > { %v1368_v60 = vpop.f32.mrb[9].mxu1 }
 0x520   : > { %v1370_v61 = vpop.f32.mrb[10].mxu1 }
 0x521   : > { %v1375_v54 = vpack.c.bf16 %v1370_v61, %v1366_v47  ;;  %v1372_v53 = vpop.f32.mrb[11].mxu1 }
 0x522   : > { %v1376_v62 = vpack.c.bf16 %v1372_v53, %v1368_v60 }
 0x524   : > { %1601 = vmatprep.mubr.bf16.mxu1 %v1376_v62 }
 0x525   : > { %1602 = vmatmul.mubr.bf16.vlgmr.msra.gmra.mrb[12].mxu1 %v1375_v54 }
 0x5f8   : > { %v1603_v63 = vpop.f32.mrb[12].mxu1 }
 0x5f9   : > { %v4382_v31 = vadd.f32 %v1603_v63, %v3929_v2  ;;  %v1605_v0 = vpop.f32.mrb[13].mxu1 }
 0x5fa   : > { %v4385_v1 = vadd.f32 %v1605_v0, %v3931_v3  ;;  %v1607_v6 = vpop.f32.mrb[14].mxu1  ;;  %v3557_v3 = vld [vmem:[%s5009_s9] ss:$16 sps:$4 sm:$0xff]  }
 0x5fb   : > { %v4388_v7 = vadd.f32 %v1607_v6, %v3933_v4  ;;  %v1609_v8 = vpop.f32.mrb[15].mxu1  ;;  %v3559_v4 = vld [vmem:[%s5009_s9 + $0x4] ss:$16 sps:$4 sm:$0xff]  }
 0x5fc   : > { %v4391_v9 = vadd.f32 %v1609_v8, %v3935_v5  ;;  %v1616_v10 = vadd.f32 %v4385_v1, %v4382_v31  ;;  %v3560_v5 = vld [vmem:[%s5009_s9 + $0x8] ss:$16 sps:$4 sm:$0xff]   ;;  %2088 = vmatprep.subr.bf16.mxu0 %v3559_v4  ;;  %v3619_v8 = vld [vmem:[%s5009_s9 + $0x144] ss:$16 sps:$4 sm:$0xff]  }
 0x5fd   : > { %2089 = vmatpush1.bf16.msra.mxu0 %v3557_v3  ;;  %2132 = vmatpush1.bf16.msra.mxu1 %v3560_v5  ;;  %v3620_v3 = vld [vmem:[%s5009_s9 + $0x148] ss:$16 sps:$4 sm:$0xff]   ;;  %v3625_v4 = vld [vmem:[%s5009_s9 + $0x164] ss:$16 sps:$4 sm:$0xff]   ;;  %v3628_v5 = vld [vmem:[%s5009_s9 + $0x16c] ss:$16 sps:$4 sm:$0xff]  }
 0x5fe   : > { %1617 = vadd.xlane.f32.xlu0 %v1616_v10  ;;  %v1619_v2 = vadd.f32 %v4391_v9, %v4388_v7  ;;  %2090 = vmatprep.subr.bf16.mxu0 %v3565_v12  ;;  %v3622_v10 = vld [vmem:[%s5009_s9 + $0x14c] ss:$16 sps:$4 sm:$0xff]   ;;  %v3626_v12 = vld [vmem:[%s5009_s9 + $0x168] ss:$16 sps:$4 sm:$0xff]  }
 0x5ff   : > { %2133 = vmatprep.subr.bf16.mxu1 %v3568_v13  ;;  %v3631_v13 = vld [vmem:[%s5009_s9 + $0x184] ss:$16 sps:$4 sm:$0xff]  }
 0x600   : > { %1620 = vadd.xlane.f32.xlu1 %v1619_v2  ;;  %v3617_v2 = vld [vmem:[%s5009_s9 + $0x140] ss:$16 sps:$4 sm:$0xff]  }
 0x601   : > { %2091 = vmatpush1.bf16.msra.mxu0 %v3563_v14  ;;  %2134 = vmatpush1.bf16.msra.mxu1 %v3566_v15  ;;  %v3634_v14 = vld [vmem:[%s5009_s9 + $0x18c] ss:$16 sps:$4 sm:$0xff]   ;;  %v3629_v15 = vld [vmem:[%s5009_s9 + $0x180] ss:$16 sps:$4 sm:$0xff]  }
 0x602   : > { %2092 = vmatprep.subr.bf16.mxu0 %v3571_v16  ;;  %2135 = vmatprep.subr.bf16.mxu1 %v3574_v17  ;;  %v3632_v16 = vld [vmem:[%s5009_s9 + $0x188] ss:$16 sps:$4 sm:$0xff]   ;;  %v3637_v17 = vld [vmem:[%s5009_s9 + $0x1a4] ss:$16 sps:$4 sm:$0xff]  }
 0x605   : > { %2093 = vmatpush1.bf16.msra.mxu0 %v3569_v18  ;;  %2136 = vmatpush1.bf16.msra.mxu1 %v3572_v19  ;;  %v3640_v18 = vld [vmem:[%s5009_s9 + $0x1ac] ss:$16 sps:$4 sm:$0xff]   ;;  %v3635_v19 = vld [vmem:[%s5009_s9 + $0x1a0] ss:$16 sps:$4 sm:$0xff]  }
 0x606   : > { %2094 = vmatprep.subr.bf16.mxu0 %v3577_v20  ;;  %2137 = vmatprep.subr.bf16.mxu1 %v3580_v21  ;;  %v3638_v20 = vld [vmem:[%s5009_s9 + $0x1a8] ss:$16 sps:$4 sm:$0xff]   ;;  %v3641_v21 = vld [vmem:[%s5009_s9 + $0x1c0] ss:$16 sps:$4 sm:$0xff]  }
 0x609   : > { %2095 = vmatpush1.bf16.msra.mxu0 %v3575_v22  ;;  %2138 = vmatpush1.bf16.msra.mxu1 %v3578_v23  ;;  %v3643_v22 = vld [vmem:[%s5009_s9 + $0x1c4] ss:$16 sps:$4 sm:$0xff]   ;;  %v3644_v23 = vld [vmem:[%s5009_s9 + $0x1c8] ss:$16 sps:$4 sm:$0xff]  }
 0x60a   : > { %2096 = vmatprep.subr.bf16.mxu0 %v3583_v24  ;;  %2139 = vmatprep.subr.bf16.mxu1 %v3586_v25  ;;  %v3646_v24 = vld [vmem:[%s5009_s9 + $0x1cc] ss:$16 sps:$4 sm:$0xff]   ;;  %v3649_v25 = vld [vmem:[%s5009_s9 + $0x1e4] ss:$16 sps:$4 sm:$0xff]  }
 0x60d   : > { %2097 = vmatpush1.bf16.msra.mxu0 %v3581_v26  ;;  %2140 = vmatpush1.bf16.msra.mxu1 %v3584_v27  ;;  %v3652_v26 = vld [vmem:[%s5009_s9 + $0x1ec] ss:$16 sps:$4 sm:$0xff]   ;;  %v3647_v27 = vld [vmem:[%s5009_s9 + $0x1e0] ss:$16 sps:$4 sm:$0xff]  }
 0x60e   : > { %2098 = vmatprep.subr.bf16.mxu0 %v3589_v28  ;;  %2141 = vmatprep.subr.bf16.mxu1 %v3592_v29  ;;  %v3650_v28 = vld [vmem:[%s5009_s9 + $0x1e8] ss:$16 sps:$4 sm:$0xff]   ;;  %v3655_v29 = vld [vmem:[%s5011_s11 + $0x4] ss:$8 sps:$4 sm:$0xff]  }
 0x611   : > { %2099 = vmatpush1.bf16.msra.mxu0 %v3587_v30  ;;  %2142 = vmatpush1.bf16.msra.mxu1 %v3590_v32 }
 0x612   : > { %2100 = vmatprep.subr.bf16.mxu0 %v3595_v33  ;;  %2143 = vmatprep.subr.bf16.mxu1 %v3598_v37 }
 0x615   : > { %2101 = vmatpush1.bf16.msra.mxu0 %v3593_v38  ;;  %2144 = vmatpush1.bf16.msra.mxu1 %v3596_v39 }
 0x616   : > { %2102 = vmatprep.subr.bf16.mxu0 %v3601_v40  ;;  %2145 = vmatprep.subr.bf16.mxu1 %v3604_v41  ;;  %v1648_v40 = vld [vmem:[%s5007_s7] sm:$0x3] }
 0x617   : > { %v1653_v41 = vrot.slane %v1648_v40, %v4163_v36 }
 0x619   : > { %2103 = vmatpush1.bf16.msra.mxu0 %v3599_v42  ;;  %2146 = vmatpush1.bf16.msra.mxu1 %v3602_v43  ;;  %v1657_v42 = vrot.slane %v1648_v40, %v4160_v35  ;;  %v1664_v43 = vld [vmem:[%s5008_s8] sm:$0x3]  ;;  %v3752_v40 = vld [vmem:[%s5013_s13 + $0x10] ss:$8 sps:$4 sm:$0xff]  }
 0x61a   : > { %2104 = vmatprep.subr.bf16.mxu0 %v3607_v44  ;;  %2147 = vmatprep.subr.bf16.mxu1 %v3610_v45 }
 0x61d   : > { %2105 = vmatpush1.bf16.msra.mxu0 %v3605_v46  ;;  %2148 = vmatpush1.bf16.msra.mxu1 %v3608_v49 }
 0x61e   : > { %2106 = vmatprep.subr.bf16.mxu0 %v3613_v50  ;;  %2149 = vmatprep.subr.bf16.mxu1 %v3616_v48  ;;  %v1669_v50 = vrot.slane %v1664_v43, %v4163_v36  ;;  %v1673_v48 = vrot.slane %v1664_v43, %v4160_v35  ;;  %v3760_v43 = vld [vmem:[%s5013_s13 + $0x34] ss:$8 sps:$4 sm:$0xff]  }
 0x621   : > { %2107 = vmatpush1.bf16.msra.mxu0 %v3611_v51  ;;  %2150 = vmatpush1.bf16.msra.mxu1 %v3614_v52 }
 0x622   : > { %2108 = vmatprep.subr.bf16.mxu0 %v3619_v8  ;;  %2151 = vmatprep.subr.bf16.mxu1 %v3622_v10  ;;  %v3659_v8 = vld [vmem:[%s5011_s11 + $0x20] ss:$8 sps:$4 sm:$0xff]   ;;  %v3664_v10 = vld [vmem:[%s5011_s11 + $0x34] ss:$8 sps:$4 sm:$0xff]  }
 0x625   : > { %2109 = vmatpush1.bf16.msra.mxu0 %v3617_v2  ;;  %2152 = vmatpush1.bf16.msra.mxu1 %v3620_v3  ;;  %v3662_v2 = vld [vmem:[%s5011_s11 + $0x30] ss:$8 sps:$4 sm:$0xff]   ;;  %v3667_v3 = vld [vmem:[%s5011_s11 + $0x44] ss:$8 sps:$4 sm:$0xff]  }
 0x626   : > { %2110 = vmatprep.subr.bf16.mxu0 %v3625_v4  ;;  %2153 = vmatprep.subr.bf16.mxu1 %v3628_v5  ;;  %v3665_v4 = vld [vmem:[%s5011_s11 + $0x40] ss:$8 sps:$4 sm:$0xff]   ;;  %v3670_v5 = vld [vmem:[%s5011_s11 + $0x54] ss:$8 sps:$4 sm:$0xff]  }
 0x629   : > { %2111 = vmatpush1.bf16.msra.mxu0 %v3623_v11  ;;  %2154 = vmatpush1.bf16.msra.mxu1 %v3626_v12  ;;  %v3668_v11 = vld [vmem:[%s5011_s11 + $0x50] ss:$8 sps:$4 sm:$0xff]   ;;  %v3673_v12 = vld [vmem:[%s5011_s11 + $0x64] ss:$8 sps:$4 sm:$0xff]  }
 0x62a   : > { %2112 = vmatprep.subr.bf16.mxu0 %v3631_v13  ;;  %2155 = vmatprep.subr.bf16.mxu1 %v3634_v14  ;;  %v3671_v13 = vld [vmem:[%s5011_s11 + $0x60] ss:$8 sps:$4 sm:$0xff]   ;;  %v3676_v14 = vld [vmem:[%s5011_s11 + $0x74] ss:$8 sps:$4 sm:$0xff]  }
 0x62d   : > { %2113 = vmatpush1.bf16.msra.mxu0 %v3629_v15  ;;  %2156 = vmatpush1.bf16.msra.mxu1 %v3632_v16  ;;  %v3674_v15 = vld [vmem:[%s5011_s11 + $0x70] ss:$8 sps:$4 sm:$0xff]   ;;  %v3679_v16 = vld [vmem:[%s5011_s11 + $0x84] ss:$8 sps:$4 sm:$0xff]  }
 0x62e   : > { %2114 = vmatprep.subr.bf16.mxu0 %v3637_v17  ;;  %2157 = vmatprep.subr.bf16.mxu1 %v3640_v18  ;;  %v3677_v17 = vld [vmem:[%s5011_s11 + $0x80] ss:$8 sps:$4 sm:$0xff]   ;;  %v3682_v18 = vld [vmem:[%s5011_s11 + $0x94] ss:$8 sps:$4 sm:$0xff]  }
 0x631   : > { %2115 = vmatpush1.bf16.msra.mxu0 %v3635_v19  ;;  %2158 = vmatpush1.bf16.msra.mxu1 %v3638_v20  ;;  %v3680_v19 = vld [vmem:[%s5011_s11 + $0x90] ss:$8 sps:$4 sm:$0xff]   ;;  %v3685_v20 = vld [vmem:[%s5011_s11 + $0xa4] ss:$8 sps:$4 sm:$0xff]  }
 0x632   : > { %2116 = vmatprep.subr.bf16.mxu0 %v3643_v22  ;;  %2159 = vmatprep.subr.bf16.mxu1 %v3646_v24  ;;  %v3688_v22 = vld [vmem:[%s5011_s11 + $0xb4] ss:$8 sps:$4 sm:$0xff]   ;;  %v3691_v24 = vld [vmem:[%s5011_s11 + $0xc4] ss:$8 sps:$4 sm:$0xff]  }
 0x635   : > { %2117 = vmatpush1.bf16.msra.mxu0 %v3641_v21  ;;  %2160 = vmatpush1.bf16.msra.mxu1 %v3644_v23  ;;  %v3683_v21 = vld [vmem:[%s5011_s11 + $0xa0] ss:$8 sps:$4 sm:$0xff]   ;;  %v3686_v23 = vld [vmem:[%s5011_s11 + $0xb0] ss:$8 sps:$4 sm:$0xff]  }
 0x636   : > { %2118 = vmatprep.subr.bf16.mxu0 %v3649_v25  ;;  %2161 = vmatprep.subr.bf16.mxu1 %v3652_v26  ;;  %v3689_v25 = vld [vmem:[%s5011_s11 + $0xc0] ss:$8 sps:$4 sm:$0xff]   ;;  %v3694_v26 = vld [vmem:[%s5011_s11 + $0xd4] ss:$8 sps:$4 sm:$0xff]  }
 0x639   : > { %2119 = vmatpush1.bf16.msra.mxu0 %v3647_v27  ;;  %2162 = vmatpush1.bf16.msra.mxu1 %v3650_v28  ;;  %v3692_v27 = vld [vmem:[%s5011_s11 + $0xd0] ss:$8 sps:$4 sm:$0xff]   ;;  %v3697_v28 = vld [vmem:[%s5011_s11 + $0xe4] ss:$8 sps:$4 sm:$0xff]  }
 0x63a   : > { %2646 = vmatprep.subr.bf16.mxu0 %v3655_v29  ;;  %v3695_v29 = vld [vmem:[%s5011_s11 + $0xe0] ss:$8 sps:$4 sm:$0xff]  }
 0x68b   : > { %v1618_v55 = vpop.xlane.xlu0 %1617 }
 0x68c   : > { %v1622_v56 = vmul.f32 0.00390625, %v1618_v55 }
 0x68d   : > { %v1621_v57 = vpop.xlane.xlu1 %1620 }
 0x68e   : > { %v4518_v58 = vsub.f32 %v4382_v31, %v1622_v56  ;;  %v4521_v59 = vsub.f32 %v4385_v1, %v1622_v56  ;;  %v1623_v47 = vmul.f32 0.00390625, %v1621_v57 }
 0x690   : > { %v4524_v60 = vsub.f32 %v4388_v7, %v1623_v47  ;;  %v4527_v61 = vsub.f32 %v4391_v9, %v1623_v47  ;;  %v1628_v54 = vmul.f32 %v4518_v58, %v4518_v58  ;;  %v1629_v53 = vmul.f32 %v4521_v59, %v4521_v59 }
 0x692   : > { %v1632_v62 = vadd.f32 %v1629_v53, %v1628_v54  ;;  %v1630_v63 = vmul.f32 %v4524_v60, %v4524_v60  ;;  %v1631_v0 = vmul.f32 %v4527_v61, %v4527_v61 }
 0x694   : > { %1633 = vadd.xlane.f32.xlu0 %v1632_v62  ;;  %v1635_v6 = vadd.f32 %v1631_v0, %v1630_v63 }
 0x696   : > { %1636 = vadd.xlane.f32.xlu1 %v1635_v6  ;;  %v3661_v6 = vld [vmem:[%s5011_s11 + $0x24] ss:$8 sps:$4 sm:$0xff]  }
 0x721   : > { %v1634_v30 = vpop.xlane.xlu0 %1633 }
 0x722   : > { %v1638_v32 = vmul.f32 0.00390625, %v1634_v30  ;;  %v3698_v30 = vld [vmem:[%s5011_s11 + $0xf0] ss:$8 sps:$4 sm:$0xff]  }
 0x723   : > { %v1637_v33 = vpop.xlane.xlu1 %1636 }
 0x724   : > { %v1640_v37 = vadd.f32 1e-05, %v1638_v32  ;;  %v1639_v38 = vmul.f32 0.00390625, %v1637_v33  ;;  %v3700_v32 = vld [vmem:[%s5011_s11 + $0xf4] ss:$8 sps:$4 sm:$0xff]  }
 0x725   : > { %v3703_v33 = vld [vmem:[%s5011_s11 + $0x104] ss:$8 sps:$4 sm:$0xff]  }
 0x726   : > { %3809 = vrsqrt.f32 %v1640_v37  ;;  %v1641_v39 = vadd.f32 1e-05, %v1639_v38  ;;  %v3749_v37 = vld [vmem:[%s5013_s13] ss:$8 sps:$4 sm:$0xff]   ;;  %v3751_v38 = vld [vmem:[%s5013_s13 + $0x4] ss:$8 sps:$4 sm:$0xff]  }
 0x727   : > { %2930 = vmatprep.subr.bf16.mxu1 %v3751_v38 }
 0x728   : > { %3811 = vrsqrt.f32 %v1641_v39  ;;  %v3754_v39 = vld [vmem:[%s5013_s13 + $0x14] ss:$8 sps:$4 sm:$0xff]  }
 0x730   : > { %v3810_v44 = vpop.eup %3809 }
 0x731   : > { %v1644_v45 = vmul.f32 %v3810_v44, %v4518_v58  ;;  %v1645_v46 = vmul.f32 %v3810_v44, %v4521_v59  ;;  %v3653_v59 = vld [vmem:[%s5011_s11] ss:$8 sps:$4 sm:$0xff]   ;;  %v3758_v44 = vld [vmem:[%s5013_s13 + $0x30] ss:$8 sps:$4 sm:$0xff]  }
 0x732   : > { %v3812_v49 = vpop.eup %3811 }
 0x733   : > { %v1646_v51 = vmul.f32 %v3812_v49, %v4524_v60  ;;  %v1647_v52 = vmul.f32 %v3812_v49, %v4527_v61  ;;  %v1661_v55 = vmul.f32 %v1657_v42, %v1645_v46  ;;  %v1660_v56 = vmul.f32 %v1653_v41, %v1644_v45  ;;  %v3658_v60 = vld [vmem:[%s5011_s11 + $0x14] ss:$8 sps:$4 sm:$0xff]   ;;  %v3656_v61 = vld [vmem:[%s5011_s11 + $0x10] ss:$8 sps:$4 sm:$0xff]   ;;  %v3763_v45 = vld [vmem:[%s5013_s13 + $0x44] ss:$8 sps:$4 sm:$0xff]  }
 0x734   : > { %v3761_v46 = vld [vmem:[%s5013_s13 + $0x40] ss:$8 sps:$4 sm:$0xff]   ;;  %v3766_v49 = vld [vmem:[%s5013_s13 + $0x54] ss:$8 sps:$4 sm:$0xff]  }
 0x735   : > { %v1663_v57 = vmul.f32 %v1657_v42, %v1647_v52  ;;  %v1662_v47 = vmul.f32 %v1653_v41, %v1646_v51  ;;  %v1677_v54 = vadd.f32 %v1673_v48, %v1661_v55  ;;  %v1676_v62 = vadd.f32 %v1669_v50, %v1660_v56  ;;  %v3757_v41 = vld [vmem:[%s5013_s13 + $0x24] ss:$8 sps:$4 sm:$0xff]   ;;  %v3755_v42 = vld [vmem:[%s5013_s13 + $0x20] ss:$8 sps:$4 sm:$0xff]   ;;  %v3764_v52 = vld [vmem:[%s5013_s13 + $0x50] ss:$8 sps:$4 sm:$0xff]  }
 0x736   : > { %v1762_v51 = vsub.s32 3, %v4157_v34  ;;  %v3769_v55 = vld [vmem:[%s5013_s13 + $0x64] ss:$8 sps:$4 sm:$0xff]  }
 0x737   : > { %v1679_v53 = vadd.f32 %v1673_v48, %v1663_v57  ;;  %v1678_v63 = vadd.f32 %v1669_v50, %v1662_v47  ;;  %v1758_v50 = vsub.s32 2, %v4157_v34  ;;  %v1746_v48 = vld [vmem:[%s5010_s10] sm:$0xf] }
 0x738   : > { %v1751_v56 = vrot.slane %v1746_v48, %v4163_v36  ;;  %v1755_v47 = vrot.slane %v1746_v48, %v4160_v35  ;;  %v3767_v34 = vld [vmem:[%s5013_s13 + $0x60] ss:$8 sps:$4 sm:$0xff]  }
 0x739   : > { %v1681_v58 = vpack.c.bf16 %v1679_v53, %v1677_v54  ;;  %v1680_v0 = vpack.c.bf16 %v1678_v63, %v1676_v62  ;;  %v1759_v57 = vrot.slane %v1746_v48, %v1758_v50  ;;  %v1763_v54 = vrot.slane %v1746_v48, %v1762_v51  ;;  %v3772_v53 = vld [vmem:[%s5013_s13 + $0x74] ss:$8 sps:$4 sm:$0xff]   ;;  %v3776_v48 = vld [vmem:[%s5013_s13 + $0x90] ss:$8 sps:$4 sm:$0xff]  }
 0x73b   : > { %2120 = vmatprep.mubr.bf16.mxu0 %v1681_v58  ;;  %2163 = vmatprep.mubr.bf16.mxu1 %v1681_v58 }
 0x73c   : > { %2121 = vmatmul.mubr.bf16.vlgmr.msra.gmra.mrb[8].mxu0 %v1680_v0  ;;  %2164 = vmatmul.mubr.bf16.vlgmr.msra.gmra.mrb[16].mxu1 %v1680_v0 }
 0x73d   : > { %2647 = vmatpush1.bf16.msra.mxu0 %v3653_v59  ;;  %2931 = vmatpush1.bf16.msra.mxu1 %v3749_v37 }
 0x73e   : > { %2648 = vmatprep.subr.bf16.mxu0 %v3658_v60  ;;  %2932 = vmatprep.subr.bf16.mxu1 %v3754_v39 }
 0x741   : > { %2649 = vmatpush1.bf16.msra.mxu0 %v3656_v61  ;;  %2933 = vmatpush1.bf16.msra.mxu1 %v3752_v40 }
 0x742   : > { %2650 = vmatprep.subr.bf16.mxu0 %v3661_v6  ;;  %2934 = vmatprep.subr.bf16.mxu1 %v3757_v41 }
 0x745   : > { %2651 = vmatpush1.bf16.msra.mxu0 %v3659_v8  ;;  %2935 = vmatpush1.bf16.msra.mxu1 %v3755_v42 }
 0x746   : > { %2652 = vmatprep.subr.bf16.mxu0 %v3664_v10  ;;  %2936 = vmatprep.subr.bf16.mxu1 %v3760_v43 }
 0x749   : > { %2653 = vmatpush1.bf16.msra.mxu0 %v3662_v2  ;;  %2937 = vmatpush1.bf16.msra.mxu1 %v3758_v44  ;;  %v3770_v2 = vld [vmem:[%s5013_s13 + $0x70] ss:$8 sps:$4 sm:$0xff]  }
 0x74a   : > { %2654 = vmatprep.subr.bf16.mxu0 %v3667_v3  ;;  %2938 = vmatprep.subr.bf16.mxu1 %v3763_v45 }
 0x74d   : > { %2655 = vmatpush1.bf16.msra.mxu0 %v3665_v4  ;;  %2939 = vmatpush1.bf16.msra.mxu1 %v3761_v46 }
 0x74e   : > { %2656 = vmatprep.subr.bf16.mxu0 %v3670_v5  ;;  %2940 = vmatprep.subr.bf16.mxu1 %v3766_v49 }
 0x751   : > { %2657 = vmatpush1.bf16.msra.mxu0 %v3668_v11  ;;  %2941 = vmatpush1.bf16.msra.mxu1 %v3764_v52 }
 0x752   : > { %2658 = vmatprep.subr.bf16.mxu0 %v3673_v12  ;;  %2942 = vmatprep.subr.bf16.mxu1 %v3769_v55 }
 0x755   : > { %2659 = vmatpush1.bf16.msra.mxu0 %v3671_v13  ;;  %2943 = vmatpush1.bf16.msra.mxu1 %v3767_v34 }
 0x756   : > { %2660 = vmatprep.subr.bf16.mxu0 %v3676_v14  ;;  %2944 = vmatprep.subr.bf16.mxu1 %v3772_v53  ;;  %v3775_v14 = vld [vmem:[%s5013_s13 + $0x84] ss:$8 sps:$4 sm:$0xff]  }
 0x759   : > { %2661 = vmatpush1.bf16.msra.mxu0 %v3674_v15  ;;  %2945 = vmatpush1.bf16.msra.mxu1 %v3770_v2  ;;  %v3782_v2 = vld [vmem:[%s5013_s13 + $0xb0] ss:$8 sps:$4 sm:$0xff]  }
 0x75a   : > { %2662 = vmatprep.subr.bf16.mxu0 %v3679_v16  ;;  %2946 = vmatprep.subr.bf16.mxu1 %v3775_v14 }
 0x75d   : > { %2663 = vmatpush1.bf16.msra.mxu0 %v3677_v17 }
 0x75e   : > { %2664 = vmatprep.subr.bf16.mxu0 %v3682_v18 }
 0x761   : > { %2665 = vmatpush1.bf16.msra.mxu0 %v3680_v19 }
 0x762   : > { %2666 = vmatprep.subr.bf16.mxu0 %v3685_v20 }
 0x765   : > { %2667 = vmatpush1.bf16.msra.mxu0 %v3683_v21 }
 0x766   : > { %2668 = vmatprep.subr.bf16.mxu0 %v3688_v22 }
 0x769   : > { %2669 = vmatpush1.bf16.msra.mxu0 %v3686_v23 }
 0x76a   : > { %2670 = vmatprep.subr.bf16.mxu0 %v3691_v24 }
 0x76d   : > { %2671 = vmatpush1.bf16.msra.mxu0 %v3689_v25 }
 0x76e   : > { %2672 = vmatprep.subr.bf16.mxu0 %v3694_v26 }
 0x771   : > { %2673 = vmatpush1.bf16.msra.mxu0 %v3692_v27  ;;  %v3773_v27 = vld [vmem:[%s5013_s13 + $0x80] ss:$8 sps:$4 sm:$0xff]  }
 0x772   : > { %2674 = vmatprep.subr.bf16.mxu0 %v3697_v28  ;;  %2947 = vmatpush1.bf16.msra.mxu1 %v3773_v27 }
 0x775   : > { %2675 = vmatpush1.bf16.msra.mxu0 %v3695_v29 }
 0x776   : > { %2676 = vmatprep.subr.bf16.mxu0 %v3700_v32 }
 0x779   : > { %2677 = vmatpush1.bf16.msra.mxu0 %v3698_v30 }
 0x77a   : > { %2689 = vmatprep.subr.bf16.mxu0 %v3703_v33  ;;  %v3778_v33 = vld [vmem:[%s5013_s13 + $0x94] ss:$8 sps:$4 sm:$0xff]  }
 0x77b   : > { %2948 = vmatprep.subr.bf16.mxu1 %v3778_v33 }
 0x77c   : > { %2949 = vmatpush1.bf16.msra.mxu1 %v3776_v48 }
 0x80f   : > { %v2122_v62 = vpop.f32.mrb[8].mxu0  ;;  %v2165_v63 = vpop.f32.mrb[16].mxu1 }
 0x810   : > { %v4774_v58 = vadd.f32 %v2122_v62, %v1751_v56  ;;  %v4776_v0 = vadd.f32 %v2165_v63, %v1759_v57  ;;  %v2124_v59 = vpop.f32.mrb[9].mxu0  ;;  %v2167_v60 = vpop.f32.mrb[17].mxu1 }
 0x811   : > { %v4778_v61 = vadd.f32 %v2124_v59, %v1755_v47  ;;  %v4780_v6 = vadd.f32 %v2167_v60, %v1763_v54  ;;  %v2126_v8 = vpop.f32.mrb[10].mxu0  ;;  %v2169_v10 = vpop.f32.mrb[18].mxu1  ;;  %v3779_v59 = vld [vmem:[%s5013_s13 + $0xa0] ss:$8 sps:$4 sm:$0xff]  }
 0x812   : > { %v2174_v3 = vmul.f32 %v4774_v58, %v4774_v58  ;;  %v2176_v4 = vmul.f32 %v4776_v0, %v4776_v0  ;;  %v4789_v5 = vadd.f32 %v2126_v8, %v1751_v56  ;;  %v4791_v11 = vadd.f32 %v2169_v10, %v1759_v57  ;;  %v2128_v12 = vpop.f32.mrb[11].mxu0  ;;  %v2171_v13 = vpop.f32.mrb[19].mxu1  ;;  %v3781_v57 = vld [vmem:[%s5013_s13 + $0xa4] ss:$8 sps:$4 sm:$0xff]   ;;  %v3784_v8 = vld [vmem:[%s5013_s13 + $0xb4] ss:$8 sps:$4 sm:$0xff]  }
 0x813   : > { %v2175_v15 = vmul.f32 %v4778_v61, %v4778_v61  ;;  %v2177_v16 = vmul.f32 %v4780_v6, %v4780_v6  ;;  %v4800_v17 = vadd.f32 %v2128_v12, %v1755_v47  ;;  %v4802_v18 = vadd.f32 %v2171_v13, %v1763_v54  ;;  %2950 = vmatprep.subr.bf16.mxu1 %v3781_v57  ;;  %v3790_v13 = vld [vmem:[%s5013_s13 + $0xd4] ss:$8 sps:$4 sm:$0xff]   ;;  %v3710_v57 = vld [vmem:[%s5011_s11 + $0x130] ss:$8 sps:$4 sm:$0xff]  }
 0x814   : > { %v2182_v19 = vmul.f32 %v2174_v3, %v4774_v58  ;;  %v2184_v20 = vmul.f32 %v2176_v4, %v4776_v0  ;;  %v2178_v21 = vmul.f32 %v4789_v5, %v4789_v5  ;;  %v2180_v22 = vmul.f32 %v4791_v11, %v4791_v11  ;;  %2951 = vmatpush1.bf16.msra.mxu1 %v3779_v59  ;;  %v3787_v3 = vld [vmem:[%s5013_s13 + $0xc4] ss:$8 sps:$4 sm:$0xff]   ;;  %v3785_v4 = vld [vmem:[%s5013_s13 + $0xc0] ss:$8 sps:$4 sm:$0xff]   ;;  %v3724_v59 = vld [vmem:[%s5011_s11 + $0x174] ss:$8 sps:$4 sm:$0xff]  }
 0x815   : > { %v2183_v23 = vmul.f32 %v2175_v15, %v4778_v61  ;;  %v2185_v24 = vmul.f32 %v2177_v16, %v4780_v6  ;;  %v2179_v25 = vmul.f32 %v4800_v17, %v4800_v17  ;;  %v2181_v26 = vmul.f32 %v4802_v18, %v4802_v18  ;;  %2952 = vmatprep.subr.bf16.mxu1 %v3784_v8  ;;  %v3727_v8 = vld [vmem:[%s5011_s11 + $0x184] ss:$8 sps:$4 sm:$0xff]  }
 0x816   : > { %v2190_v28 = vmul.f32 0.044715, %v2182_v19  ;;  %v2192_v29 = vmul.f32 0.044715, %v2184_v20  ;;  %v2186_v30 = vmul.f32 %v2178_v21, %v4789_v5  ;;  %v2188_v32 = vmul.f32 %v2180_v22, %v4791_v11  ;;  %v3788_v22 = vld [vmem:[%s5013_s13 + $0xd0] ss:$8 sps:$4 sm:$0xff]  }
 0x817   : > { %v2191_v37 = vmul.f32 0.044715, %v2183_v23  ;;  %v2193_v38 = vmul.f32 0.044715, %v2185_v24  ;;  %v2187_v39 = vmul.f32 %v2179_v25, %v4800_v17  ;;  %v2189_v40 = vmul.f32 %v2181_v26, %v4802_v18 }
 0x818   : > { %v2198_v41 = vadd.f32 %v2190_v28, %v4774_v58  ;;  %v2200_v42 = vadd.f32 %v2192_v29, %v4776_v0  ;;  %v2194_v43 = vmul.f32 0.044715, %v2186_v30  ;;  %v2196_v44 = vmul.f32 0.044715, %v2188_v32  ;;  %2953 = vmatpush1.bf16.msra.mxu1 %v3782_v2  ;;  %v3730_v2 = vld [vmem:[%s5011_s11 + $0x194] ss:$8 sps:$4 sm:$0xff]  }
 0x819   : > { %v2199_v45 = vadd.f32 %v2191_v37, %v4778_v61  ;;  %v2201_v46 = vadd.f32 %v2193_v38, %v4780_v6  ;;  %v2195_v49 = vmul.f32 0.044715, %v2187_v39  ;;  %v2197_v50 = vmul.f32 0.044715, %v2189_v40  ;;  %2954 = vmatprep.subr.bf16.mxu1 %v3787_v3  ;;  %v3728_v3 = vld [vmem:[%s5011_s11 + $0x190] ss:$8 sps:$4 sm:$0xff]  }
 0x81a   : > { %v2206_v51 = vmul.f32 0.7978846, %v2198_v41  ;;  %v2208_v52 = vmul.f32 0.7978846, %v2200_v42  ;;  %v2202_v55 = vadd.f32 %v2194_v43, %v4789_v5  ;;  %v2204_v56 = vadd.f32 %v2196_v44, %v4791_v11 }
 0x81b   : > { %v2207_v47 = vmul.f32 0.7978846, %v2199_v45  ;;  %v2209_v54 = vmul.f32 0.7978846, %v2201_v46  ;;  %v2203_v34 = vadd.f32 %v2195_v49, %v4800_v17  ;;  %v2205_v53 = vadd.f32 %v2197_v50, %v4802_v18 }
 0x81c   : > { %3813 = vtanh.f32 %v2206_v51  ;;  %v2210_v62 = vmul.f32 0.7978846, %v2202_v55  ;;  %v2212_v63 = vmul.f32 0.7978846, %v2204_v56  ;;  %2955 = vmatpush1.bf16.msra.mxu1 %v3785_v4  ;;  %v3712_v56 = vld [vmem:[%s5011_s11 + $0x134] ss:$8 sps:$4 sm:$0xff]  }
 0x81d   : > { %3815 = vtanh.f32 %v2208_v52  ;;  %v2211_v60 = vmul.f32 0.7978846, %v2203_v34  ;;  %v2213_v10 = vmul.f32 0.7978846, %v2205_v53  ;;  %2956 = vmatprep.subr.bf16.mxu1 %v3790_v13  ;;  %v3718_v34 = vld [vmem:[%s5011_s11 + $0x154] ss:$8 sps:$4 sm:$0xff]  }
 0x81e   : > { %3817 = vtanh.f32 %v2207_v47  ;;  %v3715_v47 = vld [vmem:[%s5011_s11 + $0x144] ss:$8 sps:$4 sm:$0xff]   ;;  %v3716_v53 = vld [vmem:[%s5011_s11 + $0x150] ss:$8 sps:$4 sm:$0xff]   ;;  %v3736_v13 = vld [vmem:[%s5011_s11 + $0x1b4] ss:$8 sps:$4 sm:$0xff]  }
 0x81f   : > { %3819 = vtanh.f32 %v2209_v54  ;;  %v3713_v54 = vld [vmem:[%s5011_s11 + $0x140] ss:$8 sps:$4 sm:$0xff]   ;;  %v3733_v4 = vld [vmem:[%s5011_s11 + $0x1a4] ss:$8 sps:$4 sm:$0xff]  }
 0x820   : > { %3821 = vtanh.f32 %v2210_v62  ;;  %2957 = vmatpush1.bf16.msra.mxu1 %v3788_v22  ;;  %v3721_v62 = vld [vmem:[%s5011_s11 + $0x164] ss:$8 sps:$4 sm:$0xff]   ;;  %v3743_v22 = vld [vmem:[%s5011_s11 + $0x1e0] ss:$8 sps:$4 sm:$0xff]  }
 0x821   : > { %3823 = vtanh.f32 %v2212_v63  ;;  %v3719_v63 = vld [vmem:[%s5011_s11 + $0x160] ss:$8 sps:$4 sm:$0xff]  }
 0x822   : > { %3825 = vtanh.f32 %v2211_v60  ;;  %v3722_v60 = vld [vmem:[%s5011_s11 + $0x170] ss:$8 sps:$4 sm:$0xff]  }
 0x823   : > { %3827 = vtanh.f32 %v2213_v10  ;;  %v3725_v10 = vld [vmem:[%s5011_s11 + $0x180] ss:$8 sps:$4 sm:$0xff]  }
 0x826   : > { %v3814_v12 = vpop.eup %3813 }
 0x827   : > { %v3816_v14 = vpop.eup %3815  ;;  %v2222_v15 = vadd.f32 1.0, %v3814_v12  ;;  %v3731_v12 = vld [vmem:[%s5011_s11 + $0x1a0] ss:$8 sps:$4 sm:$0xff]  }
 0x828   : > { %v3818_v16 = vpop.eup %3817  ;;  %v2224_v19 = vadd.f32 1.0, %v3816_v14  ;;  %v3734_v14 = vld [vmem:[%s5011_s11 + $0x1b0] ss:$8 sps:$4 sm:$0xff]  }
 0x829   : > { %v3820_v20 = vpop.eup %3819  ;;  %v2223_v21 = vadd.f32 1.0, %v3818_v16  ;;  %v2230_v26 = vmul.f32 0.5, %v2222_v15  ;;  %v3739_v15 = vld [vmem:[%s5011_s11 + $0x1c4] ss:$8 sps:$4 sm:$0xff]   ;;  %v3737_v16 = vld [vmem:[%s5011_s11 + $0x1c0] ss:$8 sps:$4 sm:$0xff]  }
 0x82a   : > { %v3822_v23 = vpop.eup %3821  ;;  %v2225_v24 = vadd.f32 1.0, %v3820_v20  ;;  %v2232_v29 = vmul.f32 0.5, %v2224_v19  ;;  %v3742_v19 = vld [vmem:[%s5011_s11 + $0x1d4] ss:$8 sps:$4 sm:$0xff]   ;;  %v3740_v20 = vld [vmem:[%s5011_s11 + $0x1d0] ss:$8 sps:$4 sm:$0xff]  }
 0x82b   : > { %v3824_v25 = vpop.eup %3823  ;;  %v2226_v27 = vadd.f32 1.0, %v3822_v23  ;;  %v2231_v38 = vmul.f32 0.5, %v2223_v21  ;;  %v2238_v42 = vmul.f32 %v2230_v26, %v4774_v58  ;;  %v3745_v21 = vld [vmem:[%s5011_s11 + $0x1e4] ss:$8 sps:$4 sm:$0xff]   ;;  %v3748_v23 = vld [vmem:[%s5011_s11 + $0x1f4] ss:$8 sps:$4 sm:$0xff]  }
 0x82c   : > { %v3826_v28 = vpop.eup %3825  ;;  %v2228_v30 = vadd.f32 1.0, %v3824_v25  ;;  %v2233_v41 = vmul.f32 0.5, %v2225_v24  ;;  %v4864_v45 = vmul.f32 %v2232_v29, %v4776_v0  ;;  %v3701_v0 = vld [vmem:[%s5011_s11 + $0x100] ss:$8 sps:$4 sm:$0xff]   ;;  %v3746_v24 = vld [vmem:[%s5011_s11 + $0x1f0] ss:$8 sps:$4 sm:$0xff]  }
 0x82d   : > { %v3828_v32 = vpop.eup %3827  ;;  %v2234_v33 = vmul.f32 0.5, %v2226_v27  ;;  %v2227_v37 = vadd.f32 1.0, %v3826_v28  ;;  %v2239_v50 = vmul.f32 %v2231_v38, %v4778_v61  ;;  %v3706_v61 = vld [vmem:[%s5011_s11 + $0x114] ss:$8 sps:$4 sm:$0xff]   ;;  %v3793_v25 = vld [vmem:[%s5013_s13 + $0xe4] ss:$8 sps:$4 sm:$0xff]  }
 0x82e   : > { %v2236_v39 = vmul.f32 0.5, %v2228_v30  ;;  %v2229_v40 = vadd.f32 1.0, %v3828_v32  ;;  %v2241_v52 = vmul.f32 %v2233_v41, %v4780_v6  ;;  %v3704_v6 = vld [vmem:[%s5011_s11 + $0x110] ss:$8 sps:$4 sm:$0xff]   ;;  %v3791_v26 = vld [vmem:[%s5013_s13 + $0xe0] ss:$8 sps:$4 sm:$0xff]   ;;  %2958 = vmatprep.subr.bf16.mxu1 %v3793_v25 }
 0x82f   : > { %v2242_v43 = vmul.f32 %v2234_v33, %v4789_v5  ;;  %v2235_v44 = vmul.f32 0.5, %v2227_v37  ;;  %2959 = vmatpush1.bf16.msra.mxu1 %v3791_v26  ;;  %v3796_v27 = vld [vmem:[%s5013_s13 + $0xf4] ss:$8 sps:$4 sm:$0xff]   ;;  %v3794_v28 = vld [vmem:[%s5013_s13 + $0xf0] ss:$8 sps:$4 sm:$0xff]  }
 0x830   : > { %v4867_v46 = vmul.f32 %v2236_v39, %v4791_v11  ;;  %v2237_v49 = vmul.f32 0.5, %v2229_v40  ;;  %2960 = vmatprep.subr.bf16.mxu1 %v3796_v27  ;;  %v2314_v29 = vld [vmem:[%s5012_s12] sm:$0x3] }
 0x831   : > { %v2243_v48 = vmul.f32 %v2235_v44, %v4800_v17  ;;  %v2246_v51 = vpack.c.bf16 %v2242_v43, %v2238_v42  ;;  %v3709_v17 = vld [vmem:[%s5011_s11 + $0x124] ss:$8 sps:$4 sm:$0xff]   ;;  %v2319_v30 = vrot.slane %v2314_v29, %v4163_v36  ;;  %v2323_v32 = vrot.slane %v2314_v29, %v4160_v35 }
 0x832   : > { %v2245_v55 = vmul.f32 %v2237_v49, %v4802_v18  ;;  %v2248_v58 = vpack.c.bf16 %v4867_v46, %v4864_v45  ;;  %v3707_v18 = vld [vmem:[%s5011_s11 + $0x120] ss:$8 sps:$4 sm:$0xff]  }
 0x833   : > { %v2247_v5 = vpack.c.bf16 %v2243_v48, %v2239_v50  ;;  %2961 = vmatpush1.bf16.msra.mxu1 %v3794_v28 }
 0x834   : > { %v2249_v11 = vpack.c.bf16 %v2245_v55, %v2241_v52 }
 0x835   : > { %2678 = vmatprep.mubr.bf16.mxu0 %v2247_v5 }
 0x836   : > { %2679 = vmatmul.mubr.bf16.vlgmr.msra.gmra.mrb[12].mxu0 %v2246_v51 }
 0x837   : > { %2690 = vmatpush1.bf16.msra.mxu0 %v3701_v0  ;;  %2721 = vmatprep.mubr.bf16.mxu0 %v2249_v11 }
 0x838   : > { %2691 = vmatprep.subr.bf16.mxu0 %v3706_v61 }
 0x83b   : > { %2692 = vmatpush1.bf16.msra.mxu0 %v3704_v6 }
 0x83c   : > { %2693 = vmatprep.subr.bf16.mxu0 %v3709_v17 }
 0x83f   : > { %2694 = vmatpush1.bf16.msra.mxu0 %v3707_v18 }
 0x840   : > { %2695 = vmatprep.subr.bf16.mxu0 %v3712_v56 }
 0x843   : > { %2696 = vmatpush1.bf16.msra.mxu0 %v3710_v57 }
 0x844   : > { %2697 = vmatprep.subr.bf16.mxu0 %v3715_v47 }
 0x847   : > { %2698 = vmatpush1.bf16.msra.mxu0 %v3713_v54 }
 0x848   : > { %2699 = vmatprep.subr.bf16.mxu0 %v3718_v34 }
 0x84b   : > { %2700 = vmatpush1.bf16.msra.mxu0 %v3716_v53 }
 0x84c   : > { %2701 = vmatprep.subr.bf16.mxu0 %v3721_v62 }
 0x84f   : > { %2702 = vmatpush1.bf16.msra.mxu0 %v3719_v63 }
 0x850   : > { %2703 = vmatprep.subr.bf16.mxu0 %v3724_v59 }
 0x853   : > { %2704 = vmatpush1.bf16.msra.mxu0 %v3722_v60 }
 0x854   : > { %2705 = vmatprep.subr.bf16.mxu0 %v3727_v8 }
 0x857   : > { %2706 = vmatpush1.bf16.msra.mxu0 %v3725_v10 }
 0x858   : > { %2707 = vmatprep.subr.bf16.mxu0 %v3730_v2 }
 0x85b   : > { %2708 = vmatpush1.bf16.msra.mxu0 %v3728_v3 }
 0x85c   : > { %2709 = vmatprep.subr.bf16.mxu0 %v3733_v4 }
 0x85f   : > { %2710 = vmatpush1.bf16.msra.mxu0 %v3731_v12 }
 0x860   : > { %2711 = vmatprep.subr.bf16.mxu0 %v3736_v13 }
 0x863   : > { %2712 = vmatpush1.bf16.msra.mxu0 %v3734_v14 }
 0x864   : > { %2713 = vmatprep.subr.bf16.mxu0 %v3739_v15 }
 0x867   : > { %2714 = vmatpush1.bf16.msra.mxu0 %v3737_v16 }
 0x868   : > { %2715 = vmatprep.subr.bf16.mxu0 %v3742_v19 }
 0x86b   : > { %2716 = vmatpush1.bf16.msra.mxu0 %v3740_v20 }
 0x86c   : > { %2717 = vmatprep.subr.bf16.mxu0 %v3745_v21 }
 0x86f   : > { %2718 = vmatpush1.bf16.msra.mxu0 %v3743_v22 }
 0x870   : > { %2719 = vmatprep.subr.bf16.mxu0 %v3748_v23 }
 0x873   : > { %2720 = vmatpush1.bf16.msra.mxu0 %v3746_v24 }
 0x876   : > { %2722 = vmatmul.mubr.bf16.vlgmr.msra.gmra.mrb[12].mxu0 %v2248_v58 }
 0x949   : > { %v2723_v33 = vpop.f32.mrb[12].mxu0 }
 0x94a   : > { %v3348_v37 = vadd.f32 %v2723_v33, %v2319_v30  ;;  %v2725_v38 = vpop.f32.mrb[13].mxu0 }
 0x94b   : > { %v3349_v39 = vadd.f32 %v2725_v38, %v2323_v32  ;;  %v2727_v40 = vpop.f32.mrb[14].mxu0 }
 0x94c   : > { %v3350_v41 = vadd.f32 %v2727_v40, %v2319_v30  ;;  %v2729_v42 = vpop.f32.mrb[15].mxu0  ;;  %v2732_v44 = vadd.f32 %v3348_v37, %v4382_v31 }
 0x94d   : > { %v3351_v43 = vadd.f32 %v2729_v42, %v2323_v32  ;;  %v2733_v46 = vadd.f32 %v3349_v39, %v4385_v1 }
 0x94e   : > { %v2734_v45 = vadd.f32 %v3350_v41, %v4388_v7 }
 0x94f   : > { %v2735_v49 = vadd.f32 %v3351_v43, %v4391_v9 }
 0x950   : > { %v2736_v36 = vpack.c.bf16 %v2734_v45, %v2732_v44 }
 0x951   : > { %v2737_v50 = vpack.c.bf16 %v2735_v49, %v2733_v46 }
 0x953   : > { %2962 = vmatprep.mubr.bf16.mxu1 %v2737_v50 }
 0x954   : > { %2963 = vmatmul.mubr.bf16.vlgmr.msra.gmra.mrb[20].mxu1 %v2736_v36 }
 0xa27   : > { %v2964_v35 = vpop.f32.mrb[20].mxu1 }
 0xa28   : > { %v2966_v48 = vpop.f32.mrb[21].mxu1 }
 0xa29   : > { %v3346_v51 = vpack.c.bf16 %v2966_v48, %v2964_v35  ;;  %v2968_v52 = vpop.f32.mrb[22].mxu1 }
 0xa2a   : > { %v2970_v31 = vpop.f32.mrb[23].mxu1 }
 0xa2b   : > { %2985 = vst [vmem:[%s467_s24] sm:$0xff] %v3346_v51  ;;  %v3347_v7 = vpack.c.bf16 %v2970_v31, %v2968_v52 }
 0xa2d   : > { %2986 = vst [vmem:[%s467_s24 + $0x8] sm:$0xff] %v3347_v7 }
 0xa2e PF: > { %s24_s29 = sadd.s32 1, %s3835_s29  }
 0xa2f   : > { %p21_p4 = scmp.ge.s32.totalorder %s24_s29, 4  }
 0xa31   :  { %23 = sbr.rel (!%p21_p4) target bundleno = 1 (0x1), region = 106 }

// kernel: policy_and_value_forward.3
= control target key start
LH: loop header
LB: loop body
LE: loop exit
PB: predicated region body
PF: predicated region fallthrough
CT: control target
= control target key end

     0   :  { %s3805_s29 = smov 0   ;;  %s4844_s0 = inlined_call_operand.vmem [shape: bf16[2,16,256], index: 0, kind: input, shape index: {}]   ;;  %s4845_s1 = inlined_call_operand.vmem [shape: f32[1,256], index: 1, kind: input, shape index: {}]   ;;  %s4846_s2 = inlined_call_operand.vmem [shape: f32[1,256], index: 2, kind: input, shape index: {}]   ;;  %s4847_s3 = inlined_call_operand.vmem [shape: bf16[256,256], index: 3, kind: input, shape index: {}]   ;;  %s4848_s4 = inlined_call_operand.vmem [shape: bf16[256,256], index: 4, kind: input, shape index: {}]   ;;  %s4849_s5 = inlined_call_operand.vmem [shape: bf16[256,256], index: 5, kind: input, shape index: {}]   ;;  %s4850_s6 = inlined_call_operand.vmem [shape: bf16[256,256], index: 6, kind: input, shape index: {}]   ;;  %s4851_s7 = inlined_call_operand.vmem [shape: f32[1,256], index: 7, kind: input, shape index: {}]   ;;  %s4852_s8 = inlined_call_operand.vmem [shape: f32[1,256], index: 8, kind: input, shape index: {}]   ;;  %s4853_s9 = inlined_call_operand.vmem [shape: bf16[256,512], index: 9, kind: input, shape index: {}]   ;;  %s4854_s10 = inlined_call_operand.vmem [shape: f32[1,512], index: 10, kind: input, shape index: {}]   ;;  %s4855_s11 = inlined_call_operand.vmem [shape: bf16[512,256], index: 11, kind: input, shape index: {}]   ;;  %s4856_s12 = inlined_call_operand.vmem [shape: f32[1,256], index: 12, kind: input, shape index: {}]   ;;  %s4857_s13 = inlined_call_operand.vmem [shape: bf16[256,128], index: 13, kind: input, shape index: {}]   ;;  %s4858_s14 = inlined_call_operand.vmem [shape: f32[2,16,128], index: 14, kind: output, shape index: {}]  }
   0x1 LB: > { %s2964_s30 = sadd.s32 4294967295, %s3727_s29   ;;  %p2968_p0 = scmp.ge.s32.totalorder %s3727_s29, 1  ;;  %s3727_s29 = sphi %s3805_s29, %s24_s29  }
   0x2   : > { %p412_p1 = scmp.lt.s32.totalorder %s3727_s29, 3 }
   0x4   : > { %p413_p2 = pnand %p2968_p0, %p412_p1 }
   0x5   : > { %p458_p3 = scmp.lt.s32.totalorder (!%p413_p2), %s2964_s30, 1  ;;  %v3289_v8 = vld [vmem:[%s4847_s3 + $0x4] ss:$8 sps:$4 sm:$0xff] (!%p413_p2)   ;;  %v3291_v9 = vld [vmem:[%s4847_s3] ss:$8 sps:$4 sm:$0xff] (!%p413_p2)   ;;  %vm1303_vm1 = vcmask (!%p413_p2), 130048  }
   0x6   : > { %416 = sbr.rel (%p413_p2) target bundleno = 2670 (0xa6e), region = 76  ;;  %v3292_v10 = vld [vmem:[%s4849_s5 + $0x4] ss:$8 sps:$4 sm:$0xff] (!%p413_p2)   ;;  %v3294_v11 = vld [vmem:[%s4849_s5] ss:$8 sps:$4 sm:$0xff] (!%p413_p2)   ;;  %734 = vmatprep.subr.bf16.mxu1 (!%p413_p2), %v3289_v8 }
   0x7   : > { %v3295_v12 = vld [vmem:[%s4847_s3 + $0x14] ss:$8 sps:$4 sm:$0xff] (!%p413_p2)   ;;  %1204 = vmatprep.subr.bf16.mxu0 (!%p413_p2), %v3292_v10  ;;  %735 = vmatpush1.bf16.msra.mxu1 (!%p413_p2), %v3291_v9  ;;  %v3297_v14 = vld [vmem:[%s4847_s3 + $0x10] ss:$8 sps:$4 sm:$0xff] (!%p413_p2)   ;;  %v3301_v16 = vld [vmem:[%s4847_s3 + $0x24] ss:$8 sps:$4 sm:$0xff] (!%p413_p2)  }
   0x8   : > { %v3298_v13 = vld [vmem:[%s4849_s5 + $0x14] ss:$8 sps:$4 sm:$0xff] (!%p413_p2)   ;;  %1205 = vmatpush1.bf16.msra.mxu0 (!%p413_p2), %v3294_v11  ;;  %v3300_v15 = vld [vmem:[%s4849_s5 + $0x10] ss:$8 sps:$4 sm:$0xff] (!%p413_p2)   ;;  %736 = vmatprep.subr.bf16.mxu1 (!%p413_p2), %v3295_v12  ;;  %v3304_v17 = vld [vmem:[%s4849_s5 + $0x24] ss:$8 sps:$4 sm:$0xff] (!%p413_p2)  }
   0x9   : > { %1206 = vmatprep.subr.bf16.mxu0 (!%p413_p2), %v3298_v13  ;;  %v3303_v18 = vld [vmem:[%s4847_s3 + $0x20] ss:$8 sps:$4 sm:$0xff] (!%p413_p2)   ;;  %v3307_v20 = vld [vmem:[%s4847_s3 + $0x34] ss:$8 sps:$4 sm:$0xff] (!%p413_p2)   ;;  %v3309_v22 = vld [vmem:[%s4847_s3 + $0x30] ss:$8 sps:$4 sm:$0xff] (!%p413_p2)  }
   0xa   : > { %v3306_v19 = vld [vmem:[%s4849_s5 + $0x20] ss:$8 sps:$4 sm:$0xff] (!%p413_p2)   ;;  %v3310_v21 = vld [vmem:[%s4849_s5 + $0x34] ss:$8 sps:$4 sm:$0xff] (!%p413_p2)   ;;  %v3312_v23 = vld [vmem:[%s4849_s5 + $0x30] ss:$8 sps:$4 sm:$0xff] (!%p413_p2)  }
   0xb   : > { %737 = vmatpush1.bf16.msra.mxu1 (!%p413_p2), %v3297_v14  ;;  %v3313_v24 = vld [vmem:[%s4847_s3 + $0x44] ss:$8 sps:$4 sm:$0xff] (!%p413_p2)   ;;  %v3315_v26 = vld [vmem:[%s4847_s3 + $0x40] ss:$8 sps:$4 sm:$0xff] (!%p413_p2)   ;;  %v3319_v28 = vld [vmem:[%s4847_s3 + $0x54] ss:$8 sps:$4 sm:$0xff] (!%p413_p2)  }
   0xc   : > { %1207 = vmatpush1.bf16.msra.mxu0 (!%p413_p2), %v3300_v15  ;;  %738 = vmatprep.subr.bf16.mxu1 (!%p413_p2), %v3301_v16  ;;  %v3316_v25 = vld [vmem:[%s4849_s5 + $0x44] ss:$8 sps:$4 sm:$0xff] (!%p413_p2)   ;;  %v3318_v27 = vld [vmem:[%s4849_s5 + $0x40] ss:$8 sps:$4 sm:$0xff] (!%p413_p2)   ;;  %v3322_v29 = vld [vmem:[%s4849_s5 + $0x54] ss:$8 sps:$4 sm:$0xff] (!%p413_p2)  }
   0xd   : > { %s4860_s30 = smov (!%p458_p3, %s2964_s30), 1  ;;  %1208 = vmatprep.subr.bf16.mxu0 %v3304_v17  ;;  %v3321_v30 = vld [vmem:[%s4847_s3 + $0x50] ss:$8 sps:$4 sm:$0xff]   ;;  %v3325_v32 = vld [vmem:[%s4847_s3 + $0x64] ss:$8 sps:$4 sm:$0xff]  }
   0xe   : > { %s3248_s15 = sshll.u32 %s4860_s30, 4  ;;  %v3324_v31 = vld [vmem:[%s4849_s5 + $0x50] ss:$8 sps:$4 sm:$0xff]   ;;  %v3328_v33 = vld [vmem:[%s4849_s5 + $0x64] ss:$8 sps:$4 sm:$0xff]  }
   0xf   : > { %s462_s18 = scalar_lea.vmem %s4844_s0, %s3248_s15  ;;  %739 = vmatpush1.bf16.msra.mxu1 %v3303_v18  ;;  %v3327_v34 = vld [vmem:[%s4847_s3 + $0x60] ss:$8 sps:$4 sm:$0xff]   ;;  %v3331_v36 = vld [vmem:[%s4847_s3 + $0x74] ss:$8 sps:$4 sm:$0xff]   ;;  %v3333_v38 = vld [vmem:[%s4847_s3 + $0x70] ss:$8 sps:$4 sm:$0xff]  }
  0x10   : > { %v469_v0 = vld [vmem:[%s462_s18] sm:$0xff]  ;;  %v470_v1 = vld [vmem:[%s462_s18 + $0x8] sm:$0xff]  ;;  %1209 = vmatpush1.bf16.msra.mxu0 %v3306_v19  ;;  %740 = vmatprep.subr.bf16.mxu1 %v3307_v20  ;;  %v3334_v37 = vld [vmem:[%s4849_s5 + $0x74] ss:$8 sps:$4 sm:$0xff]   ;;  %s467_s18 = scalar_lea.vmem %s4858_s14, %s3248_s15 }
  0x11   : > { %v3821_v2 = vunpack.c.l.bf16 %v469_v0  ;;  %v3823_v3 = vunpack.c.h.bf16 %v469_v0  ;;  %v3825_v4 = vunpack.c.l.bf16 %v470_v1  ;;  %v3827_v5 = vunpack.c.h.bf16 %v470_v1  ;;  %1210 = vmatprep.subr.bf16.mxu0 %v3310_v21  ;;  %v3330_v35 = vld [vmem:[%s4849_s5 + $0x60] ss:$8 sps:$4 sm:$0xff]   ;;  %v3336_v39 = vld [vmem:[%s4849_s5 + $0x70] ss:$8 sps:$4 sm:$0xff]   ;;  %v3337_v40 = vld [vmem:[%s4847_s3 + $0x84] ss:$8 sps:$4 sm:$0xff]  }
  0x12   : > { %v3340_v41 = vld [vmem:[%s4849_s5 + $0x84] ss:$8 sps:$4 sm:$0xff]   ;;  %v3339_v42 = vld [vmem:[%s4847_s3 + $0x80] ss:$8 sps:$4 sm:$0xff]   ;;  %v3343_v44 = vld [vmem:[%s4847_s3 + $0x94] ss:$8 sps:$4 sm:$0xff]  }
  0x13   : > { %v475_v6 = vadd.f32 %v3823_v3, %v3821_v2  ;;  %v478_v7 = vadd.f32 %v3827_v5, %v3825_v4  ;;  %741 = vmatpush1.bf16.msra.mxu1 %v3309_v22  ;;  %v3342_v43 = vld [vmem:[%s4849_s5 + $0x80] ss:$8 sps:$4 sm:$0xff]   ;;  %v3345_v59 = vld [vmem:[%s4847_s3 + $0x90] ss:$8 sps:$4 sm:$0xff]   ;;  %v3346_v60 = vld [vmem:[%s4849_s5 + $0x94] ss:$8 sps:$4 sm:$0xff]  }
  0x14   : > { %1211 = vmatpush1.bf16.msra.mxu0 %v3312_v23  ;;  %742 = vmatprep.subr.bf16.mxu1 %v3313_v24  ;;  %v3348_v61 = vld [vmem:[%s4849_s5 + $0x90] ss:$8 sps:$4 sm:$0xff]   ;;  %v3349_v62 = vld [vmem:[%s4847_s3 + $0xa4] ss:$8 sps:$4 sm:$0xff]   ;;  %v3351_v63 = vld [vmem:[%s4847_s3 + $0xa0] ss:$8 sps:$4 sm:$0xff]  }
  0x15   : > { %476 = vadd.xlane.f32.xlu0 %v475_v6  ;;  %1212 = vmatprep.subr.bf16.mxu0 %v3316_v25  ;;  %v3352_v0 = vld [vmem:[%s4849_s5 + $0xa4] ss:$8 sps:$4 sm:$0xff]   ;;  %v3354_v1 = vld [vmem:[%s4849_s5 + $0xa0] ss:$8 sps:$4 sm:$0xff]   ;;  %v3355_v6 = vld [vmem:[%s4847_s3 + $0xb4] ss:$8 sps:$4 sm:$0xff]  }
  0x16   : > { %v3358_v8 = vld [vmem:[%s4849_s5 + $0xb4] ss:$8 sps:$4 sm:$0xff]   ;;  %v3360_v9 = vld [vmem:[%s4849_s5 + $0xb0] ss:$8 sps:$4 sm:$0xff]   ;;  %v3361_v10 = vld [vmem:[%s4847_s3 + $0xc4] ss:$8 sps:$4 sm:$0xff]  }
  0x17   : > { %743 = vmatpush1.bf16.msra.mxu1 %v3315_v26  ;;  %v3363_v11 = vld [vmem:[%s4847_s3 + $0xc0] ss:$8 sps:$4 sm:$0xff]   ;;  %v3364_v12 = vld [vmem:[%s4849_s5 + $0xc4] ss:$8 sps:$4 sm:$0xff]   ;;  %v3367_v14 = vld [vmem:[%s4847_s3 + $0xd4] ss:$8 sps:$4 sm:$0xff]  }
  0x18   : > { %1213 = vmatpush1.bf16.msra.mxu0 %v3318_v27  ;;  %744 = vmatprep.subr.bf16.mxu1 %v3319_v28  ;;  %v3366_v13 = vld [vmem:[%s4849_s5 + $0xc0] ss:$8 sps:$4 sm:$0xff]   ;;  %v3370_v15 = vld [vmem:[%s4849_s5 + $0xd4] ss:$8 sps:$4 sm:$0xff]   ;;  %v3369_v16 = vld [vmem:[%s4847_s3 + $0xd0] ss:$8 sps:$4 sm:$0xff]  }
  0x19   : > { %479 = vadd.xlane.f32.xlu0 %v478_v7  ;;  %1214 = vmatprep.subr.bf16.mxu0 %v3322_v29  ;;  %v3357_v7 = vld [vmem:[%s4847_s3 + $0xb0] ss:$8 sps:$4 sm:$0xff]   ;;  %v3373_v18 = vld [vmem:[%s4847_s3 + $0xe4] ss:$8 sps:$4 sm:$0xff]   ;;  %v3375_v20 = vld [vmem:[%s4847_s3 + $0xe0] ss:$8 sps:$4 sm:$0xff]  }
  0x1a   : > { %v3372_v17 = vld [vmem:[%s4849_s5 + $0xd0] ss:$8 sps:$4 sm:$0xff]   ;;  %v3376_v19 = vld [vmem:[%s4849_s5 + $0xe4] ss:$8 sps:$4 sm:$0xff]   ;;  %v3378_v21 = vld [vmem:[%s4849_s5 + $0xe0] ss:$8 sps:$4 sm:$0xff]  }
  0x1b   : > { %745 = vmatpush1.bf16.msra.mxu1 %v3321_v30  ;;  %v3379_v22 = vld [vmem:[%s4847_s3 + $0xf4] ss:$8 sps:$4 sm:$0xff]   ;;  %v3381_v24 = vld [vmem:[%s4847_s3 + $0xf0] ss:$8 sps:$4 sm:$0xff]   ;;  %v3387_v26 = vld [vmem:[%s4848_s4 + $0x4] ss:$8 sps:$4 sm:$0xff]  }
  0x1c   : > { %1215 = vmatpush1.bf16.msra.mxu0 %v3324_v31  ;;  %746 = vmatprep.subr.bf16.mxu1 %v3325_v32  ;;  %v3382_v23 = vld [vmem:[%s4849_s5 + $0xf4] ss:$8 sps:$4 sm:$0xff]   ;;  %v3384_v25 = vld [vmem:[%s4849_s5 + $0xf0] ss:$8 sps:$4 sm:$0xff]   ;;  %v510_v31 = vlaneseq }
  0x1d   : > { %1216 = vmatprep.subr.bf16.mxu0 %v3328_v33 }
  0x1f   : > { %747 = vmatpush1.bf16.msra.mxu1 %v3327_v34  ;;  %v4049_v34 = vshrl.u32 %v510_v31, 7 }
  0x20   : > { %1217 = vmatpush1.bf16.msra.mxu0 %v3330_v35  ;;  %748 = vmatprep.subr.bf16.mxu1 %v3331_v36 }
  0x21   : > { %1218 = vmatprep.subr.bf16.mxu0 %v3334_v37  ;;  %v4052_v35 = vsub.s32 1, %v4049_v34  ;;  %v4055_v36 = vsub.s32 0, %v4049_v34  ;;  %v508_v37 = vld [vmem:[%s4845_s1] sm:$0x3] }
  0x23   : > { %749 = vmatpush1.bf16.msra.mxu1 %v3333_v38 }
  0x24   : > { %1219 = vmatpush1.bf16.msra.mxu0 %v3336_v39  ;;  %750 = vmatprep.subr.bf16.mxu1 %v3337_v40  ;;  %v517_v40 = vrot.slane %v508_v37, %v4052_v35 }
  0x25   : > { %1220 = vmatprep.subr.bf16.mxu0 %v3340_v41  ;;  %v524_v41 = vld [vmem:[%s4846_s2] sm:$0x3] }
  0x27   : > { %751 = vmatpush1.bf16.msra.mxu1 %v3339_v42 }
  0x28   : > { %1221 = vmatpush1.bf16.msra.mxu0 %v3342_v43  ;;  %752 = vmatprep.subr.bf16.mxu1 %v3343_v44  ;;  %v513_v43 = vrot.slane %v508_v37, %v4055_v36 }
  0x29   : > { %1222 = vmatprep.subr.bf16.mxu0 %v3346_v60  ;;  %v3385_v60 = vld [vmem:[%s4848_s4] ss:$8 sps:$4 sm:$0xff]  }
  0x2b   : > { %753 = vmatpush1.bf16.msra.mxu1 %v3345_v59 }
  0x2c   : > { %1223 = vmatpush1.bf16.msra.mxu0 %v3348_v61  ;;  %754 = vmatprep.subr.bf16.mxu1 %v3349_v62  ;;  %v3393_v62 = vld [vmem:[%s4848_s4 + $0x24] ss:$8 sps:$4 sm:$0xff]  }
  0x2d   : > { %1224 = vmatprep.subr.bf16.mxu0 %v3352_v0  ;;  %v3396_v0 = vld [vmem:[%s4848_s4 + $0x34] ss:$8 sps:$4 sm:$0xff]  }
  0x2f   : > { %755 = vmatpush1.bf16.msra.mxu1 %v3351_v63  ;;  %v3391_v63 = vld [vmem:[%s4848_s4 + $0x20] ss:$8 sps:$4 sm:$0xff]  }
  0x30   : > { %1225 = vmatpush1.bf16.msra.mxu0 %v3354_v1  ;;  %756 = vmatprep.subr.bf16.mxu1 %v3355_v6  ;;  %v3394_v1 = vld [vmem:[%s4848_s4 + $0x30] ss:$8 sps:$4 sm:$0xff]   ;;  %v3399_v6 = vld [vmem:[%s4848_s4 + $0x44] ss:$8 sps:$4 sm:$0xff]  }
  0x31   : > { %1226 = vmatprep.subr.bf16.mxu0 %v3358_v8  ;;  %v3402_v8 = vld [vmem:[%s4848_s4 + $0x54] ss:$8 sps:$4 sm:$0xff]  }
  0x33   : > { %757 = vmatpush1.bf16.msra.mxu1 %v3357_v7  ;;  %v3397_v7 = vld [vmem:[%s4848_s4 + $0x40] ss:$8 sps:$4 sm:$0xff]  }
  0x34   : > { %1227 = vmatpush1.bf16.msra.mxu0 %v3360_v9  ;;  %758 = vmatprep.subr.bf16.mxu1 %v3361_v10  ;;  %v3400_v9 = vld [vmem:[%s4848_s4 + $0x50] ss:$8 sps:$4 sm:$0xff]   ;;  %v3405_v10 = vld [vmem:[%s4848_s4 + $0x64] ss:$8 sps:$4 sm:$0xff]  }
  0x35   : > { %1228 = vmatprep.subr.bf16.mxu0 %v3364_v12  ;;  %v3408_v12 = vld [vmem:[%s4848_s4 + $0x74] ss:$8 sps:$4 sm:$0xff]  }
  0x37   : > { %759 = vmatpush1.bf16.msra.mxu1 %v3363_v11  ;;  %v3403_v11 = vld [vmem:[%s4848_s4 + $0x60] ss:$8 sps:$4 sm:$0xff]  }
  0x38   : > { %1229 = vmatpush1.bf16.msra.mxu0 %v3366_v13  ;;  %760 = vmatprep.subr.bf16.mxu1 %v3367_v14  ;;  %v3406_v13 = vld [vmem:[%s4848_s4 + $0x70] ss:$8 sps:$4 sm:$0xff]   ;;  %v3411_v14 = vld [vmem:[%s4848_s4 + $0x84] ss:$8 sps:$4 sm:$0xff]  }
  0x39   : > { %1230 = vmatprep.subr.bf16.mxu0 %v3370_v15  ;;  %v3409_v15 = vld [vmem:[%s4848_s4 + $0x80] ss:$8 sps:$4 sm:$0xff]  }
  0x3b   : > { %761 = vmatpush1.bf16.msra.mxu1 %v3369_v16  ;;  %v3414_v16 = vld [vmem:[%s4848_s4 + $0x94] ss:$8 sps:$4 sm:$0xff]  }
  0x3c   : > { %1231 = vmatpush1.bf16.msra.mxu0 %v3372_v17  ;;  %762 = vmatprep.subr.bf16.mxu1 %v3373_v18  ;;  %v3412_v17 = vld [vmem:[%s4848_s4 + $0x90] ss:$8 sps:$4 sm:$0xff]   ;;  %v3417_v18 = vld [vmem:[%s4848_s4 + $0xa4] ss:$8 sps:$4 sm:$0xff]  }
  0x3d   : > { %1232 = vmatprep.subr.bf16.mxu0 %v3376_v19  ;;  %v3415_v19 = vld [vmem:[%s4848_s4 + $0xa0] ss:$8 sps:$4 sm:$0xff]  }
  0x3f   : > { %763 = vmatpush1.bf16.msra.mxu1 %v3375_v20  ;;  %v3420_v20 = vld [vmem:[%s4848_s4 + $0xb4] ss:$8 sps:$4 sm:$0xff]  }
  0x40   : > { %1233 = vmatpush1.bf16.msra.mxu0 %v3378_v21  ;;  %764 = vmatprep.subr.bf16.mxu1 %v3379_v22  ;;  %v3418_v21 = vld [vmem:[%s4848_s4 + $0xb0] ss:$8 sps:$4 sm:$0xff]   ;;  %v3423_v22 = vld [vmem:[%s4848_s4 + $0xc4] ss:$8 sps:$4 sm:$0xff]  }
  0x41   : > { %1234 = vmatprep.subr.bf16.mxu0 %v3382_v23  ;;  %v3421_v23 = vld [vmem:[%s4848_s4 + $0xc0] ss:$8 sps:$4 sm:$0xff]  }
  0x43   : > { %765 = vmatpush1.bf16.msra.mxu1 %v3381_v24  ;;  %v3426_v24 = vld [vmem:[%s4848_s4 + $0xd4] ss:$8 sps:$4 sm:$0xff]  }
  0x44   : > { %1235 = vmatpush1.bf16.msra.mxu0 %v3384_v25  ;;  %969 = vmatprep.subr.bf16.mxu1 %v3387_v26  ;;  %v3424_v25 = vld [vmem:[%s4848_s4 + $0xd0] ss:$8 sps:$4 sm:$0xff]   ;;  %v3429_v26 = vld [vmem:[%s4848_s4 + $0xe4] ss:$8 sps:$4 sm:$0xff]  }
  0xa2   : > { %v477_v45 = vpop.xlane.xlu0 %476 }
  0xa3   : > { %v482_v46 = vmul.f32 0.00390625, %v477_v45  ;;  %v533_v45 = vrot.slane %v524_v41, %v4052_v35 }
  0xa5   : > { %v3945_v47 = vsub.f32 %v3821_v2, %v482_v46  ;;  %v3948_v48 = vsub.f32 %v3823_v3, %v482_v46  ;;  %v529_v46 = vrot.slane %v524_v41, %v4055_v36 }
  0xa6   : > { %v480_v49 = vpop.xlane.xlu0 %479 }
  0xa7   : > { %v483_v50 = vmul.f32 0.00390625, %v480_v49  ;;  %v488_v51 = vmul.f32 %v3945_v47, %v3945_v47  ;;  %v489_v52 = vmul.f32 %v3948_v48, %v3948_v48 }
  0xa9   : > { %v3955_v53 = vsub.f32 %v3825_v4, %v483_v50  ;;  %v3958_v54 = vsub.f32 %v3827_v5, %v483_v50  ;;  %v492_v55 = vadd.f32 %v489_v52, %v488_v51 }
  0xab   : > { %493 = vadd.xlane.f32.xlu1 %v492_v55  ;;  %v490_v56 = vmul.f32 %v3955_v53, %v3955_v53  ;;  %v491_v57 = vmul.f32 %v3958_v54, %v3958_v54 }
  0xad   : > { %v495_v58 = vadd.f32 %v491_v57, %v490_v56 }
  0xaf   : > { %496 = vadd.xlane.f32.xlu1 %v495_v58 }
 0x138   : > { %v494_v27 = vpop.xlane.xlu1 %493 }
 0x139   : > { %v498_v28 = vmul.f32 0.00390625, %v494_v27  ;;  %v3427_v27 = vld [vmem:[%s4848_s4 + $0xe0] ss:$8 sps:$4 sm:$0xff]  }
 0x13b   : > { %v500_v29 = vadd.f32 1e-05, %v498_v28  ;;  %v3432_v28 = vld [vmem:[%s4848_s4 + $0xf4] ss:$8 sps:$4 sm:$0xff]  }
 0x13c   : > { %v497_v30 = vpop.xlane.xlu1 %496 }
 0x13d   : > { %3689 = vrsqrt.f32 %v500_v29  ;;  %v499_v32 = vmul.f32 0.00390625, %v497_v30  ;;  %v3430_v29 = vld [vmem:[%s4848_s4 + $0xf0] ss:$8 sps:$4 sm:$0xff]  }
 0x13f   : > { %v501_v33 = vadd.f32 1e-05, %v499_v32 }
 0x141   : > { %3691 = vrsqrt.f32 %v501_v33 }
 0x147   : > { %v3690_v38 = vpop.eup %3689 }
 0x148   : > { %v505_v39 = vmul.f32 %v3690_v38, %v3948_v48  ;;  %v504_v42 = vmul.f32 %v3690_v38, %v3945_v47 }
 0x14a   : > { %v521_v50 = vmul.f32 %v517_v40, %v505_v39  ;;  %v520_v51 = vmul.f32 %v513_v43, %v504_v42 }
 0x14b   : > { %v3692_v44 = vpop.eup %3691 }
 0x14c   : > { %v507_v49 = vmul.f32 %v3692_v44, %v3958_v54  ;;  %v506_v48 = vmul.f32 %v3692_v44, %v3955_v53  ;;  %v537_v56 = vadd.f32 %v533_v45, %v521_v50  ;;  %v536_v58 = vadd.f32 %v529_v46, %v520_v51  ;;  %v3390_v54 = vld [vmem:[%s4848_s4 + $0x14] ss:$8 sps:$4 sm:$0xff]   ;;  %v3388_v53 = vld [vmem:[%s4848_s4 + $0x10] ss:$8 sps:$4 sm:$0xff]  }
 0x14e   : > { %v523_v52 = vmul.f32 %v517_v40, %v507_v49  ;;  %v522_v55 = vmul.f32 %v513_v43, %v506_v48 }
 0x150   : > { %v539_v57 = vadd.f32 %v533_v45, %v523_v52  ;;  %v538_v59 = vadd.f32 %v529_v46, %v522_v55  ;;  %v1298_v55 = vand.u32 127, %v510_v31 }
 0x152   : > { %v541_v47 = vpack.c.bf16 %v539_v57, %v537_v56  ;;  %v4074_v61 = vpack.c.bf16 %v538_v59, %v536_v58  ;;  %v1296_v56 = vadd.s32 8, %v4049_v34  ;;  %vm1299_vm0 = vcmp.le.s32.totalorder %v1298_v55, %v4049_v34 }
 0x154   : > { %766 = vmatprep.mubr.bf16.mxu1 %v541_v47  ;;  %1236 = vmatprep.mubr.bf16.mxu0 %v541_v47  ;;  %vm1300_vm2 = vcmp.le.s32.totalorder %v1298_v55, %v1296_v56  ;;  %v3472_v55 = vld [vmem:[%s4850_s6 + $0xd0] ss:$8 sps:$4 sm:$0xff]   ;;  %v3477_v56 = vld [vmem:[%s4850_s6 + $0xe4] ss:$8 sps:$4 sm:$0xff]  }
 0x155   : > { %767 = vmatmul.mubr.bf16.vlgmr.msra.gmra.mrb[0].mxu1 %v4074_v61  ;;  %1237 = vmatmul.mubr.bf16.vlgmr.msra.gmra.mrb[0].mxu0 %v4074_v61 }
 0x156   : > { %970 = vmatpush1.bf16.msra.mxu1 %v3385_v60  ;;  %1001 = vmatprep.mubr.bf16.mxu1 %v541_v47 }
 0x157   : > { %971 = vmatprep.subr.bf16.mxu1 %v3390_v54 }
 0x15a   : > { %972 = vmatpush1.bf16.msra.mxu1 %v3388_v53 }
 0x15b   : > { %973 = vmatprep.subr.bf16.mxu1 %v3393_v62 }
 0x15e   : > { %974 = vmatpush1.bf16.msra.mxu1 %v3391_v63 }
 0x15f   : > { %975 = vmatprep.subr.bf16.mxu1 %v3396_v0 }
 0x162   : > { %976 = vmatpush1.bf16.msra.mxu1 %v3394_v1 }
 0x163   : > { %977 = vmatprep.subr.bf16.mxu1 %v3399_v6 }
 0x166   : > { %978 = vmatpush1.bf16.msra.mxu1 %v3397_v7 }
 0x167   : > { %979 = vmatprep.subr.bf16.mxu1 %v3402_v8 }
 0x16a   : > { %980 = vmatpush1.bf16.msra.mxu1 %v3400_v9 }
 0x16b   : > { %981 = vmatprep.subr.bf16.mxu1 %v3405_v10 }
 0x16e   : > { %982 = vmatpush1.bf16.msra.mxu1 %v3403_v11 }
 0x16f   : > { %983 = vmatprep.subr.bf16.mxu1 %v3408_v12 }
 0x172   : > { %984 = vmatpush1.bf16.msra.mxu1 %v3406_v13  ;;  %v3729_v13 = vmov 0  }
 0x173   : > { %985 = vmatprep.subr.bf16.mxu1 %v3411_v14  ;;  %v3435_v14 = vld [vmem:[%s4850_s6 + $0x4] ss:$8 sps:$4 sm:$0xff]  }
 0x176   : > { %986 = vmatpush1.bf16.msra.mxu1 %v3409_v15 }
 0x177   : > { %987 = vmatprep.subr.bf16.mxu1 %v3414_v16 }
 0x17a   : > { %988 = vmatpush1.bf16.msra.mxu1 %v3412_v17 }
 0x17b   : > { %989 = vmatprep.subr.bf16.mxu1 %v3417_v18 }
 0x17e   : > { %990 = vmatpush1.bf16.msra.mxu1 %v3415_v19 }
 0x17f   : > { %991 = vmatprep.subr.bf16.mxu1 %v3420_v20 }
 0x182   : > { %992 = vmatpush1.bf16.msra.mxu1 %v3418_v21  ;;  %v3433_v21 = vld [vmem:[%s4850_s6] ss:$8 sps:$4 sm:$0xff]  }
 0x183   : > { %993 = vmatprep.subr.bf16.mxu1 %v3423_v22 }
 0x186   : > { %994 = vmatpush1.bf16.msra.mxu1 %v3421_v23  ;;  %v3438_v23 = vld [vmem:[%s4850_s6 + $0x14] ss:$8 sps:$4 sm:$0xff]  }
 0x187   : > { %995 = vmatprep.subr.bf16.mxu1 %v3426_v24  ;;  %v3436_v24 = vld [vmem:[%s4850_s6 + $0x10] ss:$8 sps:$4 sm:$0xff]  }
 0x18a   : > { %996 = vmatpush1.bf16.msra.mxu1 %v3424_v25  ;;  %v3441_v25 = vld [vmem:[%s4850_s6 + $0x24] ss:$8 sps:$4 sm:$0xff]  }
 0x18b   : > { %997 = vmatprep.subr.bf16.mxu1 %v3429_v26  ;;  %v3439_v26 = vld [vmem:[%s4850_s6 + $0x20] ss:$8 sps:$4 sm:$0xff]  }
 0x18e   : > { %998 = vmatpush1.bf16.msra.mxu1 %v3427_v27  ;;  %v3444_v27 = vld [vmem:[%s4850_s6 + $0x34] ss:$8 sps:$4 sm:$0xff]  }
 0x18f   : > { %999 = vmatprep.subr.bf16.mxu1 %v3432_v28  ;;  %v3442_v28 = vld [vmem:[%s4850_s6 + $0x30] ss:$8 sps:$4 sm:$0xff]  }
 0x192   : > { %1000 = vmatpush1.bf16.msra.mxu1 %v3430_v29  ;;  %v3447_v29 = vld [vmem:[%s4850_s6 + $0x44] ss:$8 sps:$4 sm:$0xff]  }
 0x195   : > { %1002 = vmatmul.mubr.bf16.vlgmr.msra.gmra.mrb[4].mxu1 %v4074_v61 }
 0x228   : > { %v768_v30 = vpop.f32.mrb[0].mxu1  ;;  %v1238_v32 = vpop.f32.mrb[0].mxu0 }
 0x229   : > { %v770_v33 = vpop.f32.mrb[1].mxu1  ;;  %v1240_v37 = vpop.f32.mrb[1].mxu0 }
 0x22a   : > { %v772_v38 = vpop.f32.mrb[2].mxu1  ;;  %v1242_v39 = vpop.f32.mrb[2].mxu0 }
 0x22b   : > { %v1247_v40 = vpack.c.bf16 %v772_v38, %v768_v30  ;;  %v1327_v41 = vpack.c.bf16 %v1242_v39, %v1238_v32  ;;  %v774_v42 = vpop.f32.mrb[3].mxu1  ;;  %v1244_v43 = vpop.f32.mrb[3].mxu0  ;;  %v3445_v30 = vld [vmem:[%s4850_s6 + $0x40] ss:$8 sps:$4 sm:$0xff]   ;;  %v3450_v32 = vld [vmem:[%s4850_s6 + $0x54] ss:$8 sps:$4 sm:$0xff]  }
 0x22c   : > { %v1248_v44 = vpack.c.bf16 %v774_v42, %v770_v33  ;;  %v1328_v45 = vpack.c.bf16 %v1244_v43, %v1240_v37  ;;  %v3448_v33 = vld [vmem:[%s4850_s6 + $0x50] ss:$8 sps:$4 sm:$0xff]   ;;  %v3453_v37 = vld [vmem:[%s4850_s6 + $0x64] ss:$8 sps:$4 sm:$0xff]   ;;  %v3451_v38 = vld [vmem:[%s4850_s6 + $0x60] ss:$8 sps:$4 sm:$0xff]  }
 0x22d   : > { %v3456_v39 = vld [vmem:[%s4850_s6 + $0x74] ss:$8 sps:$4 sm:$0xff]   ;;  %v3457_v42 = vld [vmem:[%s4850_s6 + $0x80] ss:$8 sps:$4 sm:$0xff]  }
 0x22e   : > { %1283 = vmatprep.mubr.bf16.mxu1 %v1248_v44  ;;  %v3462_v43 = vld [vmem:[%s4850_s6 + $0x94] ss:$8 sps:$4 sm:$0xff]   ;;  %v3460_v44 = vld [vmem:[%s4850_s6 + $0x90] ss:$8 sps:$4 sm:$0xff]  }
 0x268   : > { %v1003_v46 = vpop.f32.mrb[4].mxu1 }
 0x269   : > { %v1005_v49 = vpop.f32.mrb[5].mxu1 }
 0x26a   : > { %v1007_v50 = vpop.f32.mrb[6].mxu1 }
 0x26b   : > { %v1249_v48 = vpack.c.bf16 %v1007_v50, %v1003_v46  ;;  %v1009_v51 = vpop.f32.mrb[7].mxu1  ;;  %v3463_v46 = vld [vmem:[%s4850_s6 + $0xa0] ss:$8 sps:$4 sm:$0xff]   ;;  %v3466_v50 = vld [vmem:[%s4850_s6 + $0xb0] ss:$8 sps:$4 sm:$0xff]  }
 0x26c   : > { %v1250_v52 = vpack.c.bf16 %v1009_v51, %v1005_v49  ;;  %v3468_v49 = vld [vmem:[%s4850_s6 + $0xb4] ss:$8 sps:$4 sm:$0xff]   ;;  %v3469_v51 = vld [vmem:[%s4850_s6 + $0xc0] ss:$8 sps:$4 sm:$0xff]  }
 0x26e   : > { %1251 = vmatprep.subr.bf16.mxu1 %v1250_v52  ;;  %v3474_v52 = vld [vmem:[%s4850_s6 + $0xd4] ss:$8 sps:$4 sm:$0xff]  }
 0x26f   : > { %1252 = vmatpush1.bf16.xpose.msra.mxu1 %v1249_v48  ;;  %v3471_v48 = vld [vmem:[%s4850_s6 + $0xc4] ss:$8 sps:$4 sm:$0xff]  }
 0x270   : > { %1332 = vmatprep.subr.bf16.mxu1 %v1328_v45  ;;  %v3465_v45 = vld [vmem:[%s4850_s6 + $0xa4] ss:$8 sps:$4 sm:$0xff]  }
 0x276   : > { %1284 = vmatmul.mubr.bf16.vlgmr.msra.gmra.mrb[8].mxu1 %v1247_v40  ;;  %v3454_v40 = vld [vmem:[%s4850_s6 + $0x70] ss:$8 sps:$4 sm:$0xff]  }
 0x277   : > { %1333 = vmatpush1.bf16.msra.mxu1 %v1327_v41  ;;  %1364 = vmatprep.mubr.bf16.mxu1 %v3729_v13  ;;  %v3459_v41 = vld [vmem:[%s4850_s6 + $0x84] ss:$8 sps:$4 sm:$0xff]  }
 0x278   : > { %1569 = vmatprep.subr.bf16.mxu1 %v3435_v14  ;;  %v3492_v13 = vld [vmem:[%s4853_s9 + $0x2c] ss:$16 sps:$4 sm:$0xff]   ;;  %v3487_v14 = vld [vmem:[%s4853_s9 + $0x20] ss:$16 sps:$4 sm:$0xff]  }
 0x349   : > { %v1285_v57 = vpop.f32.mrb[8].mxu1 }
 0x34a   : > { %v1292_v58 = vmul.f32 0.0625, %v1285_v57  ;;  %v1287_v59 = vpop.f32.mrb[9].mxu1  ;;  %v3475_v57 = vld [vmem:[%s4850_s6 + $0xe0] ss:$8 sps:$4 sm:$0xff]  }
 0x34b   : > { %v1288_v47 = vpop.f32.mrb[10].mxu1  ;;  %v3478_v59 = vld [vmem:[%s4850_s6 + $0xf0] ss:$8 sps:$4 sm:$0xff]  }
 0x34c   : > { %v1293_v60 = vmul.f32 0.0625, %v1288_v47  ;;  %v1290_v61 = vpop.f32.mrb[11].mxu1  ;;  %v1301_v54 = vsel %vm1299_vm0, %v1292_v58, -1e+30  ;;  %v3480_v58 = vld [vmem:[%s4850_s6 + $0xf4] ss:$8 sps:$4 sm:$0xff]  }
 0x34d   : > { %v1304_v53 = vsel %vm1303_vm1, %v1301_v54, -inf }
 0x34e   : > { %1305 = vmax.xlane.f32.xlu0 %v1304_v53  ;;  %v1302_v62 = vsel %vm1300_vm2, %v1293_v60, -1e+30 }
 0x34f   : > { %v1307_v63 = vsel %vm1303_vm1, %v1302_v62, -inf }
 0x350   : > { %1308 = vmax.xlane.f32.xlu1 %v1307_v63 }
 0x3db   : > { %v1306_v31 = vpop.xlane.xlu0 %1305 }
 0x3dc   : > { %v1310_v0 = vsub.f32 %v1301_v54, %v1306_v31 }
 0x3dd   : > { %v1309_v1 = vpop.xlane.xlu1 %1308 }
 0x3de   : > { %v1312_v6 = vmul.f32 1.442695, %v1310_v0  ;;  %v1311_v7 = vsub.f32 %v1302_v62, %v1309_v1 }
 0x3e0   : > { %3693 = vpow2.f32 %v1312_v6  ;;  %v1314_v8 = vmul.f32 1.442695, %v1311_v7 }
 0x3e2   : > { %3695 = vpow2.f32 %v1314_v8 }
 0x3ea   : > { %v3694_v9 = vpop.eup %3693 }
 0x3eb   : > { %v1316_v10 = vsel %vm1303_vm1, %v3694_v9, 0.0 }
 0x3ec   : > { %v3696_v11 = vpop.eup %3695  ;;  %1317 = vadd.xlane.f32.xlu0 %v1316_v10 }
 0x3ed   : > { %v1319_v12 = vsel %vm1303_vm1, %v3696_v11, 0.0 }
 0x3ee   : > { %1320 = vadd.xlane.f32.xlu1 %v1319_v12  ;;  %v3489_v12 = vld [vmem:[%s4853_s9 + $0x24] ss:$16 sps:$4 sm:$0xff]  }
 0x479   : > { %v1318_v15 = vpop.xlane.xlu0 %1317 }
 0x47a   : > { %3697 = vrcp.f32 %v1318_v15  ;;  %v3490_v15 = vld [vmem:[%s4853_s9 + $0x28] ss:$16 sps:$4 sm:$0xff]  }
 0x47b   : > { %v1321_v16 = vpop.xlane.xlu1 %1320 }
 0x47c   : > { %3699 = vrcp.f32 %v1321_v16  ;;  %v3495_v16 = vld [vmem:[%s4853_s9 + $0x44] ss:$16 sps:$4 sm:$0xff]  }
 0x484   : > { %v3698_v17 = vpop.eup %3697 }
 0x485   : > { %v1324_v19 = vmul.f32 %v3698_v17, %v3694_v9  ;;  %v3498_v17 = vld [vmem:[%s4853_s9 + $0x4c] ss:$16 sps:$4 sm:$0xff]  }
 0x486   : > { %v3700_v18 = vpop.eup %3699 }
 0x487   : > { %v1325_v20 = vmul.f32 %v3700_v18, %v3696_v11  ;;  %v3486_v11 = vld [vmem:[%s4853_s9 + $0xc] ss:$16 sps:$4 sm:$0xff]   ;;  %v3493_v18 = vld [vmem:[%s4853_s9 + $0x40] ss:$16 sps:$4 sm:$0xff]  }
 0x489   : > { %v1326_v22 = vpack.c.bf16 %v1325_v20, %v1324_v19  ;;  %v3496_v19 = vld [vmem:[%s4853_s9 + $0x48] ss:$16 sps:$4 sm:$0xff]   ;;  %v3501_v20 = vld [vmem:[%s4853_s9 + $0x64] ss:$16 sps:$4 sm:$0xff]  }
 0x48b   : > { %3069 = vmatmul.mubr.msk.bf16.vlgmr.msra.gmra.mrb[12].mxu1 %vm1303_vm1, %v1326_v22  ;;  %v3499_v22 = vld [vmem:[%s4853_s9 + $0x60] ss:$16 sps:$4 sm:$0xff]  }
 0x48c   : > { %1570 = vmatpush1.bf16.msra.mxu1 %v3433_v21  ;;  %v3504_v21 = vld [vmem:[%s4853_s9 + $0x6c] ss:$16 sps:$4 sm:$0xff]  }
 0x48d   : > { %1571 = vmatprep.subr.bf16.mxu1 %v3438_v23  ;;  %v3502_v23 = vld [vmem:[%s4853_s9 + $0x68] ss:$16 sps:$4 sm:$0xff]  }
 0x490   : > { %1572 = vmatpush1.bf16.msra.mxu1 %v3436_v24  ;;  %v3507_v24 = vld [vmem:[%s4853_s9 + $0x84] ss:$16 sps:$4 sm:$0xff]  }
 0x491   : > { %1573 = vmatprep.subr.bf16.mxu1 %v3441_v25  ;;  %v3510_v25 = vld [vmem:[%s4853_s9 + $0x8c] ss:$16 sps:$4 sm:$0xff]  }
 0x494   : > { %1574 = vmatpush1.bf16.msra.mxu1 %v3439_v26  ;;  %v3505_v26 = vld [vmem:[%s4853_s9 + $0x80] ss:$16 sps:$4 sm:$0xff]  }
 0x495   : > { %1575 = vmatprep.subr.bf16.mxu1 %v3444_v27  ;;  %v3508_v27 = vld [vmem:[%s4853_s9 + $0x88] ss:$16 sps:$4 sm:$0xff]  }
 0x498   : > { %1576 = vmatpush1.bf16.msra.mxu1 %v3442_v28  ;;  %v3513_v28 = vld [vmem:[%s4853_s9 + $0xa4] ss:$16 sps:$4 sm:$0xff]  }
 0x499   : > { %1577 = vmatprep.subr.bf16.mxu1 %v3447_v29  ;;  %v3516_v29 = vld [vmem:[%s4853_s9 + $0xac] ss:$16 sps:$4 sm:$0xff]  }
 0x49c   : > { %1578 = vmatpush1.bf16.msra.mxu1 %v3445_v30  ;;  %v3511_v30 = vld [vmem:[%s4853_s9 + $0xa0] ss:$16 sps:$4 sm:$0xff]  }
 0x49d   : > { %1579 = vmatprep.subr.bf16.mxu1 %v3450_v32  ;;  %v3514_v32 = vld [vmem:[%s4853_s9 + $0xa8] ss:$16 sps:$4 sm:$0xff]  }
 0x4a0   : > { %1580 = vmatpush1.bf16.msra.mxu1 %v3448_v33  ;;  %v3519_v33 = vld [vmem:[%s4853_s9 + $0xc4] ss:$16 sps:$4 sm:$0xff]  }
 0x4a1   : > { %1581 = vmatprep.subr.bf16.mxu1 %v3453_v37  ;;  %v3522_v37 = vld [vmem:[%s4853_s9 + $0xcc] ss:$16 sps:$4 sm:$0xff]  }
 0x4a4   : > { %1582 = vmatpush1.bf16.msra.mxu1 %v3451_v38  ;;  %v3517_v38 = vld [vmem:[%s4853_s9 + $0xc0] ss:$16 sps:$4 sm:$0xff]  }
 0x4a5   : > { %1583 = vmatprep.subr.bf16.mxu1 %v3456_v39  ;;  %v3520_v39 = vld [vmem:[%s4853_s9 + $0xc8] ss:$16 sps:$4 sm:$0xff]  }
 0x4a8   : > { %1584 = vmatpush1.bf16.msra.mxu1 %v3454_v40  ;;  %v3525_v40 = vld [vmem:[%s4853_s9 + $0xe4] ss:$16 sps:$4 sm:$0xff]  }
 0x4a9   : > { %1585 = vmatprep.subr.bf16.mxu1 %v3459_v41  ;;  %v3528_v41 = vld [vmem:[%s4853_s9 + $0xec] ss:$16 sps:$4 sm:$0xff]  }
 0x4ac   : > { %1586 = vmatpush1.bf16.msra.mxu1 %v3457_v42  ;;  %v3523_v42 = vld [vmem:[%s4853_s9 + $0xe0] ss:$16 sps:$4 sm:$0xff]  }
 0x4ad   : > { %1587 = vmatprep.subr.bf16.mxu1 %v3462_v43  ;;  %v3526_v43 = vld [vmem:[%s4853_s9 + $0xe8] ss:$16 sps:$4 sm:$0xff]  }
 0x4b0   : > { %1588 = vmatpush1.bf16.msra.mxu1 %v3460_v44  ;;  %v3531_v44 = vld [vmem:[%s4853_s9 + $0x104] ss:$16 sps:$4 sm:$0xff]  }
 0x4b1   : > { %1589 = vmatprep.subr.bf16.mxu1 %v3465_v45  ;;  %v3534_v45 = vld [vmem:[%s4853_s9 + $0x10c] ss:$16 sps:$4 sm:$0xff]  }
 0x4b4   : > { %1590 = vmatpush1.bf16.msra.mxu1 %v3463_v46  ;;  %v3529_v46 = vld [vmem:[%s4853_s9 + $0x100] ss:$16 sps:$4 sm:$0xff]  }
 0x4b5   : > { %1591 = vmatprep.subr.bf16.mxu1 %v3468_v49  ;;  %v3532_v49 = vld [vmem:[%s4853_s9 + $0x108] ss:$16 sps:$4 sm:$0xff]  }
 0x4b8   : > { %1592 = vmatpush1.bf16.msra.mxu1 %v3466_v50  ;;  %v3537_v50 = vld [vmem:[%s4853_s9 + $0x124] ss:$16 sps:$4 sm:$0xff]  }
 0x4b9   : > { %1593 = vmatprep.subr.bf16.mxu1 %v3471_v48  ;;  %v3540_v48 = vld [vmem:[%s4853_s9 + $0x12c] ss:$16 sps:$4 sm:$0xff]  }
 0x4bc   : > { %1594 = vmatpush1.bf16.msra.mxu1 %v3469_v51  ;;  %v3535_v51 = vld [vmem:[%s4853_s9 + $0x120] ss:$16 sps:$4 sm:$0xff]  }
 0x4bd   : > { %1595 = vmatprep.subr.bf16.mxu1 %v3474_v52  ;;  %v3538_v52 = vld [vmem:[%s4853_s9 + $0x128] ss:$16 sps:$4 sm:$0xff]  }
 0x4c0   : > { %1596 = vmatpush1.bf16.msra.mxu1 %v3472_v55 }
 0x4c1   : > { %1597 = vmatprep.subr.bf16.mxu1 %v3477_v56 }
 0x4c4   : > { %1598 = vmatpush1.bf16.msra.mxu1 %v3475_v57 }
 0x4c5   : > { %1599 = vmatprep.subr.bf16.mxu1 %v3480_v58 }
 0x4c8   : > { %1600 = vmatpush1.bf16.msra.mxu1 %v3478_v59 }
 0x4c9   : > { %2131 = vmatprep.subr.bf16.mxu1 %v3486_v11  ;;  %v3547_v11 = vld [vmem:[%s4853_s9 + $0x160] ss:$16 sps:$4 sm:$0xff]  }
 0x55e   : > { %v1366_v47 = vpop.f32.mrb[12].mxu1 }
 0x55f   : > { %v1368_v60 = vpop.f32.mrb[13].mxu1 }
 0x560   : > { %v1370_v61 = vpop.f32.mrb[14].mxu1 }
 0x561   : > { %v1375_v54 = vpack.c.bf16 %v1370_v61, %v1366_v47  ;;  %v1372_v53 = vpop.f32.mrb[15].mxu1 }
 0x562   : > { %v1376_v62 = vpack.c.bf16 %v1372_v53, %v1368_v60 }
 0x564   : > { %1601 = vmatprep.mubr.bf16.mxu1 %v1376_v62 }
 0x565   : > { %1602 = vmatmul.mubr.bf16.vlgmr.msra.gmra.mrb[16].mxu1 %v1375_v54 }
 0x638   : > { %v1603_v63 = vpop.f32.mrb[16].mxu1 }
 0x639   : > { %v4274_v31 = vadd.f32 %v1603_v63, %v3821_v2  ;;  %v1605_v0 = vpop.f32.mrb[17].mxu1 }
 0x63a   : > { %v4277_v1 = vadd.f32 %v1605_v0, %v3823_v3  ;;  %v1607_v6 = vpop.f32.mrb[18].mxu1  ;;  %v3481_v3 = vld [vmem:[%s4853_s9] ss:$16 sps:$4 sm:$0xff]  }
 0x63b   : > { %v4280_v7 = vadd.f32 %v1607_v6, %v3825_v4  ;;  %v1609_v8 = vpop.f32.mrb[19].mxu1  ;;  %v3483_v4 = vld [vmem:[%s4853_s9 + $0x4] ss:$16 sps:$4 sm:$0xff]  }
 0x63c   : > { %v4283_v9 = vadd.f32 %v1609_v8, %v3827_v5  ;;  %v1616_v10 = vadd.f32 %v4277_v1, %v4274_v31  ;;  %v3484_v5 = vld [vmem:[%s4853_s9 + $0x8] ss:$16 sps:$4 sm:$0xff]   ;;  %2088 = vmatprep.subr.bf16.mxu0 %v3483_v4  ;;  %v3543_v8 = vld [vmem:[%s4853_s9 + $0x144] ss:$16 sps:$4 sm:$0xff]  }
 0x63d   : > { %2089 = vmatpush1.bf16.msra.mxu0 %v3481_v3  ;;  %2132 = vmatpush1.bf16.msra.mxu1 %v3484_v5  ;;  %v3544_v3 = vld [vmem:[%s4853_s9 + $0x148] ss:$16 sps:$4 sm:$0xff]   ;;  %v3549_v4 = vld [vmem:[%s4853_s9 + $0x164] ss:$16 sps:$4 sm:$0xff]   ;;  %v3552_v5 = vld [vmem:[%s4853_s9 + $0x16c] ss:$16 sps:$4 sm:$0xff]  }
 0x63e   : > { %1617 = vadd.xlane.f32.xlu0 %v1616_v10  ;;  %v1619_v2 = vadd.f32 %v4283_v9, %v4280_v7  ;;  %2090 = vmatprep.subr.bf16.mxu0 %v3489_v12  ;;  %v3546_v10 = vld [vmem:[%s4853_s9 + $0x14c] ss:$16 sps:$4 sm:$0xff]   ;;  %v3550_v12 = vld [vmem:[%s4853_s9 + $0x168] ss:$16 sps:$4 sm:$0xff]  }
 0x63f   : > { %2133 = vmatprep.subr.bf16.mxu1 %v3492_v13  ;;  %v3555_v13 = vld [vmem:[%s4853_s9 + $0x184] ss:$16 sps:$4 sm:$0xff]  }
 0x640   : > { %1620 = vadd.xlane.f32.xlu1 %v1619_v2  ;;  %v3541_v2 = vld [vmem:[%s4853_s9 + $0x140] ss:$16 sps:$4 sm:$0xff]  }
 0x641   : > { %2091 = vmatpush1.bf16.msra.mxu0 %v3487_v14  ;;  %2134 = vmatpush1.bf16.msra.mxu1 %v3490_v15  ;;  %v3558_v14 = vld [vmem:[%s4853_s9 + $0x18c] ss:$16 sps:$4 sm:$0xff]   ;;  %v3553_v15 = vld [vmem:[%s4853_s9 + $0x180] ss:$16 sps:$4 sm:$0xff]  }
 0x642   : > { %2092 = vmatprep.subr.bf16.mxu0 %v3495_v16  ;;  %2135 = vmatprep.subr.bf16.mxu1 %v3498_v17  ;;  %v3556_v16 = vld [vmem:[%s4853_s9 + $0x188] ss:$16 sps:$4 sm:$0xff]   ;;  %v3561_v17 = vld [vmem:[%s4853_s9 + $0x1a4] ss:$16 sps:$4 sm:$0xff]  }
 0x645   : > { %2093 = vmatpush1.bf16.msra.mxu0 %v3493_v18  ;;  %2136 = vmatpush1.bf16.msra.mxu1 %v3496_v19  ;;  %v3564_v18 = vld [vmem:[%s4853_s9 + $0x1ac] ss:$16 sps:$4 sm:$0xff]   ;;  %v3559_v19 = vld [vmem:[%s4853_s9 + $0x1a0] ss:$16 sps:$4 sm:$0xff]  }
 0x646   : > { %2094 = vmatprep.subr.bf16.mxu0 %v3501_v20  ;;  %2137 = vmatprep.subr.bf16.mxu1 %v3504_v21  ;;  %v3562_v20 = vld [vmem:[%s4853_s9 + $0x1a8] ss:$16 sps:$4 sm:$0xff]   ;;  %v3567_v21 = vld [vmem:[%s4853_s9 + $0x1c4] ss:$16 sps:$4 sm:$0xff]  }
 0x649   : > { %2095 = vmatpush1.bf16.msra.mxu0 %v3499_v22  ;;  %2138 = vmatpush1.bf16.msra.mxu1 %v3502_v23  ;;  %v3570_v22 = vld [vmem:[%s4853_s9 + $0x1cc] ss:$16 sps:$4 sm:$0xff]   ;;  %v3565_v23 = vld [vmem:[%s4853_s9 + $0x1c0] ss:$16 sps:$4 sm:$0xff]  }
 0x64a   : > { %2096 = vmatprep.subr.bf16.mxu0 %v3507_v24  ;;  %2139 = vmatprep.subr.bf16.mxu1 %v3510_v25  ;;  %v3568_v24 = vld [vmem:[%s4853_s9 + $0x1c8] ss:$16 sps:$4 sm:$0xff]   ;;  %v3573_v25 = vld [vmem:[%s4853_s9 + $0x1e4] ss:$16 sps:$4 sm:$0xff]  }
 0x64d   : > { %2097 = vmatpush1.bf16.msra.mxu0 %v3505_v26  ;;  %2140 = vmatpush1.bf16.msra.mxu1 %v3508_v27  ;;  %v3576_v26 = vld [vmem:[%s4853_s9 + $0x1ec] ss:$16 sps:$4 sm:$0xff]   ;;  %v3571_v27 = vld [vmem:[%s4853_s9 + $0x1e0] ss:$16 sps:$4 sm:$0xff]  }
 0x64e   : > { %2098 = vmatprep.subr.bf16.mxu0 %v3513_v28  ;;  %2141 = vmatprep.subr.bf16.mxu1 %v3516_v29  ;;  %v3574_v28 = vld [vmem:[%s4853_s9 + $0x1e8] ss:$16 sps:$4 sm:$0xff]   ;;  %v3579_v29 = vld [vmem:[%s4855_s11 + $0x4] ss:$8 sps:$4 sm:$0xff]  }
 0x651   : > { %2099 = vmatpush1.bf16.msra.mxu0 %v3511_v30  ;;  %2142 = vmatpush1.bf16.msra.mxu1 %v3514_v32 }
 0x652   : > { %2100 = vmatprep.subr.bf16.mxu0 %v3519_v33  ;;  %2143 = vmatprep.subr.bf16.mxu1 %v3522_v37 }
 0x655   : > { %2101 = vmatpush1.bf16.msra.mxu0 %v3517_v38  ;;  %2144 = vmatpush1.bf16.msra.mxu1 %v3520_v39 }
 0x656   : > { %2102 = vmatprep.subr.bf16.mxu0 %v3525_v40  ;;  %2145 = vmatprep.subr.bf16.mxu1 %v3528_v41  ;;  %v1648_v40 = vld [vmem:[%s4851_s7] sm:$0x3] }
 0x657   : > { %v1653_v41 = vrot.slane %v1648_v40, %v4055_v36 }
 0x659   : > { %2103 = vmatpush1.bf16.msra.mxu0 %v3523_v42  ;;  %2146 = vmatpush1.bf16.msra.mxu1 %v3526_v43  ;;  %v1657_v42 = vrot.slane %v1648_v40, %v4052_v35  ;;  %v1664_v43 = vld [vmem:[%s4852_s8] sm:$0x3] }
 0x65a   : > { %2104 = vmatprep.subr.bf16.mxu0 %v3531_v44  ;;  %2147 = vmatprep.subr.bf16.mxu1 %v3534_v45 }
 0x65d   : > { %2105 = vmatpush1.bf16.msra.mxu0 %v3529_v46  ;;  %2148 = vmatpush1.bf16.msra.mxu1 %v3532_v49 }
 0x65e   : > { %2106 = vmatprep.subr.bf16.mxu0 %v3537_v50  ;;  %2149 = vmatprep.subr.bf16.mxu1 %v3540_v48  ;;  %v1669_v50 = vrot.slane %v1664_v43, %v4055_v36  ;;  %v1673_v48 = vrot.slane %v1664_v43, %v4052_v35 }
 0x661   : > { %2107 = vmatpush1.bf16.msra.mxu0 %v3535_v51  ;;  %2150 = vmatpush1.bf16.msra.mxu1 %v3538_v52 }
 0x662   : > { %2108 = vmatprep.subr.bf16.mxu0 %v3543_v8  ;;  %2151 = vmatprep.subr.bf16.mxu1 %v3546_v10  ;;  %v3583_v8 = vld [vmem:[%s4855_s11 + $0x20] ss:$8 sps:$4 sm:$0xff]   ;;  %v3588_v10 = vld [vmem:[%s4855_s11 + $0x34] ss:$8 sps:$4 sm:$0xff]  }
 0x665   : > { %2109 = vmatpush1.bf16.msra.mxu0 %v3541_v2  ;;  %2152 = vmatpush1.bf16.msra.mxu1 %v3544_v3  ;;  %v3586_v2 = vld [vmem:[%s4855_s11 + $0x30] ss:$8 sps:$4 sm:$0xff]   ;;  %v3591_v3 = vld [vmem:[%s4855_s11 + $0x44] ss:$8 sps:$4 sm:$0xff]  }
 0x666   : > { %2110 = vmatprep.subr.bf16.mxu0 %v3549_v4  ;;  %2153 = vmatprep.subr.bf16.mxu1 %v3552_v5  ;;  %v3589_v4 = vld [vmem:[%s4855_s11 + $0x40] ss:$8 sps:$4 sm:$0xff]   ;;  %v3594_v5 = vld [vmem:[%s4855_s11 + $0x54] ss:$8 sps:$4 sm:$0xff]  }
 0x669   : > { %2111 = vmatpush1.bf16.msra.mxu0 %v3547_v11  ;;  %2154 = vmatpush1.bf16.msra.mxu1 %v3550_v12  ;;  %v3592_v11 = vld [vmem:[%s4855_s11 + $0x50] ss:$8 sps:$4 sm:$0xff]   ;;  %v3597_v12 = vld [vmem:[%s4855_s11 + $0x64] ss:$8 sps:$4 sm:$0xff]  }
 0x66a   : > { %2112 = vmatprep.subr.bf16.mxu0 %v3555_v13  ;;  %2155 = vmatprep.subr.bf16.mxu1 %v3558_v14  ;;  %v3595_v13 = vld [vmem:[%s4855_s11 + $0x60] ss:$8 sps:$4 sm:$0xff]   ;;  %v3600_v14 = vld [vmem:[%s4855_s11 + $0x74] ss:$8 sps:$4 sm:$0xff]  }
 0x66d   : > { %2113 = vmatpush1.bf16.msra.mxu0 %v3553_v15  ;;  %2156 = vmatpush1.bf16.msra.mxu1 %v3556_v16  ;;  %v3598_v15 = vld [vmem:[%s4855_s11 + $0x70] ss:$8 sps:$4 sm:$0xff]   ;;  %v3603_v16 = vld [vmem:[%s4855_s11 + $0x84] ss:$8 sps:$4 sm:$0xff]  }
 0x66e   : > { %2114 = vmatprep.subr.bf16.mxu0 %v3561_v17  ;;  %2157 = vmatprep.subr.bf16.mxu1 %v3564_v18  ;;  %v3601_v17 = vld [vmem:[%s4855_s11 + $0x80] ss:$8 sps:$4 sm:$0xff]   ;;  %v3606_v18 = vld [vmem:[%s4855_s11 + $0x94] ss:$8 sps:$4 sm:$0xff]  }
 0x671   : > { %2115 = vmatpush1.bf16.msra.mxu0 %v3559_v19  ;;  %2158 = vmatpush1.bf16.msra.mxu1 %v3562_v20  ;;  %v3604_v19 = vld [vmem:[%s4855_s11 + $0x90] ss:$8 sps:$4 sm:$0xff]   ;;  %v3609_v20 = vld [vmem:[%s4855_s11 + $0xa4] ss:$8 sps:$4 sm:$0xff]  }
 0x672   : > { %2116 = vmatprep.subr.bf16.mxu0 %v3567_v21  ;;  %2159 = vmatprep.subr.bf16.mxu1 %v3570_v22  ;;  %v3607_v21 = vld [vmem:[%s4855_s11 + $0xa0] ss:$8 sps:$4 sm:$0xff]   ;;  %v3612_v22 = vld [vmem:[%s4855_s11 + $0xb4] ss:$8 sps:$4 sm:$0xff]  }
 0x675   : > { %2117 = vmatpush1.bf16.msra.mxu0 %v3565_v23  ;;  %2160 = vmatpush1.bf16.msra.mxu1 %v3568_v24  ;;  %v3610_v23 = vld [vmem:[%s4855_s11 + $0xb0] ss:$8 sps:$4 sm:$0xff]   ;;  %v3615_v24 = vld [vmem:[%s4855_s11 + $0xc4] ss:$8 sps:$4 sm:$0xff]  }
 0x676   : > { %2118 = vmatprep.subr.bf16.mxu0 %v3573_v25  ;;  %2161 = vmatprep.subr.bf16.mxu1 %v3576_v26  ;;  %v3613_v25 = vld [vmem:[%s4855_s11 + $0xc0] ss:$8 sps:$4 sm:$0xff]   ;;  %v3618_v26 = vld [vmem:[%s4855_s11 + $0xd4] ss:$8 sps:$4 sm:$0xff]  }
 0x679   : > { %2119 = vmatpush1.bf16.msra.mxu0 %v3571_v27  ;;  %2162 = vmatpush1.bf16.msra.mxu1 %v3574_v28  ;;  %v3616_v27 = vld [vmem:[%s4855_s11 + $0xd0] ss:$8 sps:$4 sm:$0xff]   ;;  %v3621_v28 = vld [vmem:[%s4855_s11 + $0xe4] ss:$8 sps:$4 sm:$0xff]  }
 0x67a   : > { %2646 = vmatprep.subr.bf16.mxu0 %v3579_v29  ;;  %v3619_v29 = vld [vmem:[%s4855_s11 + $0xe0] ss:$8 sps:$4 sm:$0xff]  }
 0x6cb   : > { %v1618_v55 = vpop.xlane.xlu0 %1617 }
 0x6cc   : > { %v1622_v56 = vmul.f32 0.00390625, %v1618_v55 }
 0x6cd   : > { %v1621_v57 = vpop.xlane.xlu1 %1620 }
 0x6ce   : > { %v4410_v58 = vsub.f32 %v4274_v31, %v1622_v56  ;;  %v4413_v59 = vsub.f32 %v4277_v1, %v1622_v56  ;;  %v1623_v47 = vmul.f32 0.00390625, %v1621_v57 }
 0x6d0   : > { %v4416_v60 = vsub.f32 %v4280_v7, %v1623_v47  ;;  %v4419_v61 = vsub.f32 %v4283_v9, %v1623_v47  ;;  %v1628_v54 = vmul.f32 %v4410_v58, %v4410_v58  ;;  %v1629_v53 = vmul.f32 %v4413_v59, %v4413_v59 }
 0x6d2   : > { %v1632_v62 = vadd.f32 %v1629_v53, %v1628_v54  ;;  %v1630_v63 = vmul.f32 %v4416_v60, %v4416_v60  ;;  %v1631_v0 = vmul.f32 %v4419_v61, %v4419_v61 }
 0x6d4   : > { %1633 = vadd.xlane.f32.xlu0 %v1632_v62  ;;  %v1635_v6 = vadd.f32 %v1631_v0, %v1630_v63 }
 0x6d6   : > { %1636 = vadd.xlane.f32.xlu1 %v1635_v6  ;;  %v3585_v6 = vld [vmem:[%s4855_s11 + $0x24] ss:$8 sps:$4 sm:$0xff]  }
 0x761   : > { %v1634_v30 = vpop.xlane.xlu0 %1633 }
 0x762   : > { %v1638_v32 = vmul.f32 0.00390625, %v1634_v30  ;;  %v3622_v30 = vld [vmem:[%s4855_s11 + $0xf0] ss:$8 sps:$4 sm:$0xff]  }
 0x763   : > { %v1637_v33 = vpop.xlane.xlu1 %1636 }
 0x764   : > { %v1640_v37 = vadd.f32 1e-05, %v1638_v32  ;;  %v1639_v38 = vmul.f32 0.00390625, %v1637_v33  ;;  %v3624_v32 = vld [vmem:[%s4855_s11 + $0xf4] ss:$8 sps:$4 sm:$0xff]  }
 0x765   : > { %v3627_v33 = vld [vmem:[%s4855_s11 + $0x104] ss:$8 sps:$4 sm:$0xff]  }
 0x766   : > { %3701 = vrsqrt.f32 %v1640_v37  ;;  %v1641_v39 = vadd.f32 1e-05, %v1639_v38  ;;  %v1758_v37 = vsub.s32 2, %v4049_v34  ;;  %v1746_v38 = vld [vmem:[%s4854_s10] sm:$0xf] }
 0x767   : > { %v1751_v40 = vrot.slane %v1746_v38, %v4055_v36 }
 0x768   : > { %3703 = vrsqrt.f32 %v1641_v39  ;;  %v1762_v39 = vsub.s32 3, %v4049_v34 }
 0x76a   : > { %v1763_v43 = vrot.slane %v1746_v38, %v1762_v39 }
 0x770   : > { %v3702_v44 = vpop.eup %3701 }
 0x771   : > { %v1644_v45 = vmul.f32 %v3702_v44, %v4410_v58  ;;  %v1645_v46 = vmul.f32 %v3702_v44, %v4413_v59  ;;  %v3577_v59 = vld [vmem:[%s4855_s11] ss:$8 sps:$4 sm:$0xff]  }
 0x772   : > { %v3704_v49 = vpop.eup %3703 }
 0x773   : > { %v1646_v51 = vmul.f32 %v3704_v49, %v4416_v60  ;;  %v1647_v52 = vmul.f32 %v3704_v49, %v4419_v61  ;;  %v1661_v55 = vmul.f32 %v1657_v42, %v1645_v46  ;;  %v1660_v56 = vmul.f32 %v1653_v41, %v1644_v45  ;;  %v3582_v60 = vld [vmem:[%s4855_s11 + $0x14] ss:$8 sps:$4 sm:$0xff]   ;;  %v3580_v61 = vld [vmem:[%s4855_s11 + $0x10] ss:$8 sps:$4 sm:$0xff]  }
 0x775   : > { %v1663_v57 = vmul.f32 %v1657_v42, %v1647_v52  ;;  %v1662_v47 = vmul.f32 %v1653_v41, %v1646_v51  ;;  %v1677_v54 = vadd.f32 %v1673_v48, %v1661_v55  ;;  %v1676_v62 = vadd.f32 %v1669_v50, %v1660_v56 }
 0x776   : > { %v1759_v41 = vrot.slane %v1746_v38, %v1758_v37  ;;  %v1755_v42 = vrot.slane %v1746_v38, %v4052_v35 }
 0x777   : > { %v1679_v53 = vadd.f32 %v1673_v48, %v1663_v57  ;;  %v1678_v63 = vadd.f32 %v1669_v50, %v1662_v47 }
 0x779   : > { %v1681_v58 = vpack.c.bf16 %v1679_v53, %v1677_v54  ;;  %v1680_v0 = vpack.c.bf16 %v1678_v63, %v1676_v62 }
 0x77b   : > { %2120 = vmatprep.mubr.bf16.mxu0 %v1681_v58  ;;  %2163 = vmatprep.mubr.bf16.mxu1 %v1681_v58 }
 0x77c   : > { %2121 = vmatmul.mubr.bf16.vlgmr.msra.gmra.mrb[4].mxu0 %v1680_v0  ;;  %2164 = vmatmul.mubr.bf16.vlgmr.msra.gmra.mrb[20].mxu1 %v1680_v0 }
 0x77d   : > { %2647 = vmatpush1.bf16.msra.mxu0 %v3577_v59 }
 0x77e   : > { %2648 = vmatprep.subr.bf16.mxu0 %v3582_v60 }
 0x781   : > { %2649 = vmatpush1.bf16.msra.mxu0 %v3580_v61 }
 0x782   : > { %2650 = vmatprep.subr.bf16.mxu0 %v3585_v6 }
 0x785   : > { %2651 = vmatpush1.bf16.msra.mxu0 %v3583_v8 }
 0x786   : > { %2652 = vmatprep.subr.bf16.mxu0 %v3588_v10 }
 0x789   : > { %2653 = vmatpush1.bf16.msra.mxu0 %v3586_v2 }
 0x78a   : > { %2654 = vmatprep.subr.bf16.mxu0 %v3591_v3 }
 0x78d   : > { %2655 = vmatpush1.bf16.msra.mxu0 %v3589_v4 }
 0x78e   : > { %2656 = vmatprep.subr.bf16.mxu0 %v3594_v5 }
 0x791   : > { %2657 = vmatpush1.bf16.msra.mxu0 %v3592_v11 }
 0x792   : > { %2658 = vmatprep.subr.bf16.mxu0 %v3597_v12 }
 0x795   : > { %2659 = vmatpush1.bf16.msra.mxu0 %v3595_v13 }
 0x796   : > { %2660 = vmatprep.subr.bf16.mxu0 %v3600_v14 }
 0x799   : > { %2661 = vmatpush1.bf16.msra.mxu0 %v3598_v15 }
 0x79a   : > { %2662 = vmatprep.subr.bf16.mxu0 %v3603_v16 }
 0x79d   : > { %2663 = vmatpush1.bf16.msra.mxu0 %v3601_v17 }
 0x79e   : > { %2664 = vmatprep.subr.bf16.mxu0 %v3606_v18 }
 0x7a1   : > { %2665 = vmatpush1.bf16.msra.mxu0 %v3604_v19 }
 0x7a2   : > { %2666 = vmatprep.subr.bf16.mxu0 %v3609_v20 }
 0x7a5   : > { %2667 = vmatpush1.bf16.msra.mxu0 %v3607_v21 }
 0x7a6   : > { %2668 = vmatprep.subr.bf16.mxu0 %v3612_v22 }
 0x7a9   : > { %2669 = vmatpush1.bf16.msra.mxu0 %v3610_v23 }
 0x7aa   : > { %2670 = vmatprep.subr.bf16.mxu0 %v3615_v24 }
 0x7ad   : > { %2671 = vmatpush1.bf16.msra.mxu0 %v3613_v25 }
 0x7ae   : > { %2672 = vmatprep.subr.bf16.mxu0 %v3618_v26 }
 0x7b1   : > { %2673 = vmatpush1.bf16.msra.mxu0 %v3616_v27 }
 0x7b2   : > { %2674 = vmatprep.subr.bf16.mxu0 %v3621_v28 }
 0x7b5   : > { %2675 = vmatpush1.bf16.msra.mxu0 %v3619_v29 }
 0x7b6   : > { %2676 = vmatprep.subr.bf16.mxu0 %v3624_v32 }
 0x7b9   : > { %2677 = vmatpush1.bf16.msra.mxu0 %v3622_v30 }
 0x7ba   : > { %2689 = vmatprep.subr.bf16.mxu0 %v3627_v33 }
 0x84f   : > { %v2122_v44 = vpop.f32.mrb[4].mxu0  ;;  %v2165_v45 = vpop.f32.mrb[20].mxu1 }
 0x850   : > { %v4621_v46 = vadd.f32 %v2122_v44, %v1751_v40  ;;  %v4623_v49 = vadd.f32 %v2165_v45, %v1759_v41  ;;  %v2124_v50 = vpop.f32.mrb[5].mxu0  ;;  %v2167_v48 = vpop.f32.mrb[21].mxu1 }
 0x851   : > { %v4625_v51 = vadd.f32 %v2124_v50, %v1755_v42  ;;  %v4627_v52 = vadd.f32 %v2167_v48, %v1763_v43  ;;  %v2126_v55 = vpop.f32.mrb[6].mxu0  ;;  %v2169_v34 = vpop.f32.mrb[22].mxu1 }
 0x852   : > { %v2174_v56 = vmul.f32 %v4621_v46, %v4621_v46  ;;  %v2176_v57 = vmul.f32 %v4623_v49, %v4623_v49  ;;  %v4633_v47 = vadd.f32 %v2126_v55, %v1751_v40  ;;  %v4635_v54 = vadd.f32 %v2169_v34, %v1759_v41  ;;  %v2128_v53 = vpop.f32.mrb[7].mxu0  ;;  %v2171_v62 = vpop.f32.mrb[23].mxu1 }
 0x853   : > { %v2175_v63 = vmul.f32 %v4625_v51, %v4625_v51  ;;  %v2177_v58 = vmul.f32 %v4627_v52, %v4627_v52  ;;  %v4641_v0 = vadd.f32 %v2128_v53, %v1755_v42  ;;  %v4643_v59 = vadd.f32 %v2171_v62, %v1763_v43 }
 0x854   : > { %v2182_v60 = vmul.f32 %v2174_v56, %v4621_v46  ;;  %v2184_v61 = vmul.f32 %v2176_v57, %v4623_v49  ;;  %v2178_v6 = vmul.f32 %v4633_v47, %v4633_v47  ;;  %v2180_v8 = vmul.f32 %v4635_v54, %v4635_v54 }
 0x855   : > { %v2183_v10 = vmul.f32 %v2175_v63, %v4625_v51  ;;  %v2185_v2 = vmul.f32 %v2177_v58, %v4627_v52  ;;  %v2179_v3 = vmul.f32 %v4641_v0, %v4641_v0  ;;  %v2181_v4 = vmul.f32 %v4643_v59, %v4643_v59 }
 0x856   : > { %v2190_v5 = vmul.f32 0.044715, %v2182_v60  ;;  %v2192_v11 = vmul.f32 0.044715, %v2184_v61  ;;  %v2186_v12 = vmul.f32 %v2178_v6, %v4633_v47  ;;  %v2188_v13 = vmul.f32 %v2180_v8, %v4635_v54 }
 0x857   : > { %v2191_v14 = vmul.f32 0.044715, %v2183_v10  ;;  %v2193_v15 = vmul.f32 0.044715, %v2185_v2  ;;  %v2187_v16 = vmul.f32 %v2179_v3, %v4641_v0  ;;  %v2189_v17 = vmul.f32 %v2181_v4, %v4643_v59 }
 0x858   : > { %v2198_v18 = vadd.f32 %v2190_v5, %v4621_v46  ;;  %v2200_v19 = vadd.f32 %v2192_v11, %v4623_v49  ;;  %v2194_v20 = vmul.f32 0.044715, %v2186_v12  ;;  %v2196_v21 = vmul.f32 0.044715, %v2188_v13 }
 0x859   : > { %v2199_v22 = vadd.f32 %v2191_v14, %v4625_v51  ;;  %v2201_v23 = vadd.f32 %v2193_v15, %v4627_v52  ;;  %v2195_v24 = vmul.f32 0.044715, %v2187_v16  ;;  %v2197_v25 = vmul.f32 0.044715, %v2189_v17 }
 0x85a   : > { %v2206_v26 = vmul.f32 0.7978846, %v2198_v18  ;;  %v2208_v27 = vmul.f32 0.7978846, %v2200_v19  ;;  %v2202_v28 = vadd.f32 %v2194_v20, %v4633_v47  ;;  %v2204_v29 = vadd.f32 %v2196_v21, %v4635_v54  ;;  %v3636_v21 = vld [vmem:[%s4855_s11 + $0x134] ss:$8 sps:$4 sm:$0xff]  }
 0x85b   : > { %v2207_v30 = vmul.f32 0.7978846, %v2199_v22  ;;  %v2209_v32 = vmul.f32 0.7978846, %v2201_v23  ;;  %v2203_v33 = vadd.f32 %v2195_v24, %v4641_v0  ;;  %v2205_v37 = vadd.f32 %v2197_v25, %v4643_v59  ;;  %v3634_v22 = vld [vmem:[%s4855_s11 + $0x130] ss:$8 sps:$4 sm:$0xff]  }
 0x85c   : > { %3705 = vtanh.f32 %v2206_v26  ;;  %v2210_v38 = vmul.f32 0.7978846, %v2202_v28  ;;  %v2212_v39 = vmul.f32 0.7978846, %v2204_v29  ;;  %v3639_v23 = vld [vmem:[%s4855_s11 + $0x144] ss:$8 sps:$4 sm:$0xff]  }
 0x85d   : > { %3707 = vtanh.f32 %v2208_v27  ;;  %v2211_v40 = vmul.f32 0.7978846, %v2203_v33  ;;  %v2213_v41 = vmul.f32 0.7978846, %v2205_v37  ;;  %v3637_v24 = vld [vmem:[%s4855_s11 + $0x140] ss:$8 sps:$4 sm:$0xff]  }
 0x85e   : > { %3709 = vtanh.f32 %v2207_v30  ;;  %v3642_v25 = vld [vmem:[%s4855_s11 + $0x154] ss:$8 sps:$4 sm:$0xff]   ;;  %v3640_v26 = vld [vmem:[%s4855_s11 + $0x150] ss:$8 sps:$4 sm:$0xff]   ;;  %v3645_v27 = vld [vmem:[%s4855_s11 + $0x164] ss:$8 sps:$4 sm:$0xff]  }
 0x85f   : > { %3711 = vtanh.f32 %v2209_v32  ;;  %v3643_v28 = vld [vmem:[%s4855_s11 + $0x160] ss:$8 sps:$4 sm:$0xff]   ;;  %v3648_v29 = vld [vmem:[%s4855_s11 + $0x174] ss:$8 sps:$4 sm:$0xff]   ;;  %v3646_v30 = vld [vmem:[%s4855_s11 + $0x170] ss:$8 sps:$4 sm:$0xff]  }
 0x860   : > { %3713 = vtanh.f32 %v2210_v38  ;;  %v3651_v32 = vld [vmem:[%s4855_s11 + $0x184] ss:$8 sps:$4 sm:$0xff]   ;;  %v3649_v33 = vld [vmem:[%s4855_s11 + $0x180] ss:$8 sps:$4 sm:$0xff]   ;;  %v3654_v37 = vld [vmem:[%s4855_s11 + $0x194] ss:$8 sps:$4 sm:$0xff]  }
 0x861   : > { %3715 = vtanh.f32 %v2212_v39  ;;  %v3652_v38 = vld [vmem:[%s4855_s11 + $0x190] ss:$8 sps:$4 sm:$0xff]   ;;  %v3657_v39 = vld [vmem:[%s4855_s11 + $0x1a4] ss:$8 sps:$4 sm:$0xff]  }
 0x862   : > { %3717 = vtanh.f32 %v2211_v40  ;;  %v3655_v40 = vld [vmem:[%s4855_s11 + $0x1a0] ss:$8 sps:$4 sm:$0xff]  }
 0x863   : > { %3719 = vtanh.f32 %v2213_v41  ;;  %v3660_v41 = vld [vmem:[%s4855_s11 + $0x1b4] ss:$8 sps:$4 sm:$0xff]  }
 0x866   : > { %v3706_v42 = vpop.eup %3705 }
 0x867   : > { %v3708_v43 = vpop.eup %3707  ;;  %v2222_v44 = vadd.f32 1.0, %v3706_v42  ;;  %v3658_v42 = vld [vmem:[%s4855_s11 + $0x1b0] ss:$8 sps:$4 sm:$0xff]  }
 0x868   : > { %v3710_v45 = vpop.eup %3709  ;;  %v2224_v50 = vadd.f32 1.0, %v3708_v43  ;;  %v3663_v43 = vld [vmem:[%s4855_s11 + $0x1c4] ss:$8 sps:$4 sm:$0xff]  }
 0x869   : > { %v3712_v48 = vpop.eup %3711  ;;  %v2223_v55 = vadd.f32 1.0, %v3710_v45  ;;  %v2230_v53 = vmul.f32 0.5, %v2222_v44  ;;  %v3661_v44 = vld [vmem:[%s4855_s11 + $0x1c0] ss:$8 sps:$4 sm:$0xff]   ;;  %v3666_v45 = vld [vmem:[%s4855_s11 + $0x1d4] ss:$8 sps:$4 sm:$0xff]  }
 0x86a   : > { %v3714_v34 = vpop.eup %3713  ;;  %v2225_v56 = vadd.f32 1.0, %v3712_v48  ;;  %v2232_v58 = vmul.f32 0.5, %v2224_v50  ;;  %v3664_v50 = vld [vmem:[%s4855_s11 + $0x1d0] ss:$8 sps:$4 sm:$0xff]   ;;  %v3669_v48 = vld [vmem:[%s4855_s11 + $0x1e4] ss:$8 sps:$4 sm:$0xff]  }
 0x86b   : > { %v3716_v57 = vpop.eup %3715  ;;  %v2226_v62 = vadd.f32 1.0, %v3714_v34  ;;  %v2231_v10 = vmul.f32 0.5, %v2223_v55  ;;  %v2238_v5 = vmul.f32 %v2230_v53, %v4621_v46  ;;  %v3667_v55 = vld [vmem:[%s4855_s11 + $0x1e0] ss:$8 sps:$4 sm:$0xff]   ;;  %v3672_v34 = vld [vmem:[%s4855_s11 + $0x1f4] ss:$8 sps:$4 sm:$0xff]  }
 0x86c   : > { %v3718_v63 = vpop.eup %3717  ;;  %v2228_v60 = vadd.f32 1.0, %v3716_v57  ;;  %v2233_v4 = vmul.f32 0.5, %v2225_v56  ;;  %v4672_v13 = vmul.f32 %v2232_v58, %v4623_v49  ;;  %v3625_v49 = vld [vmem:[%s4855_s11 + $0x100] ss:$8 sps:$4 sm:$0xff]   ;;  %v3670_v56 = vld [vmem:[%s4855_s11 + $0x1f0] ss:$8 sps:$4 sm:$0xff]  }
 0x86d   : > { %v3720_v61 = vpop.eup %3719  ;;  %v2234_v6 = vmul.f32 0.5, %v2226_v62  ;;  %v2227_v8 = vadd.f32 1.0, %v3718_v63  ;;  %v2239_v16 = vmul.f32 %v2231_v10, %v4625_v51  ;;  %v3630_v51 = vld [vmem:[%s4855_s11 + $0x114] ss:$8 sps:$4 sm:$0xff]   ;;  %v3673_v57 = vld [vmem:[%s4857_s13 + $0x40] sm:$0xff]   ;;  %v3675_v62 = vld [vmem:[%s4857_s13 + $0x48] sm:$0xff]  }
 0x86e   : > { %v2236_v2 = vmul.f32 0.5, %v2228_v60  ;;  %v2229_v3 = vadd.f32 1.0, %v3720_v61  ;;  %v2241_v19 = vmul.f32 %v2233_v4, %v4627_v52  ;;  %v3628_v52 = vld [vmem:[%s4855_s11 + $0x110] ss:$8 sps:$4 sm:$0xff]   ;;  %v3674_v53 = vld [vmem:[%s4857_s13] sm:$0xff]   ;;  %v3676_v63 = vld [vmem:[%s4857_s13 + $0x8] sm:$0xff]  }
 0x86f   : > { %v2242_v11 = vmul.f32 %v2234_v6, %v4633_v47  ;;  %v2235_v12 = vmul.f32 0.5, %v2227_v8  ;;  %v3677_v58 = vld [vmem:[%s4857_s13 + $0x50] sm:$0xff]   ;;  %v3679_v61 = vld [vmem:[%s4857_s13 + $0x58] sm:$0xff]   ;;  %v3681_v8 = vld [vmem:[%s4857_s13 + $0x60] sm:$0xff]  }
 0x870   : > { %v4675_v14 = vmul.f32 %v2236_v2, %v4635_v54  ;;  %v2237_v15 = vmul.f32 0.5, %v2229_v3  ;;  %v3678_v60 = vld [vmem:[%s4857_s13 + $0x10] sm:$0xff]   ;;  %v3680_v6 = vld [vmem:[%s4857_s13 + $0x18] sm:$0xff]   ;;  %v3682_v10 = vld [vmem:[%s4857_s13 + $0x20] sm:$0xff]  }
 0x871   : > { %v2243_v17 = vmul.f32 %v2235_v12, %v4641_v0  ;;  %v2246_v18 = vpack.c.bf16 %v2242_v11, %v2238_v5  ;;  %v3633_v0 = vld [vmem:[%s4855_s11 + $0x124] ss:$8 sps:$4 sm:$0xff]   ;;  %v3685_v4 = vld [vmem:[%s4857_s13 + $0x70] sm:$0xff]   ;;  %v3687_v11 = vld [vmem:[%s4857_s13 + $0x78] sm:$0xff]  }
 0x872   : > { %v2245_v20 = vmul.f32 %v2237_v15, %v4643_v59  ;;  %v2248_v46 = vpack.c.bf16 %v4675_v14, %v4672_v13  ;;  %v3631_v59 = vld [vmem:[%s4855_s11 + $0x120] ss:$8 sps:$4 sm:$0xff]   ;;  %v3686_v5 = vld [vmem:[%s4857_s13 + $0x30] sm:$0xff]   ;;  %v3688_v12 = vld [vmem:[%s4857_s13 + $0x38] sm:$0xff]  }
 0x873   : > { %v2247_v47 = vpack.c.bf16 %v2243_v17, %v2239_v16  ;;  %v3683_v2 = vld [vmem:[%s4857_s13 + $0x68] sm:$0xff]   ;;  %v2314_v13 = vld [vmem:[%s4856_s12] sm:$0x3] }
 0x874   : > { %v2249_v54 = vpack.c.bf16 %v2245_v20, %v2241_v19  ;;  %v3684_v3 = vld [vmem:[%s4857_s13 + $0x28] sm:$0xff]   ;;  %v2319_v14 = vrot.slane %v2314_v13, %v4055_v36  ;;  %v2323_v15 = vrot.slane %v2314_v13, %v4052_v35 }
 0x875   : > { %2678 = vmatprep.mubr.bf16.mxu0 %v2247_v47 }
 0x876   : > { %2679 = vmatmul.mubr.bf16.vlgmr.msra.gmra.mrb[8].mxu0 %v2246_v18 }
 0x877   : > { %2690 = vmatpush1.bf16.msra.mxu0 %v3625_v49  ;;  %2721 = vmatprep.mubr.bf16.mxu0 %v2249_v54 }
 0x878   : > { %2691 = vmatprep.subr.bf16.mxu0 %v3630_v51 }
 0x87b   : > { %2692 = vmatpush1.bf16.msra.mxu0 %v3628_v52 }
 0x87c   : > { %2693 = vmatprep.subr.bf16.mxu0 %v3633_v0 }
 0x87f   : > { %2694 = vmatpush1.bf16.msra.mxu0 %v3631_v59 }
 0x880   : > { %2695 = vmatprep.subr.bf16.mxu0 %v3636_v21 }
 0x883   : > { %2696 = vmatpush1.bf16.msra.mxu0 %v3634_v22 }
 0x884   : > { %2697 = vmatprep.subr.bf16.mxu0 %v3639_v23 }
 0x887   : > { %2698 = vmatpush1.bf16.msra.mxu0 %v3637_v24 }
 0x888   : > { %2699 = vmatprep.subr.bf16.mxu0 %v3642_v25 }
 0x88b   : > { %2700 = vmatpush1.bf16.msra.mxu0 %v3640_v26 }
 0x88c   : > { %2701 = vmatprep.subr.bf16.mxu0 %v3645_v27 }
 0x88f   : > { %2702 = vmatpush1.bf16.msra.mxu0 %v3643_v28 }
 0x890   : > { %2703 = vmatprep.subr.bf16.mxu0 %v3648_v29 }
 0x893   : > { %2704 = vmatpush1.bf16.msra.mxu0 %v3646_v30 }
 0x894   : > { %2705 = vmatprep.subr.bf16.mxu0 %v3651_v32 }
 0x897   : > { %2706 = vmatpush1.bf16.msra.mxu0 %v3649_v33 }
 0x898   : > { %2707 = vmatprep.subr.bf16.mxu0 %v3654_v37 }
 0x89b   : > { %2708 = vmatpush1.bf16.msra.mxu0 %v3652_v38 }
 0x89c   : > { %2709 = vmatprep.subr.bf16.mxu0 %v3657_v39 }
 0x89f   : > { %2710 = vmatpush1.bf16.msra.mxu0 %v3655_v40 }
 0x8a0   : > { %2711 = vmatprep.subr.bf16.mxu0 %v3660_v41 }
 0x8a3   : > { %2712 = vmatpush1.bf16.msra.mxu0 %v3658_v42 }
 0x8a4   : > { %2713 = vmatprep.subr.bf16.mxu0 %v3663_v43 }
 0x8a7   : > { %2714 = vmatpush1.bf16.msra.mxu0 %v3661_v44 }
 0x8a8   : > { %2715 = vmatprep.subr.bf16.mxu0 %v3666_v45 }
 0x8ab   : > { %2716 = vmatpush1.bf16.msra.mxu0 %v3664_v50 }
 0x8ac   : > { %2717 = vmatprep.subr.bf16.mxu0 %v3669_v48 }
 0x8af   : > { %2718 = vmatpush1.bf16.msra.mxu0 %v3667_v55 }
 0x8b0   : > { %2719 = vmatprep.subr.bf16.mxu0 %v3672_v34 }
 0x8b3   : > { %2720 = vmatpush1.bf16.msra.mxu0 %v3670_v56 }
 0x8b4   : > { %3250 = vmatprep.subr.bf16.mxu0 %v3673_v57 }
 0x8b6   : > { %2722 = vmatmul.mubr.bf16.vlgmr.msra.gmra.mrb[8].mxu0 %v2248_v46 }
 0x8b7   : > { %3251 = vmatpush3.bf16.msra.mxu0 %v3674_v53 }
 0x8b8   : > { %3252 = vmatprep.subr.bf16.mxu0 %v3675_v62 }
 0x8bb   : > { %3253 = vmatpush3.bf16.msra.mxu0 %v3676_v63 }
 0x8bc   : > { %3254 = vmatprep.subr.bf16.mxu0 %v3677_v58 }
 0x8bf   : > { %3255 = vmatpush3.bf16.msra.mxu0 %v3678_v60 }
 0x8c0   : > { %3256 = vmatprep.subr.bf16.mxu0 %v3679_v61 }
 0x8c3   : > { %3257 = vmatpush3.bf16.msra.mxu0 %v3680_v6 }
 0x8c4   : > { %3258 = vmatprep.subr.bf16.mxu0 %v3681_v8 }
 0x8c7   : > { %3259 = vmatpush3.bf16.msra.mxu0 %v3682_v10 }
 0x8c8   : > { %3260 = vmatprep.subr.bf16.mxu0 %v3683_v2 }
 0x8cb   : > { %3261 = vmatpush3.bf16.msra.mxu0 %v3684_v3 }
 0x8cc   : > { %3262 = vmatprep.subr.bf16.mxu0 %v3685_v4 }
 0x8cf   : > { %3263 = vmatpush3.bf16.msra.mxu0 %v3686_v5 }
 0x8d0   : > { %3264 = vmatprep.subr.bf16.mxu0 %v3687_v11 }
 0x8d3   : > { %3265 = vmatpush3.bf16.msra.mxu0 %v3688_v12 }
 0x989   : > { %v2723_v16 = vpop.f32.mrb[8].mxu0 }
 0x98a   : > { %v3272_v17 = vadd.f32 %v2723_v16, %v2319_v14  ;;  %v2725_v18 = vpop.f32.mrb[9].mxu0 }
 0x98b   : > { %v3273_v19 = vadd.f32 %v2725_v18, %v2323_v15  ;;  %v2727_v20 = vpop.f32.mrb[10].mxu0 }
 0x98c   : > { %v3274_v46 = vadd.f32 %v2727_v20, %v2319_v14  ;;  %v2729_v47 = vpop.f32.mrb[11].mxu0  ;;  %v2732_v54 = vadd.f32 %v3272_v17, %v4274_v31 }
 0x98d   : > { %v3275_v49 = vadd.f32 %v2729_v47, %v2323_v15  ;;  %v2733_v52 = vadd.f32 %v3273_v19, %v4277_v1 }
 0x98e   : > { %v2734_v51 = vadd.f32 %v3274_v46, %v4280_v7 }
 0x98f   : > { %v2735_v0 = vadd.f32 %v3275_v49, %v4283_v9 }
 0x990   : > { %v2736_v36 = vpack.c.bf16 %v2734_v51, %v2732_v54 }
 0x991   : > { %v2737_v59 = vpack.c.bf16 %v2735_v0, %v2733_v52 }
 0x993   : > { %2898 = vmatprep.mubr.bf16.mxu0 %v2737_v59 }
 0x994   : > { %2899 = vmatmul.mubr.bf16.vlgmr.msra.gmra.mrb[12].mxu0 %v2736_v36 }
 0xa67   : > { %v3266_v35 = vpop.f32.mrb[12].mxu0 }
 0xa68   : > { %v3267_v21 = vpop.f32.mrb[13].mxu0 }
 0xa69   : > { %v3268_v22 = vadd.f32 %v3267_v21, %v3266_v35  ;;  %v3269_v23 = vpop.f32.mrb[14].mxu0 }
 0xa6a   : > { %v3270_v31 = vpop.f32.mrb[15].mxu0 }
 0xa6b   : > { %2907 = vst [vmem:[%s467_s18] sm:$0xff] %v3268_v22  ;;  %v3271_v7 = vadd.f32 %v3270_v31, %v3269_v23 }
 0xa6d   : > { %2908 = vst [vmem:[%s467_s18 + $0x8] sm:$0xff] %v3271_v7 }
 0xa6e PF: > { %s24_s29 = sadd.s32 1, %s3727_s29  }
 0xa6f   : > { %p21_p4 = scmp.ge.s32.totalorder %s24_s29, 4  }
 0xa71   :  { %23 = sbr.rel (!%p21_p4) target bundleno = 1 (0x1), region = 106 }

</bundles_post_ra>
